<compile_context>
chip_gen: v6e
topology: v6e:2x2x1
jax: 0.10.0
libtpu: 0.0.40
codegen_flags: <defaults>
</compile_context>

<pallas_src>
import functools

import jax
import jax.numpy as jnp
from jax import lax
from jax.experimental import pallas as pl
from jax.experimental.pallas import tpu as pltpu


def _round_up(n, m):
    return ((n + m - 1) // m) * m


def seq3seq_kernel(x_ref, wih_ref, bih_ref,
                   enc_whh_ref, enc_bhn_ref,
                   dec_whh_ref, dec_bhn_ref,
                   wout_ref, bout_ref,
                   w1_ref, b1_ref, w2_ref, b2_ref,
                   pred_ref, out_ref,
                   gi_scr, hdec_scr,
                   *, T, Bp, Hp, Vp):
    # ---- one fused (T*Bp, E) x (E, 6*Hp) input-gate matmul for BOTH GRUs ----
    # b_ih and the r/z slabs of b_hh are pre-folded into bih_ref by the wrapper.
    gi_scr[...] = (jnp.dot(x_ref[...], wih_ref[...],
                           preferred_element_type=jnp.float32) + bih_ref[...])

    enc_whh = enc_whh_ref[...]
    dec_whh = dec_whh_ref[...]
    # n-gate hidden bias broadcasts hoisted out of the recurrences.
    enc_bhn = jnp.broadcast_to(enc_bhn_ref[...], (Bp, Hp))
    dec_bhn = jnp.broadcast_to(dec_bhn_ref[...], (Bp, Hp))

    def gru_step(gi, h, whh, bhn):
        # Lane-aligned gate slabs at offsets 0 / Hp / 2*Hp (PyTorch gate order r, z, n).
        gh = jnp.dot(h.astype(whh.dtype), whh, preferred_element_type=jnp.float32)
        r = jax.nn.sigmoid(gi[:, :Hp] + gh[:, :Hp])
        z = jax.nn.sigmoid(gi[:, Hp:2 * Hp] + gh[:, Hp:2 * Hp])
        n = jnp.tanh(gi[:, 2 * Hp:] + r * (gh[:, 2 * Hp:] + bhn))
        return (1.0 - z) * n + z * h

    # ---- encoder recurrence: one fused (Hp, 3*Hp) hidden matmul per step ----
    def enc_body(t, h):
        start = pl.multiple_of(t * Bp, Bp)
        gi = gi_scr[pl.ds(start, Bp), pl.ds(0, 3 * Hp)]
        return gru_step(gi, h, enc_whh, enc_bhn)

    h_enc = lax.fori_loop(0, T, enc_body,
                          jnp.zeros((Bp, Hp), jnp.float32),
                          unroll=min(T, 8))

    # ---- supervised MLP head on the fingerprint (num_layers == 1 -> fp == final hidden) ----
    h1 = jnp.maximum(
        jnp.dot(h_enc.astype(w1_ref.dtype), w1_ref[...],
                preferred_element_type=jnp.float32) + b1_ref[...], 0.0)
    pred_ref[...] = (jnp.dot(h1.astype(w2_ref.dtype), w2_ref[...],
                             preferred_element_type=jnp.float32)
                     + b2_ref[...]).astype(pred_ref.dtype)

    # ---- decoder recurrence (fully teacher-forced); stash per-step hidden states in bf16 ----
    def dec_body(t, h):
        start = pl.multiple_of(t * Bp, Bp)
        gi = gi_scr[pl.ds(start, Bp), pl.ds(3 * Hp, 3 * Hp)]
        h_new = gru_step(gi, h, dec_whh, dec_bhn)
        hdec_scr[t] = h_new.astype(hdec_scr.dtype)
        return h_new

    lax.fori_loop(0, T - 1, dec_body, h_enc, unroll=min(T - 1, 8))

    # ---- output projection streamed per time step straight into the batch-major,
    #      lane-dense bf16 output (no monolithic f32 logits block, no wrapper transpose) ----
    wout = wout_ref[...]
    bout = bout_ref[...]
    out_ref[:, 0:Vp] = jnp.zeros((Bp, Vp), out_ref.dtype)      # outputs[:, 0, :] stays zero
    for t in range(T - 1):                                      # static, 128-lane-aligned stores
        logits_t = jnp.dot(hdec_scr[t], wout,
                           preferred_element_type=jnp.float32) + bout
        out_ref[:, (t + 1) * Vp:(t + 2) * Vp] = logits_t.astype(out_ref.dtype)


def _pad_gate_lanes(w, H, Hp):
    """(rows, 3H) -> (rows, 3Hp) with each gate slab starting on a 128-lane boundary."""
    pad = Hp - H
    parts = [jnp.pad(w[:, g * H:(g + 1) * H], ((0, 0), (0, pad))) for g in range(3)]
    return jnp.concatenate(parts, axis=1)


def seq3seq_forward(x, params):
    """x: (B, T) int32 token ids. Returns (pred, (x, outputs)) like the PyTorch module."""
    B, T = x.shape
    emb = params["embedding"]                       # (V, E) bf16
    V, E = emb.shape
    H = params["enc_whh"].shape[0]
    S = params["sup_w1"].shape[1]
    O = params["sup_w2"].shape[1]

    Bp = _round_up(max(B, 8), 8)                    # sublane-aligned batch
    Hp = _round_up(max(H, 128), 128)                # lane-aligned gate slab width
    Vp = _round_up(max(V, 128), 128)                # lane-dense vocab
    Op = _round_up(max(O, 128), 128)                # lane-dense prediction head
    bf = jnp.bfloat16

    # ---- weight prep: lane-aligned gate slabs, fused enc|dec input-gate matmul ----
    enc_wih_p = _pad_gate_lanes(params["enc_wih"], H, Hp).astype(bf)
    dec_wih_p = _pad_gate_lanes(params["dec_wih"], H, Hp).astype(bf)
    wih_c = jnp.concatenate([enc_wih_p, dec_wih_p], axis=1)              # (E, 6*Hp)

    def hh_pad(whh):
        w = _pad_gate_lanes(whh, H, Hp)
        return jnp.pad(w, ((0, Hp - H), (0, 0))).astype(bf)              # (Hp, 3*Hp)

    enc_whh_p = hh_pad(params["enc_whh"])
    dec_whh_p = hh_pad(params["dec_whh"])

    def bias_fold(bih, bhh):
        bih_p = _pad_gate_lanes(bih, H, Hp)                              # (1, 3*Hp)
        bhh_p = _pad_gate_lanes(bhh, H, Hp)
        fused = jnp.concatenate([bih_p[:, :2 * Hp] + bhh_p[:, :2 * Hp],  # fold r/z hidden bias
                                 bih_p[:, 2 * Hp:]], axis=1)
        return fused, bhh_p[:, 2 * Hp:]                                  # (1, 3*Hp), (1, Hp)

    enc_bias, enc_bhn = bias_fold(params["enc_bih"], params["enc_bhh"])
    dec_bias, dec_bhn = bias_fold(params["dec_bih"], params["dec_bhh"])
    bih_c = jnp.concatenate([enc_bias, dec_bias], axis=1)                # (1, 6*Hp)

    wout_p = jnp.pad(params["dec_wout"], ((0, Hp - H), (0, Vp - V))).astype(bf)   # (Hp, Vp)
    bout_p = jnp.pad(params["dec_bout"], ((0, 0), (0, Vp - V)))                   # (1, Vp)
    w1_p = jnp.pad(params["sup_w1"], ((0, Hp - H), (0, 0))).astype(bf)            # (Hp, S)
    b1 = params["sup_b1"]                                                         # (1, S)
    w2_p = jnp.pad(params["sup_w2"], ((0, 0), (0, Op - O))).astype(bf)            # (S, Op)
    b2_p = jnp.pad(params["sup_b2"], ((0, 0), (0, Op - O)))                       # (1, Op)

    # ---- embedding lookup directly in time-major flattened layout ----
    xp = jnp.pad(x, ((0, Bp - B), (0, 0)))                     # (Bp, T)
    ids_tm = jnp.transpose(xp, (1, 0)).reshape(T * Bp)         # (T*Bp,)
    x_emb = jnp.take(emb, ids_tm, axis=0)                      # (T*Bp, E) bf16

    # ---- VMEM budget: everything resident once (no grid) + headroom, capped for v7x ----
    def nbytes(shape, dtype):
        n = 1
        for d in shape:
            n *= int(d)
        return n * jnp.dtype(dtype).itemsize

    vmem_needed = sum([
        nbytes((T * Bp, E), bf), nbytes((E, 6 * Hp), bf), nbytes((1, 6 * Hp), jnp.float32),
        2 * nbytes((Hp, 3 * Hp), bf), 2 * nbytes((1, Hp), jnp.float32),
        nbytes((Hp, Vp), bf), nbytes((1, Vp), jnp.float32),
        nbytes((Hp, S), bf), nbytes((1, S), jnp.float32),
        nbytes((S, Op), bf), nbytes((1, Op), jnp.float32),
        nbytes((Bp, Op), jnp.float32), nbytes((Bp, T * Vp), bf),
        nbytes((T * Bp, 6 * Hp), jnp.float32), nbytes((T - 1, Bp, Hp), bf),
    ])
    vmem_limit = int(min(64 * 1024 * 1024, max(4 * 1024 * 1024, 2 * vmem_needed)))

    kernel = functools.partial(seq3seq_kernel, T=T, Bp=Bp, Hp=Hp, Vp=Vp)
    pred_p, out_bm = pl.pallas_call(
        kernel,
        out_shape=(
            jax.ShapeDtypeStruct((Bp, Op), jnp.float32),
            jax.ShapeDtypeStruct((Bp, T * Vp), bf),             # batch-major, lane-dense, bf16
        ),
        scratch_shapes=[
            pltpu.VMEM((T * Bp, 6 * Hp), jnp.float32),          # fused enc|dec input-gate preacts
            pltpu.VMEM((T - 1, Bp, Hp), bf),                    # decoder per-step hidden states
        ],
        compiler_params=pltpu.CompilerParams(vmem_limit_bytes=vmem_limit),
    )(x_emb, wih_c, bih_c,
      enc_whh_p, enc_bhn, dec_whh_p, dec_bhn,
      wout_p, bout_p, w1_p, b1, w2_p, b2_p)

    pred = pred_p[:B, :O]
    # Kernel output is already batch-major with the t=0 row zeroed: just reshape + slice.
    outputs = out_bm.reshape(Bp, T, Vp)[:B, :, :V].astype(jnp.float32)   # (B, T, V)
    # TODO(synk): stochastic teacher forcing (python random.random) and argmax/EOS feedback are
    # host-side control flow; this implements the teacher_forcing_ratio = 1.0 path.
    return pred, (x, outputs)


def init_params(key, vocab_size, emb_size, hidden, sup_hidden, output_size):
    """Weights in 'already transposed' layouts: Wih (E, 3H), Whh (H, 3H), biases (1, 3H);
    gate order r, z, n (PyTorch GRU convention). Master copies in f32 (bf16 cast at the kernel)."""
    ks = jax.random.split(key, 16)
    s = 1.0 / (hidden ** 0.5)

    def u(k, shape):
        return jax.random.uniform(k, shape, jnp.float32, -s, s)

    return {
        "embedding": (jax.random.normal(ks[0], (vocab_size, emb_size), jnp.float32) * 0.1
                      ).astype(jnp.bfloat16),
        # encoder GRU
        "enc_wih": u(ks[1], (emb_size, 3 * hidden)),
        "enc_whh": u(ks[2], (hidden, 3 * hidden)),
        "enc_bih": u(ks[3], (1, 3 * hidden)),
        "enc_bhh": u(ks[4], (1, 3 * hidden)),
        # decoder GRU + output projection to vocab
        "dec_wih": u(ks[5], (emb_size, 3 * hidden)),
        "dec_whh": u(ks[6], (hidden, 3 * hidden)),
        "dec_bih": u(ks[7], (1, 3 * hidden)),
        "dec_bhh": u(ks[8], (1, 3 * hidden)),
        "dec_wout": u(ks[9], (hidden, vocab_size)),
        "dec_bout": u(ks[10], (1, vocab_size)),
        # supervised head: FCLayer(hidden -> sup_hidden, ReLU) + Linear(sup_hidden -> output)
        "sup_w1": u(ks[11], (hidden, sup_hidden)),
        "sup_b1": u(ks[12], (1, sup_hidden)),
        "sup_w2": u(ks[13], (sup_hidden, output_size)),
        "sup_b2": u(ks[14], (1, output_size)),
    }


if __name__ == "__main__":
    VOCAB_SIZE = 16
    EMB_SIZE = 32
    HIDDEN = 32
    SUP_HIDDEN = 64
    OUTPUT_SIZE = 4
    B, T = 2, 8

    key = jax.random.PRNGKey(0)
    k_tok, k_par = jax.random.split(key)
    x = jax.random.randint(k_tok, (B, T), 0, VOCAB_SIZE, dtype=jnp.int32)
    params = init_params(k_par, VOCAB_SIZE, EMB_SIZE, HIDDEN, SUP_HIDDEN, OUTPUT_SIZE)

    fwd = jax.jit(seq3seq_forward)
    pred, (x_out, outputs) = fwd(x, params)
    jax.block_until_ready((pred, x_out, outputs))

    assert pred.shape == (B, OUTPUT_SIZE)
    assert x_out.shape == (B, T)
    assert outputs.shape == (B, T, VOCAB_SIZE)
    assert bool(jnp.all(outputs[:, 0, :] == 0.0))
    assert bool(jnp.all(jnp.isfinite(pred))) and bool(jnp.all(jnp.isfinite(outputs)))
    print("KERNEL_OK")
</pallas_src>

<mosaic_0001>
module attributes {stable_mosaic.version = 11 : i64} {
  func.func @seq3seq_kernel(%arg0: memref<64x32xbf16, #tpu.memory_space<vmem>>, %arg1: memref<32x768xbf16, #tpu.memory_space<vmem>>, %arg2: memref<1x768xf32, #tpu.memory_space<vmem>>, %arg3: memref<128x384xbf16, #tpu.memory_space<vmem>>, %arg4: memref<1x128xf32, #tpu.memory_space<vmem>>, %arg5: memref<128x384xbf16, #tpu.memory_space<vmem>>, %arg6: memref<1x128xf32, #tpu.memory_space<vmem>>, %arg7: memref<128x128xbf16, #tpu.memory_space<vmem>>, %arg8: memref<1x128xf32, #tpu.memory_space<vmem>>, %arg9: memref<128x64xbf16, #tpu.memory_space<vmem>>, %arg10: memref<1x64xf32, #tpu.memory_space<vmem>>, %arg11: memref<64x128xbf16, #tpu.memory_space<vmem>>, %arg12: memref<1x128xf32, #tpu.memory_space<vmem>>, %arg13: memref<8x128xf32, #tpu.memory_space<vmem>>, %arg14: memref<8x1024xbf16, #tpu.memory_space<vmem>>, %arg15: memref<64x768xf32, #tpu.memory_space<vmem>>, %arg16: memref<7x8x128xbf16, #tpu.memory_space<vmem>>) attributes {dimension_semantics = [], scalar_prefetch = 0 : i64, scratch_operands = 2 : i64, tpu.core_type = #tpu.core_type<tc>} {
    %c0 = arith.constant 0 : index
    %c0_0 = arith.constant 0 : index
    %0 = vector.load %arg0[%c0, %c0_0] : memref<64x32xbf16, #tpu.memory_space<vmem>>, vector<64x32xbf16>
    %c0_1 = arith.constant 0 : index
    %c0_2 = arith.constant 0 : index
    %1 = vector.load %arg1[%c0_1, %c0_2] : memref<32x768xbf16, #tpu.memory_space<vmem>>, vector<32x768xbf16>
    %cst = arith.constant dense<0.000000e+00> : vector<64x768xf32>
    %2 = tpu.matmul %0, %1, %cst {dimension_numbers = #tpu.dot_dimension_numbers<[1], [0], [0], [1], [0, 0, 1, 1], [], []>} : vector<64x32xbf16>, vector<32x768xbf16>, vector<64x768xf32> -> vector<64x768xf32>
    %c0_3 = arith.constant 0 : index
    %c0_4 = arith.constant 0 : index
    %3 = vector.load %arg2[%c0_3, %c0_4] : memref<1x768xf32, #tpu.memory_space<vmem>>, vector<1x768xf32>
    %4 = vector.broadcast %3 : vector<1x768xf32> to vector<64x768xf32>
    %5 = arith.addf %2, %4 : vector<64x768xf32>
    %c0_5 = arith.constant 0 : index
    %c0_6 = arith.constant 0 : index
    %6 = vector.load %arg15[%c0_5, %c0_6] : memref<64x768xf32, #tpu.memory_space<vmem>>, vector<64x768xf32>
    tpu.vector_store %arg15[%c0_5, %c0_6], %5 {strides = array<i32>} : memref<64x768xf32, #tpu.memory_space<vmem>>, vector<64x768xf32>,
    %c0_7 = arith.constant 0 : index
    %c0_8 = arith.constant 0 : index
    %7 = vector.load %arg3[%c0_7, %c0_8] : memref<128x384xbf16, #tpu.memory_space<vmem>>, vector<128x384xbf16>
    %c0_9 = arith.constant 0 : index
    %c0_10 = arith.constant 0 : index
    %8 = vector.load %arg5[%c0_9, %c0_10] : memref<128x384xbf16, #tpu.memory_space<vmem>>, vector<128x384xbf16>
    %c0_11 = arith.constant 0 : index
    %c0_12 = arith.constant 0 : index
    %9 = vector.load %arg4[%c0_11, %c0_12] : memref<1x128xf32, #tpu.memory_space<vmem>>, vector<1x128xf32>
    %10 = vector.shape_cast %9 : vector<1x128xf32> to vector<1x128xf32>
    %11 = vector.broadcast %10 : vector<1x128xf32> to vector<8x128xf32>
    %c0_13 = arith.constant 0 : index
    %c0_14 = arith.constant 0 : index
    %12 = vector.load %arg6[%c0_13, %c0_14] : memref<1x128xf32, #tpu.memory_space<vmem>>, vector<1x128xf32>
    %13 = vector.shape_cast %12 : vector<1x128xf32> to vector<1x128xf32>
    %14 = vector.broadcast %13 : vector<1x128xf32> to vector<8x128xf32>
    %cst_15 = arith.constant 0.000000e+00 : f32
    %15 = vector.broadcast %cst_15 : f32 to vector<8x128xf32>
    %c0_i32 = arith.constant 0 : i32
    %c8_i32 = arith.constant 8 : i32
    %16 = arith.muli %c0_i32, %c8_i32 : i32
    %17 = tpu.assume_multiple %16, 8 : i32
    %18 = arith.index_cast %17 : i32 to index
    %c0_16 = arith.constant 0 : index
    %19 = vector.load %arg15[%18, %c0_16] : memref<64x768xf32, #tpu.memory_space<vmem>>, vector<8x384xf32>
    %20 = arith.truncf %15 : vector<8x128xf32> to vector<8x128xbf16>
    %cst_17 = arith.constant dense<0.000000e+00> : vector<8x384xf32>
    %21 = tpu.matmul %20, %7, %cst_17 {dimension_numbers = #tpu.dot_dimension_numbers<[1], [0], [0], [1], [0, 0, 1, 1], [], []>} : vector<8x128xbf16>, vector<128x384xbf16>, vector<8x384xf32> -> vector<8x384xf32>
    %22 = vector.extract_strided_slice %19 {offsets = [0, 0], sizes = [8, 128], strides = [1, 1]} : vector<8x384xf32> to vector<8x128xf32>
    %23 = vector.extract_strided_slice %21 {offsets = [0, 0], sizes = [8, 128], strides = [1, 1]} : vector<8x384xf32> to vector<8x128xf32>
    %24 = arith.addf %22, %23 : vector<8x128xf32>
    %25 = arith.negf %24 : vector<8x128xf32>
    %26 = math.exp %25 : vector<8x128xf32>
    %cst_18 = arith.constant 1.000000e+00 : f32
    %27 = vector.broadcast %cst_18 : f32 to vector<8x128xf32>
    %28 = arith.addf %27, %26 : vector<8x128xf32>
    %29 = arith.divf %27, %28 : vector<8x128xf32>
    %30 = vector.extract_strided_slice %19 {offsets = [0, 128], sizes = [8, 128], strides = [1, 1]} : vector<8x384xf32> to vector<8x128xf32>
    %31 = vector.extract_strided_slice %21 {offsets = [0, 128], sizes = [8, 128], strides = [1, 1]} : vector<8x384xf32> to vector<8x128xf32>
    %32 = arith.addf %30, %31 : vector<8x128xf32>
    %33 = arith.negf %32 : vector<8x128xf32>
    %34 = math.exp %33 : vector<8x128xf32>
    %cst_19 = arith.constant 1.000000e+00 : f32
    %35 = vector.broadcast %cst_19 : f32 to vector<8x128xf32>
    %36 = arith.addf %35, %34 : vector<8x128xf32>
    %37 = arith.divf %35, %36 : vector<8x128xf32>
    %38 = vector.extract_strided_slice %19 {offsets = [0, 256], sizes = [8, 128], strides = [1, 1]} : vector<8x384xf32> to vector<8x128xf32>
    %39 = vector.extract_strided_slice %21 {offsets = [0, 256], sizes = [8, 128], strides = [1, 1]} : vector<8x384xf32> to vector<8x128xf32>
    %40 = arith.addf %39, %11 : vector<8x128xf32>
    %41 = arith.mulf %29, %40 : vector<8x128xf32>
    %42 = arith.addf %38, %41 : vector<8x128xf32>
    %43 = math.tanh %42 : vector<8x128xf32>
    %cst_20 = arith.constant 1.000000e+00 : f32
    %44 = vector.broadcast %cst_20 : f32 to vector<8x128xf32>
    %45 = arith.subf %44, %37 : vector<8x128xf32>
    %46 = arith.mulf %45, %43 : vector<8x128xf32>
    %47 = arith.mulf %37, %15 : vector<8x128xf32>
    %48 = arith.addf %46, %47 : vector<8x128xf32>
    %c1_i32 = arith.constant 1 : i32
    %c8_i32_21 = arith.constant 8 : i32
    %49 = arith.muli %c1_i32, %c8_i32_21 : i32
    %50 = tpu.assume_multiple %49, 8 : i32
    %51 = arith.index_cast %50 : i32 to index
    %c0_22 = arith.constant 0 : index
    %52 = vector.load %arg15[%51, %c0_22] : memref<64x768xf32, #tpu.memory_space<vmem>>, vector<8x384xf32>
    %53 = arith.truncf %48 : vector<8x128xf32> to vector<8x128xbf16>
    %cst_23 = arith.constant dense<0.000000e+00> : vector<8x384xf32>
    %54 = tpu.matmul %53, %7, %cst_23 {dimension_numbers = #tpu.dot_dimension_numbers<[1], [0], [0], [1], [0, 0, 1, 1], [], []>} : vector<8x128xbf16>, vector<128x384xbf16>, vector<8x384xf32> -> vector<8x384xf32>
    %55 = vector.extract_strided_slice %52 {offsets = [0, 0], sizes = [8, 128], strides = [1, 1]} : vector<8x384xf32> to vector<8x128xf32>
    %56 = vector.extract_strided_slice %54 {offsets = [0, 0], sizes = [8, 128], strides = [1, 1]} : vector<8x384xf32> to vector<8x128xf32>
    %57 = arith.addf %55, %56 : vector<8x128xf32>
    %58 = arith.negf %57 : vector<8x128xf32>
    %59 = math.exp %58 : vector<8x128xf32>
    %cst_24 = arith.constant 1.000000e+00 : f32
    %60 = vector.broadcast %cst_24 : f32 to vector<8x128xf32>
    %61 = arith.addf %60, %59 : vector<8x128xf32>
    %62 = arith.divf %60, %61 : vector<8x128xf32>
    %63 = vector.extract_strided_slice %52 {offsets = [0, 128], sizes = [8, 128], strides = [1, 1]} : vector<8x384xf32> to vector<8x128xf32>
    %64 = vector.extract_strided_slice %54 {offsets = [0, 128], sizes = [8, 128], strides = [1, 1]} : vector<8x384xf32> to vector<8x128xf32>
    %65 = arith.addf %63, %64 : vector<8x128xf32>
    %66 = arith.negf %65 : vector<8x128xf32>
    %67 = math.exp %66 : vector<8x128xf32>
    %cst_25 = arith.constant 1.000000e+00 : f32
    %68 = vector.broadcast %cst_25 : f32 to vector<8x128xf32>
    %69 = arith.addf %68, %67 : vector<8x128xf32>
    %70 = arith.divf %68, %69 : vector<8x128xf32>
    %71 = vector.extract_strided_slice %52 {offsets = [0, 256], sizes = [8, 128], strides = [1, 1]} : vector<8x384xf32> to vector<8x128xf32>
    %72 = vector.extract_strided_slice %54 {offsets = [0, 256], sizes = [8, 128], strides = [1, 1]} : vector<8x384xf32> to vector<8x128xf32>
    %73 = arith.addf %72, %11 : vector<8x128xf32>
    %74 = arith.mulf %62, %73 : vector<8x128xf32>
    %75 = arith.addf %71, %74 : vector<8x128xf32>
    %76 = math.tanh %75 : vector<8x128xf32>
    %cst_26 = arith.constant 1.000000e+00 : f32
    %77 = vector.broadcast %cst_26 : f32 to vector<8x128xf32>
    %78 = arith.subf %77, %70 : vector<8x128xf32>
    %79 = arith.mulf %78, %76 : vector<8x128xf32>
    %80 = arith.mulf %70, %48 : vector<8x128xf32>
    %81 = arith.addf %79, %80 : vector<8x128xf32>
    %c2_i32 = arith.constant 2 : i32
    %c8_i32_27 = arith.constant 8 : i32
    %82 = arith.muli %c2_i32, %c8_i32_27 : i32
    %83 = tpu.assume_multiple %82, 8 : i32
    %84 = arith.index_cast %83 : i32 to index
    %c0_28 = arith.constant 0 : index
    %85 = vector.load %arg15[%84, %c0_28] : memref<64x768xf32, #tpu.memory_space<vmem>>, vector<8x384xf32>
    %86 = arith.truncf %81 : vector<8x128xf32> to vector<8x128xbf16>
    %cst_29 = arith.constant dense<0.000000e+00> : vector<8x384xf32>
    %87 = tpu.matmul %86, %7, %cst_29 {dimension_numbers = #tpu.dot_dimension_numbers<[1], [0], [0], [1], [0, 0, 1, 1], [], []>} : vector<8x128xbf16>, vector<128x384xbf16>, vector<8x384xf32> -> vector<8x384xf32>
    %88 = vector.extract_strided_slice %85 {offsets = [0, 0], sizes = [8, 128], strides = [1, 1]} : vector<8x384xf32> to vector<8x128xf32>
    %89 = vector.extract_strided_slice %87 {offsets = [0, 0], sizes = [8, 128], strides = [1, 1]} : vector<8x384xf32> to vector<8x128xf32>
    %90 = arith.addf %88, %89 : vector<8x128xf32>
    %91 = arith.negf %90 : vector<8x128xf32>
    %92 = math.exp %91 : vector<8x128xf32>
    %cst_30 = arith.constant 1.000000e+00 : f32
    %93 = vector.broadcast %cst_30 : f32 to vector<8x128xf32>
    %94 = arith.addf %93, %92 : vector<8x128xf32>
    %95 = arith.divf %93, %94 : vector<8x128xf32>
    %96 = vector.extract_strided_slice %85 {offsets = [0, 128], sizes = [8, 128], strides = [1, 1]} : vector<8x384xf32> to vector<8x128xf32>
    %97 = vector.extract_strided_slice %87 {offsets = [0, 128], sizes = [8, 128], strides = [1, 1]} : vector<8x384xf32> to vector<8x128xf32>
    %98 = arith.addf %96, %97 : vector<8x128xf32>
    %99 = arith.negf %98 : vector<8x128xf32>
    %100 = math.exp %99 : vector<8x128xf32>
    %cst_31 = arith.constant 1.000000e+00 : f32
    %101 = vector.broadcast %cst_31 : f32 to vector<8x128xf32>
    %102 = arith.addf %101, %100 : vector<8x128xf32>
    %103 = arith.divf %101, %102 : vector<8x128xf32>
    %104 = vector.extract_strided_slice %85 {offsets = [0, 256], sizes = [8, 128], strides = [1, 1]} : vector<8x384xf32> to vector<8x128xf32>
    %105 = vector.extract_strided_slice %87 {offsets = [0, 256], sizes = [8, 128], strides = [1, 1]} : vector<8x384xf32> to vector<8x128xf32>
    %106 = arith.addf %105, %11 : vector<8x128xf32>
    %107 = arith.mulf %95, %106 : vector<8x128xf32>
    %108 = arith.addf %104, %107 : vector<8x128xf32>
    %109 = math.tanh %108 : vector<8x128xf32>
    %cst_32 = arith.constant 1.000000e+00 : f32
    %110 = vector.broadcast %cst_32 : f32 to vector<8x128xf32>
    %111 = arith.subf %110, %103 : vector<8x128xf32>
    %112 = arith.mulf %111, %109 : vector<8x128xf32>
    %113 = arith.mulf %103, %81 : vector<8x128xf32>
    %114 = arith.addf %112, %113 : vector<8x128xf32>
    %c3_i32 = arith.constant 3 : i32
    %c8_i32_33 = arith.constant 8 : i32
    %115 = arith.muli %c3_i32, %c8_i32_33 : i32
    %116 = tpu.assume_multiple %115, 8 : i32
    %117 = arith.index_cast %116 : i32 to index
    %c0_34 = arith.constant 0 : index
    %118 = vector.load %arg15[%117, %c0_34] : memref<64x768xf32, #tpu.memory_space<vmem>>, vector<8x384xf32>
    %119 = arith.truncf %114 : vector<8x128xf32> to vector<8x128xbf16>
    %cst_35 = arith.constant dense<0.000000e+00> : vector<8x384xf32>
    %120 = tpu.matmul %119, %7, %cst_35 {dimension_numbers = #tpu.dot_dimension_numbers<[1], [0], [0], [1], [0, 0, 1, 1], [], []>} : vector<8x128xbf16>, vector<128x384xbf16>, vector<8x384xf32> -> vector<8x384xf32>
    %121 = vector.extract_strided_slice %118 {offsets = [0, 0], sizes = [8, 128], strides = [1, 1]} : vector<8x384xf32> to vector<8x128xf32>
    %122 = vector.extract_strided_slice %120 {offsets = [0, 0], sizes = [8, 128], strides = [1, 1]} : vector<8x384xf32> to vector<8x128xf32>
    %123 = arith.addf %121, %122 : vector<8x128xf32>
    %124 = arith.negf %123 : vector<8x128xf32>
    %125 = math.exp %124 : vector<8x128xf32>
    %cst_36 = arith.constant 1.000000e+00 : f32
    %126 = vector.broadcast %cst_36 : f32 to vector<8x128xf32>
    %127 = arith.addf %126, %125 : vector<8x128xf32>
    %128 = arith.divf %126, %127 : vector<8x128xf32>
    %129 = vector.extract_strided_slice %118 {offsets = [0, 128], sizes = [8, 128], strides = [1, 1]} : vector<8x384xf32> to vector<8x128xf32>
    %130 = vector.extract_strided_slice %120 {offsets = [0, 128], sizes = [8, 128], strides = [1, 1]} : vector<8x384xf32> to vector<8x128xf32>
    %131 = arith.addf %129, %130 : vector<8x128xf32>
    %132 = arith.negf %131 : vector<8x128xf32>
    %133 = math.exp %132 : vector<8x128xf32>
    %cst_37 = arith.constant 1.000000e+00 : f32
    %134 = vector.broadcast %cst_37 : f32 to vector<8x128xf32>
    %135 = arith.addf %134, %133 : vector<8x128xf32>
    %136 = arith.divf %134, %135 : vector<8x128xf32>
    %137 = vector.extract_strided_slice %118 {offsets = [0, 256], sizes = [8, 128], strides = [1, 1]} : vector<8x384xf32> to vector<8x128xf32>
    %138 = vector.extract_strided_slice %120 {offsets = [0, 256], sizes = [8, 128], strides = [1, 1]} : vector<8x384xf32> to vector<8x128xf32>
    %139 = arith.addf %138, %11 : vector<8x128xf32>
    %140 = arith.mulf %128, %139 : vector<8x128xf32>
    %141 = arith.addf %137, %140 : vector<8x128xf32>
    %142 = math.tanh %141 : vector<8x128xf32>
    %cst_38 = arith.constant 1.000000e+00 : f32
    %143 = vector.broadcast %cst_38 : f32 to vector<8x128xf32>
    %144 = arith.subf %143, %136 : vector<8x128xf32>
    %145 = arith.mulf %144, %142 : vector<8x128xf32>
    %146 = arith.mulf %136, %114 : vector<8x128xf32>
    %147 = arith.addf %145, %146 : vector<8x128xf32>
    %c4_i32 = arith.constant 4 : i32
    %c8_i32_39 = arith.constant 8 : i32
    %148 = arith.muli %c4_i32, %c8_i32_39 : i32
    %149 = tpu.assume_multiple %148, 8 : i32
    %150 = arith.index_cast %149 : i32 to index
    %c0_40 = arith.constant 0 : index
    %151 = vector.load %arg15[%150, %c0_40] : memref<64x768xf32, #tpu.memory_space<vmem>>, vector<8x384xf32>
    %152 = arith.truncf %147 : vector<8x128xf32> to vector<8x128xbf16>
    %cst_41 = arith.constant dense<0.000000e+00> : vector<8x384xf32>
    %153 = tpu.matmul %152, %7, %cst_41 {dimension_numbers = #tpu.dot_dimension_numbers<[1], [0], [0], [1], [0, 0, 1, 1], [], []>} : vector<8x128xbf16>, vector<128x384xbf16>, vector<8x384xf32> -> vector<8x384xf32>
    %154 = vector.extract_strided_slice %151 {offsets = [0, 0], sizes = [8, 128], strides = [1, 1]} : vector<8x384xf32> to vector<8x128xf32>
    %155 = vector.extract_strided_slice %153 {offsets = [0, 0], sizes = [8, 128], strides = [1, 1]} : vector<8x384xf32> to vector<8x128xf32>
    %156 = arith.addf %154, %155 : vector<8x128xf32>
    %157 = arith.negf %156 : vector<8x128xf32>
    %158 = math.exp %157 : vector<8x128xf32>
    %cst_42 = arith.constant 1.000000e+00 : f32
    %159 = vector.broadcast %cst_42 : f32 to vector<8x128xf32>
    %160 = arith.addf %159, %158 : vector<8x128xf32>
    %161 = arith.divf %159, %160 : vector<8x128xf32>
    %162 = vector.extract_strided_slice %151 {offsets = [0, 128], sizes = [8, 128], strides = [1, 1]} : vector<8x384xf32> to vector<8x128xf32>
    %163 = vector.extract_strided_slice %153 {offsets = [0, 128], sizes = [8, 128], strides = [1, 1]} : vector<8x384xf32> to vector<8x128xf32>
    %164 = arith.addf %162, %163 : vector<8x128xf32>
    %165 = arith.negf %164 : vector<8x128xf32>
    %166 = math.exp %165 : vector<8x128xf32>
    %cst_43 = arith.constant 1.000000e+00 : f32
    %167 = vector.broadcast %cst_43 : f32 to vector<8x128xf32>
    %168 = arith.addf %167, %166 : vector<8x128xf32>
    %169 = arith.divf %167, %168 : vector<8x128xf32>
    %170 = vector.extract_strided_slice %151 {offsets = [0, 256], sizes = [8, 128], strides = [1, 1]} : vector<8x384xf32> to vector<8x128xf32>
    %171 = vector.extract_strided_slice %153 {offsets = [0, 256], sizes = [8, 128], strides = [1, 1]} : vector<8x384xf32> to vector<8x128xf32>
    %172 = arith.addf %171, %11 : vector<8x128xf32>
    %173 = arith.mulf %161, %172 : vector<8x128xf32>
    %174 = arith.addf %170, %173 : vector<8x128xf32>
    %175 = math.tanh %174 : vector<8x128xf32>
    %cst_44 = arith.constant 1.000000e+00 : f32
    %176 = vector.broadcast %cst_44 : f32 to vector<8x128xf32>
    %177 = arith.subf %176, %169 : vector<8x128xf32>
    %178 = arith.mulf %177, %175 : vector<8x128xf32>
    %179 = arith.mulf %169, %147 : vector<8x128xf32>
    %180 = arith.addf %178, %179 : vector<8x128xf32>
    %c5_i32 = arith.constant 5 : i32
    %c8_i32_45 = arith.constant 8 : i32
    %181 = arith.muli %c5_i32, %c8_i32_45 : i32
    %182 = tpu.assume_multiple %181, 8 : i32
    %183 = arith.index_cast %182 : i32 to index
    %c0_46 = arith.constant 0 : index
    %184 = vector.load %arg15[%183, %c0_46] : memref<64x768xf32, #tpu.memory_space<vmem>>, vector<8x384xf32>
    %185 = arith.truncf %180 : vector<8x128xf32> to vector<8x128xbf16>
    %cst_47 = arith.constant dense<0.000000e+00> : vector<8x384xf32>
    %186 = tpu.matmul %185, %7, %cst_47 {dimension_numbers = #tpu.dot_dimension_numbers<[1], [0], [0], [1], [0, 0, 1, 1], [], []>} : vector<8x128xbf16>, vector<128x384xbf16>, vector<8x384xf32> -> vector<8x384xf32>
    %187 = vector.extract_strided_slice %184 {offsets = [0, 0], sizes = [8, 128], strides = [1, 1]} : vector<8x384xf32> to vector<8x128xf32>
    %188 = vector.extract_strided_slice %186 {offsets = [0, 0], sizes = [8, 128], strides = [1, 1]} : vector<8x384xf32> to vector<8x128xf32>
    %189 = arith.addf %187, %188 : vector<8x128xf32>
    %190 = arith.negf %189 : vector<8x128xf32>
    %191 = math.exp %190 : vector<8x128xf32>
    %cst_48 = arith.constant 1.000000e+00 : f32
    %192 = vector.broadcast %cst_48 : f32 to vector<8x128xf32>
    %193 = arith.addf %192, %191 : vector<8x128xf32>
    %194 = arith.divf %192, %193 : vector<8x128xf32>
    %195 = vector.extract_strided_slice %184 {offsets = [0, 128], sizes = [8, 128], strides = [1, 1]} : vector<8x384xf32> to vector<8x128xf32>
    %196 = vector.extract_strided_slice %186 {offsets = [0, 128], sizes = [8, 128], strides = [1, 1]} : vector<8x384xf32> to vector<8x128xf32>
    %197 = arith.addf %195, %196 : vector<8x128xf32>
    %198 = arith.negf %197 : vector<8x128xf32>
    %199 = math.exp %198 : vector<8x128xf32>
    %cst_49 = arith.constant 1.000000e+00 : f32
    %200 = vector.broadcast %cst_49 : f32 to vector<8x128xf32>
    %201 = arith.addf %200, %199 : vector<8x128xf32>
    %202 = arith.divf %200, %201 : vector<8x128xf32>
    %203 = vector.extract_strided_slice %184 {offsets = [0, 256], sizes = [8, 128], strides = [1, 1]} : vector<8x384xf32> to vector<8x128xf32>
    %204 = vector.extract_strided_slice %186 {offsets = [0, 256], sizes = [8, 128], strides = [1, 1]} : vector<8x384xf32> to vector<8x128xf32>
    %205 = arith.addf %204, %11 : vector<8x128xf32>
    %206 = arith.mulf %194, %205 : vector<8x128xf32>
    %207 = arith.addf %203, %206 : vector<8x128xf32>
    %208 = math.tanh %207 : vector<8x128xf32>
    %cst_50 = arith.constant 1.000000e+00 : f32
    %209 = vector.broadcast %cst_50 : f32 to vector<8x128xf32>
    %210 = arith.subf %209, %202 : vector<8x128xf32>
    %211 = arith.mulf %210, %208 : vector<8x128xf32>
    %212 = arith.mulf %202, %180 : vector<8x128xf32>
    %213 = arith.addf %211, %212 : vector<8x128xf32>
    %c6_i32 = arith.constant 6 : i32
    %c8_i32_51 = arith.constant 8 : i32
    %214 = arith.muli %c6_i32, %c8_i32_51 : i32
    %215 = tpu.assume_multiple %214, 8 : i32
    %216 = arith.index_cast %215 : i32 to index
    %c0_52 = arith.constant 0 : index
    %217 = vector.load %arg15[%216, %c0_52] : memref<64x768xf32, #tpu.memory_space<vmem>>, vector<8x384xf32>
    %218 = arith.truncf %213 : vector<8x128xf32> to vector<8x128xbf16>
    %cst_53 = arith.constant dense<0.000000e+00> : vector<8x384xf32>
    %219 = tpu.matmul %218, %7, %cst_53 {dimension_numbers = #tpu.dot_dimension_numbers<[1], [0], [0], [1], [0, 0, 1, 1], [], []>} : vector<8x128xbf16>, vector<128x384xbf16>, vector<8x384xf32> -> vector<8x384xf32>
    %220 = vector.extract_strided_slice %217 {offsets = [0, 0], sizes = [8, 128], strides = [1, 1]} : vector<8x384xf32> to vector<8x128xf32>
    %221 = vector.extract_strided_slice %219 {offsets = [0, 0], sizes = [8, 128], strides = [1, 1]} : vector<8x384xf32> to vector<8x128xf32>
    %222 = arith.addf %220, %221 : vector<8x128xf32>
    %223 = arith.negf %222 : vector<8x128xf32>
    %224 = math.exp %223 : vector<8x128xf32>
    %cst_54 = arith.constant 1.000000e+00 : f32
    %225 = vector.broadcast %cst_54 : f32 to vector<8x128xf32>
    %226 = arith.addf %225, %224 : vector<8x128xf32>
    %227 = arith.divf %225, %226 : vector<8x128xf32>
    %228 = vector.extract_strided_slice %217 {offsets = [0, 128], sizes = [8, 128], strides = [1, 1]} : vector<8x384xf32> to vector<8x128xf32>
    %229 = vector.extract_strided_slice %219 {offsets = [0, 128], sizes = [8, 128], strides = [1, 1]} : vector<8x384xf32> to vector<8x128xf32>
    %230 = arith.addf %228, %229 : vector<8x128xf32>
    %231 = arith.negf %230 : vector<8x128xf32>
    %232 = math.exp %231 : vector<8x128xf32>
    %cst_55 = arith.constant 1.000000e+00 : f32
    %233 = vector.broadcast %cst_55 : f32 to vector<8x128xf32>
    %234 = arith.addf %233, %232 : vector<8x128xf32>
    %235 = arith.divf %233, %234 : vector<8x128xf32>
    %236 = vector.extract_strided_slice %217 {offsets = [0, 256], sizes = [8, 128], strides = [1, 1]} : vector<8x384xf32> to vector<8x128xf32>
    %237 = vector.extract_strided_slice %219 {offsets = [0, 256], sizes = [8, 128], strides = [1, 1]} : vector<8x384xf32> to vector<8x128xf32>
    %238 = arith.addf %237, %11 : vector<8x128xf32>
    %239 = arith.mulf %227, %238 : vector<8x128xf32>
    %240 = arith.addf %236, %239 : vector<8x128xf32>
    %241 = math.tanh %240 : vector<8x128xf32>
    %cst_56 = arith.constant 1.000000e+00 : f32
    %242 = vector.broadcast %cst_56 : f32 to vector<8x128xf32>
    %243 = arith.subf %242, %235 : vector<8x128xf32>
    %244 = arith.mulf %243, %241 : vector<8x128xf32>
    %245 = arith.mulf %235, %213 : vector<8x128xf32>
    %246 = arith.addf %244, %245 : vector<8x128xf32>
    %c7_i32 = arith.constant 7 : i32
    %c8_i32_57 = arith.constant 8 : i32
    %247 = arith.muli %c7_i32, %c8_i32_57 : i32
    %248 = tpu.assume_multiple %247, 8 : i32
    %249 = arith.index_cast %248 : i32 to index
    %c0_58 = arith.constant 0 : index
    %250 = vector.load %arg15[%249, %c0_58] : memref<64x768xf32, #tpu.memory_space<vmem>>, vector<8x384xf32>
    %251 = arith.truncf %246 : vector<8x128xf32> to vector<8x128xbf16>
    %cst_59 = arith.constant dense<0.000000e+00> : vector<8x384xf32>
    %252 = tpu.matmul %251, %7, %cst_59 {dimension_numbers = #tpu.dot_dimension_numbers<[1], [0], [0], [1], [0, 0, 1, 1], [], []>} : vector<8x128xbf16>, vector<128x384xbf16>, vector<8x384xf32> -> vector<8x384xf32>
    %253 = vector.extract_strided_slice %250 {offsets = [0, 0], sizes = [8, 128], strides = [1, 1]} : vector<8x384xf32> to vector<8x128xf32>
    %254 = vector.extract_strided_slice %252 {offsets = [0, 0], sizes = [8, 128], strides = [1, 1]} : vector<8x384xf32> to vector<8x128xf32>
    %255 = arith.addf %253, %254 : vector<8x128xf32>
    %256 = arith.negf %255 : vector<8x128xf32>
    %257 = math.exp %256 : vector<8x128xf32>
    %cst_60 = arith.constant 1.000000e+00 : f32
    %258 = vector.broadcast %cst_60 : f32 to vector<8x128xf32>
    %259 = arith.addf %258, %257 : vector<8x128xf32>
    %260 = arith.divf %258, %259 : vector<8x128xf32>
    %261 = vector.extract_strided_slice %250 {offsets = [0, 128], sizes = [8, 128], strides = [1, 1]} : vector<8x384xf32> to vector<8x128xf32>
    %262 = vector.extract_strided_slice %252 {offsets = [0, 128], sizes = [8, 128], strides = [1, 1]} : vector<8x384xf32> to vector<8x128xf32>
    %263 = arith.addf %261, %262 : vector<8x128xf32>
    %264 = arith.negf %263 : vector<8x128xf32>
    %265 = math.exp %264 : vector<8x128xf32>
    %cst_61 = arith.constant 1.000000e+00 : f32
    %266 = vector.broadcast %cst_61 : f32 to vector<8x128xf32>
    %267 = arith.addf %266, %265 : vector<8x128xf32>
    %268 = arith.divf %266, %267 : vector<8x128xf32>
    %269 = vector.extract_strided_slice %250 {offsets = [0, 256], sizes = [8, 128], strides = [1, 1]} : vector<8x384xf32> to vector<8x128xf32>
    %270 = vector.extract_strided_slice %252 {offsets = [0, 256], sizes = [8, 128], strides = [1, 1]} : vector<8x384xf32> to vector<8x128xf32>
    %271 = arith.addf %270, %11 : vector<8x128xf32>
    %272 = arith.mulf %260, %271 : vector<8x128xf32>
    %273 = arith.addf %269, %272 : vector<8x128xf32>
    %274 = math.tanh %273 : vector<8x128xf32>
    %cst_62 = arith.constant 1.000000e+00 : f32
    %275 = vector.broadcast %cst_62 : f32 to vector<8x128xf32>
    %276 = arith.subf %275, %268 : vector<8x128xf32>
    %277 = arith.mulf %276, %274 : vector<8x128xf32>
    %278 = arith.mulf %268, %246 : vector<8x128xf32>
    %279 = arith.addf %277, %278 : vector<8x128xf32>
    %c8_i32_63 = arith.constant 8 : i32
    %280 = arith.truncf %279 : vector<8x128xf32> to vector<8x128xbf16>
    %c0_64 = arith.constant 0 : index
    %c0_65 = arith.constant 0 : index
    %281 = vector.load %arg9[%c0_64, %c0_65] : memref<128x64xbf16, #tpu.memory_space<vmem>>, vector<128x64xbf16>
    %cst_66 = arith.constant dense<0.000000e+00> : vector<8x64xf32>
    %282 = tpu.matmul %280, %281, %cst_66 {dimension_numbers = #tpu.dot_dimension_numbers<[1], [0], [0], [1], [0, 0, 1, 1], [], []>} : vector<8x128xbf16>, vector<128x64xbf16>, vector<8x64xf32> -> vector<8x64xf32>
    %c0_67 = arith.constant 0 : index
    %c0_68 = arith.constant 0 : index
    %283 = vector.load %arg10[%c0_67, %c0_68] : memref<1x64xf32, #tpu.memory_space<vmem>>, vector<1x64xf32>
    %284 = vector.broadcast %283 : vector<1x64xf32> to vector<8x64xf32>
    %285 = arith.addf %282, %284 : vector<8x64xf32>
    %cst_69 = arith.constant 0.000000e+00 : f32
    %286 = vector.broadcast %cst_69 : f32 to vector<8x64xf32>
    %287 = arith.maximumf %285, %286 : vector<8x64xf32>
    %288 = arith.truncf %287 : vector<8x64xf32> to vector<8x64xbf16>
    %c0_70 = arith.constant 0 : index
    %c0_71 = arith.constant 0 : index
    %289 = vector.load %arg11[%c0_70, %c0_71] : memref<64x128xbf16, #tpu.memory_space<vmem>>, vector<64x128xbf16>
    %cst_72 = arith.constant dense<0.000000e+00> : vector<8x128xf32>
    %290 = tpu.matmul %288, %289, %cst_72 {dimension_numbers = #tpu.dot_dimension_numbers<[1], [0], [0], [1], [0, 0, 1, 1], [], []>} : vector<8x64xbf16>, vector<64x128xbf16>, vector<8x128xf32> -> vector<8x128xf32>
    %c0_73 = arith.constant 0 : index
    %c0_74 = arith.constant 0 : index
    %291 = vector.load %arg12[%c0_73, %c0_74] : memref<1x128xf32, #tpu.memory_space<vmem>>, vector<1x128xf32>
    %292 = vector.broadcast %291 : vector<1x128xf32> to vector<8x128xf32>
    %293 = arith.addf %290, %292 : vector<8x128xf32>
    %c0_75 = arith.constant 0 : index
    %c0_76 = arith.constant 0 : index
    %294 = vector.load %arg13[%c0_75, %c0_76] : memref<8x128xf32, #tpu.memory_space<vmem>>, vector<8x128xf32>
    tpu.vector_store %arg13[%c0_75, %c0_76], %293 {strides = array<i32>} : memref<8x128xf32, #tpu.memory_space<vmem>>, vector<8x128xf32>,
    %c0_i32_77 = arith.constant 0 : i32
    %c8_i32_78 = arith.constant 8 : i32
    %295 = arith.muli %c0_i32_77, %c8_i32_78 : i32
    %296 = tpu.assume_multiple %295, 8 : i32
    %297 = arith.index_cast %296 : i32 to index
    %c384 = arith.constant 384 : index
    %298 = vector.load %arg15[%297, %c384] : memref<64x768xf32, #tpu.memory_space<vmem>>, vector<8x384xf32>
    %299 = arith.truncf %279 : vector<8x128xf32> to vector<8x128xbf16>
    %cst_79 = arith.constant dense<0.000000e+00> : vector<8x384xf32>
    %300 = tpu.matmul %299, %8, %cst_79 {dimension_numbers = #tpu.dot_dimension_numbers<[1], [0], [0], [1], [0, 0, 1, 1], [], []>} : vector<8x128xbf16>, vector<128x384xbf16>, vector<8x384xf32> -> vector<8x384xf32>
    %301 = vector.extract_strided_slice %298 {offsets = [0, 0], sizes = [8, 128], strides = [1, 1]} : vector<8x384xf32> to vector<8x128xf32>
    %302 = vector.extract_strided_slice %300 {offsets = [0, 0], sizes = [8, 128], strides = [1, 1]} : vector<8x384xf32> to vector<8x128xf32>
    %303 = arith.addf %301, %302 : vector<8x128xf32>
    %304 = arith.negf %303 : vector<8x128xf32>
    %305 = math.exp %304 : vector<8x128xf32>
    %cst_80 = arith.constant 1.000000e+00 : f32
    %306 = vector.broadcast %cst_80 : f32 to vector<8x128xf32>
    %307 = arith.addf %306, %305 : vector<8x128xf32>
    %308 = arith.divf %306, %307 : vector<8x128xf32>
    %309 = vector.extract_strided_slice %298 {offsets = [0, 128], sizes = [8, 128], strides = [1, 1]} : vector<8x384xf32> to vector<8x128xf32>
    %310 = vector.extract_strided_slice %300 {offsets = [0, 128], sizes = [8, 128], strides = [1, 1]} : vector<8x384xf32> to vector<8x128xf32>
    %311 = arith.addf %309, %310 : vector<8x128xf32>
    %312 = arith.negf %311 : vector<8x128xf32>
    %313 = math.exp %312 : vector<8x128xf32>
    %cst_81 = arith.constant 1.000000e+00 : f32
    %314 = vector.broadcast %cst_81 : f32 to vector<8x128xf32>
    %315 = arith.addf %314, %313 : vector<8x128xf32>
    %316 = arith.divf %314, %315 : vector<8x128xf32>
    %317 = vector.extract_strided_slice %298 {offsets = [0, 256], sizes = [8, 128], strides = [1, 1]} : vector<8x384xf32> to vector<8x128xf32>
    %318 = vector.extract_strided_slice %300 {offsets = [0, 256], sizes = [8, 128], strides = [1, 1]} : vector<8x384xf32> to vector<8x128xf32>
    %319 = arith.addf %318, %14 : vector<8x128xf32>
    %320 = arith.mulf %308, %319 : vector<8x128xf32>
    %321 = arith.addf %317, %320 : vector<8x128xf32>
    %322 = math.tanh %321 : vector<8x128xf32>
    %cst_82 = arith.constant 1.000000e+00 : f32
    %323 = vector.broadcast %cst_82 : f32 to vector<8x128xf32>
    %324 = arith.subf %323, %316 : vector<8x128xf32>
    %325 = arith.mulf %324, %322 : vector<8x128xf32>
    %326 = arith.mulf %316, %279 : vector<8x128xf32>
    %327 = arith.addf %325, %326 : vector<8x128xf32>
    %328 = arith.truncf %327 : vector<8x128xf32> to vector<8x128xbf16>
    %329 = arith.index_cast %c0_i32_77 : i32 to index
    %c0_83 = arith.constant 0 : index
    %c0_84 = arith.constant 0 : index
    %330 = vector.load %arg16[%329, %c0_83, %c0_84] : memref<7x8x128xbf16, #tpu.memory_space<vmem>>, vector<1x8x128xbf16>
    %331 = vector.shape_cast %330 : vector<1x8x128xbf16> to vector<8x128xbf16>
    %332 = vector.shape_cast %328 : vector<8x128xbf16> to vector<1x8x128xbf16>
    tpu.vector_store %arg16[%329, %c0_83, %c0_84], %332 {strides = array<i32>} : memref<7x8x128xbf16, #tpu.memory_space<vmem>>, vector<1x8x128xbf16>,
    %c1_i32_85 = arith.constant 1 : i32
    %c8_i32_86 = arith.constant 8 : i32
    %333 = arith.muli %c1_i32_85, %c8_i32_86 : i32
    %334 = tpu.assume_multiple %333, 8 : i32
    %335 = arith.index_cast %334 : i32 to index
    %c384_87 = arith.constant 384 : index
    %336 = vector.load %arg15[%335, %c384_87] : memref<64x768xf32, #tpu.memory_space<vmem>>, vector<8x384xf32>
    %337 = arith.truncf %327 : vector<8x128xf32> to vector<8x128xbf16>
    %cst_88 = arith.constant dense<0.000000e+00> : vector<8x384xf32>
    %338 = tpu.matmul %337, %8, %cst_88 {dimension_numbers = #tpu.dot_dimension_numbers<[1], [0], [0], [1], [0, 0, 1, 1], [], []>} : vector<8x128xbf16>, vector<128x384xbf16>, vector<8x384xf32> -> vector<8x384xf32>
    %339 = vector.extract_strided_slice %336 {offsets = [0, 0], sizes = [8, 128], strides = [1, 1]} : vector<8x384xf32> to vector<8x128xf32>
    %340 = vector.extract_strided_slice %338 {offsets = [0, 0], sizes = [8, 128], strides = [1, 1]} : vector<8x384xf32> to vector<8x128xf32>
    %341 = arith.addf %339, %340 : vector<8x128xf32>
    %342 = arith.negf %341 : vector<8x128xf32>
    %343 = math.exp %342 : vector<8x128xf32>
    %cst_89 = arith.constant 1.000000e+00 : f32
    %344 = vector.broadcast %cst_89 : f32 to vector<8x128xf32>
    %345 = arith.addf %344, %343 : vector<8x128xf32>
    %346 = arith.divf %344, %345 : vector<8x128xf32>
    %347 = vector.extract_strided_slice %336 {offsets = [0, 128], sizes = [8, 128], strides = [1, 1]} : vector<8x384xf32> to vector<8x128xf32>
    %348 = vector.extract_strided_slice %338 {offsets = [0, 128], sizes = [8, 128], strides = [1, 1]} : vector<8x384xf32> to vector<8x128xf32>
    %349 = arith.addf %347, %348 : vector<8x128xf32>
    %350 = arith.negf %349 : vector<8x128xf32>
    %351 = math.exp %350 : vector<8x128xf32>
    %cst_90 = arith.constant 1.000000e+00 : f32
    %352 = vector.broadcast %cst_90 : f32 to vector<8x128xf32>
    %353 = arith.addf %352, %351 : vector<8x128xf32>
    %354 = arith.divf %352, %353 : vector<8x128xf32>
    %355 = vector.extract_strided_slice %336 {offsets = [0, 256], sizes = [8, 128], strides = [1, 1]} : vector<8x384xf32> to vector<8x128xf32>
    %356 = vector.extract_strided_slice %338 {offsets = [0, 256], sizes = [8, 128], strides = [1, 1]} : vector<8x384xf32> to vector<8x128xf32>
    %357 = arith.addf %356, %14 : vector<8x128xf32>
    %358 = arith.mulf %346, %357 : vector<8x128xf32>
    %359 = arith.addf %355, %358 : vector<8x128xf32>
    %360 = math.tanh %359 : vector<8x128xf32>
    %cst_91 = arith.constant 1.000000e+00 : f32
    %361 = vector.broadcast %cst_91 : f32 to vector<8x128xf32>
    %362 = arith.subf %361, %354 : vector<8x128xf32>
    %363 = arith.mulf %362, %360 : vector<8x128xf32>
    %364 = arith.mulf %354, %327 : vector<8x128xf32>
    %365 = arith.addf %363, %364 : vector<8x128xf32>
    %366 = arith.truncf %365 : vector<8x128xf32> to vector<8x128xbf16>
    %367 = arith.index_cast %c1_i32_85 : i32 to index
    %c0_92 = arith.constant 0 : index
    %c0_93 = arith.constant 0 : index
    %368 = vector.load %arg16[%367, %c0_92, %c0_93] : memref<7x8x128xbf16, #tpu.memory_space<vmem>>, vector<1x8x128xbf16>
    %369 = vector.shape_cast %368 : vector<1x8x128xbf16> to vector<8x128xbf16>
    %370 = vector.shape_cast %366 : vector<8x128xbf16> to vector<1x8x128xbf16>
    tpu.vector_store %arg16[%367, %c0_92, %c0_93], %370 {strides = array<i32>} : memref<7x8x128xbf16, #tpu.memory_space<vmem>>, vector<1x8x128xbf16>,
    %c2_i32_94 = arith.constant 2 : i32
    %c8_i32_95 = arith.constant 8 : i32
    %371 = arith.muli %c2_i32_94, %c8_i32_95 : i32
    %372 = tpu.assume_multiple %371, 8 : i32
    %373 = arith.index_cast %372 : i32 to index
    %c384_96 = arith.constant 384 : index
    %374 = vector.load %arg15[%373, %c384_96] : memref<64x768xf32, #tpu.memory_space<vmem>>, vector<8x384xf32>
    %375 = arith.truncf %365 : vector<8x128xf32> to vector<8x128xbf16>
    %cst_97 = arith.constant dense<0.000000e+00> : vector<8x384xf32>
    %376 = tpu.matmul %375, %8, %cst_97 {dimension_numbers = #tpu.dot_dimension_numbers<[1], [0], [0], [1], [0, 0, 1, 1], [], []>} : vector<8x128xbf16>, vector<128x384xbf16>, vector<8x384xf32> -> vector<8x384xf32>
    %377 = vector.extract_strided_slice %374 {offsets = [0, 0], sizes = [8, 128], strides = [1, 1]} : vector<8x384xf32> to vector<8x128xf32>
    %378 = vector.extract_strided_slice %376 {offsets = [0, 0], sizes = [8, 128], strides = [1, 1]} : vector<8x384xf32> to vector<8x128xf32>
    %379 = arith.addf %377, %378 : vector<8x128xf32>
    %380 = arith.negf %379 : vector<8x128xf32>
    %381 = math.exp %380 : vector<8x128xf32>
    %cst_98 = arith.constant 1.000000e+00 : f32
    %382 = vector.broadcast %cst_98 : f32 to vector<8x128xf32>
    %383 = arith.addf %382, %381 : vector<8x128xf32>
    %384 = arith.divf %382, %383 : vector<8x128xf32>
    %385 = vector.extract_strided_slice %374 {offsets = [0, 128], sizes = [8, 128], strides = [1, 1]} : vector<8x384xf32> to vector<8x128xf32>
    %386 = vector.extract_strided_slice %376 {offsets = [0, 128], sizes = [8, 128], strides = [1, 1]} : vector<8x384xf32> to vector<8x128xf32>
    %387 = arith.addf %385, %386 : vector<8x128xf32>
    %388 = arith.negf %387 : vector<8x128xf32>
    %389 = math.exp %388 : vector<8x128xf32>
    %cst_99 = arith.constant 1.000000e+00 : f32
    %390 = vector.broadcast %cst_99 : f32 to vector<8x128xf32>
    %391 = arith.addf %390, %389 : vector<8x128xf32>
    %392 = arith.divf %390, %391 : vector<8x128xf32>
    %393 = vector.extract_strided_slice %374 {offsets = [0, 256], sizes = [8, 128], strides = [1, 1]} : vector<8x384xf32> to vector<8x128xf32>
    %394 = vector.extract_strided_slice %376 {offsets = [0, 256], sizes = [8, 128], strides = [1, 1]} : vector<8x384xf32> to vector<8x128xf32>
    %395 = arith.addf %394, %14 : vector<8x128xf32>
    %396 = arith.mulf %384, %395 : vector<8x128xf32>
    %397 = arith.addf %393, %396 : vector<8x128xf32>
    %398 = math.tanh %397 : vector<8x128xf32>
    %cst_100 = arith.constant 1.000000e+00 : f32
    %399 = vector.broadcast %cst_100 : f32 to vector<8x128xf32>
    %400 = arith.subf %399, %392 : vector<8x128xf32>
    %401 = arith.mulf %400, %398 : vector<8x128xf32>
    %402 = arith.mulf %392, %365 : vector<8x128xf32>
    %403 = arith.addf %401, %402 : vector<8x128xf32>
    %404 = arith.truncf %403 : vector<8x128xf32> to vector<8x128xbf16>
    %405 = arith.index_cast %c2_i32_94 : i32 to index
    %c0_101 = arith.constant 0 : index
    %c0_102 = arith.constant 0 : index
    %406 = vector.load %arg16[%405, %c0_101, %c0_102] : memref<7x8x128xbf16, #tpu.memory_space<vmem>>, vector<1x8x128xbf16>
    %407 = vector.shape_cast %406 : vector<1x8x128xbf16> to vector<8x128xbf16>
    %408 = vector.shape_cast %404 : vector<8x128xbf16> to vector<1x8x128xbf16>
    tpu.vector_store %arg16[%405, %c0_101, %c0_102], %408 {strides = array<i32>} : memref<7x8x128xbf16, #tpu.memory_space<vmem>>, vector<1x8x128xbf16>,
    %c3_i32_103 = arith.constant 3 : i32
    %c8_i32_104 = arith.constant 8 : i32
    %409 = arith.muli %c3_i32_103, %c8_i32_104 : i32
    %410 = tpu.assume_multiple %409, 8 : i32
    %411 = arith.index_cast %410 : i32 to index
    %c384_105 = arith.constant 384 : index
    %412 = vector.load %arg15[%411, %c384_105] : memref<64x768xf32, #tpu.memory_space<vmem>>, vector<8x384xf32>
    %413 = arith.truncf %403 : vector<8x128xf32> to vector<8x128xbf16>
    %cst_106 = arith.constant dense<0.000000e+00> : vector<8x384xf32>
    %414 = tpu.matmul %413, %8, %cst_106 {dimension_numbers = #tpu.dot_dimension_numbers<[1], [0], [0], [1], [0, 0, 1, 1], [], []>} : vector<8x128xbf16>, vector<128x384xbf16>, vector<8x384xf32> -> vector<8x384xf32>
    %415 = vector.extract_strided_slice %412 {offsets = [0, 0], sizes = [8, 128], strides = [1, 1]} : vector<8x384xf32> to vector<8x128xf32>
    %416 = vector.extract_strided_slice %414 {offsets = [0, 0], sizes = [8, 128], strides = [1, 1]} : vector<8x384xf32> to vector<8x128xf32>
    %417 = arith.addf %415, %416 : vector<8x128xf32>
    %418 = arith.negf %417 : vector<8x128xf32>
    %419 = math.exp %418 : vector<8x128xf32>
    %cst_107 = arith.constant 1.000000e+00 : f32
    %420 = vector.broadcast %cst_107 : f32 to vector<8x128xf32>
    %421 = arith.addf %420, %419 : vector<8x128xf32>
    %422 = arith.divf %420, %421 : vector<8x128xf32>
    %423 = vector.extract_strided_slice %412 {offsets = [0, 128], sizes = [8, 128], strides = [1, 1]} : vector<8x384xf32> to vector<8x128xf32>
    %424 = vector.extract_strided_slice %414 {offsets = [0, 128], sizes = [8, 128], strides = [1, 1]} : vector<8x384xf32> to vector<8x128xf32>
    %425 = arith.addf %423, %424 : vector<8x128xf32>
    %426 = arith.negf %425 : vector<8x128xf32>
    %427 = math.exp %426 : vector<8x128xf32>
    %cst_108 = arith.constant 1.000000e+00 : f32
    %428 = vector.broadcast %cst_108 : f32 to vector<8x128xf32>
    %429 = arith.addf %428, %427 : vector<8x128xf32>
    %430 = arith.divf %428, %429 : vector<8x128xf32>
    %431 = vector.extract_strided_slice %412 {offsets = [0, 256], sizes = [8, 128], strides = [1, 1]} : vector<8x384xf32> to vector<8x128xf32>
    %432 = vector.extract_strided_slice %414 {offsets = [0, 256], sizes = [8, 128], strides = [1, 1]} : vector<8x384xf32> to vector<8x128xf32>
    %433 = arith.addf %432, %14 : vector<8x128xf32>
    %434 = arith.mulf %422, %433 : vector<8x128xf32>
    %435 = arith.addf %431, %434 : vector<8x128xf32>
    %436 = math.tanh %435 : vector<8x128xf32>
    %cst_109 = arith.constant 1.000000e+00 : f32
    %437 = vector.broadcast %cst_109 : f32 to vector<8x128xf32>
    %438 = arith.subf %437, %430 : vector<8x128xf32>
    %439 = arith.mulf %438, %436 : vector<8x128xf32>
    %440 = arith.mulf %430, %403 : vector<8x128xf32>
    %441 = arith.addf %439, %440 : vector<8x128xf32>
    %442 = arith.truncf %441 : vector<8x128xf32> to vector<8x128xbf16>
    %443 = arith.index_cast %c3_i32_103 : i32 to index
    %c0_110 = arith.constant 0 : index
    %c0_111 = arith.constant 0 : index
    %444 = vector.load %arg16[%443, %c0_110, %c0_111] : memref<7x8x128xbf16, #tpu.memory_space<vmem>>, vector<1x8x128xbf16>
    %445 = vector.shape_cast %444 : vector<1x8x128xbf16> to vector<8x128xbf16>
    %446 = vector.shape_cast %442 : vector<8x128xbf16> to vector<1x8x128xbf16>
    tpu.vector_store %arg16[%443, %c0_110, %c0_111], %446 {strides = array<i32>} : memref<7x8x128xbf16, #tpu.memory_space<vmem>>, vector<1x8x128xbf16>,
    %c4_i32_112 = arith.constant 4 : i32
    %c8_i32_113 = arith.constant 8 : i32
    %447 = arith.muli %c4_i32_112, %c8_i32_113 : i32
    %448 = tpu.assume_multiple %447, 8 : i32
    %449 = arith.index_cast %448 : i32 to index
    %c384_114 = arith.constant 384 : index
    %450 = vector.load %arg15[%449, %c384_114] : memref<64x768xf32, #tpu.memory_space<vmem>>, vector<8x384xf32>
    %451 = arith.truncf %441 : vector<8x128xf32> to vector<8x128xbf16>
    %cst_115 = arith.constant dense<0.000000e+00> : vector<8x384xf32>
    %452 = tpu.matmul %451, %8, %cst_115 {dimension_numbers = #tpu.dot_dimension_numbers<[1], [0], [0], [1], [0, 0, 1, 1], [], []>} : vector<8x128xbf16>, vector<128x384xbf16>, vector<8x384xf32> -> vector<8x384xf32>
    %453 = vector.extract_strided_slice %450 {offsets = [0, 0], sizes = [8, 128], strides = [1, 1]} : vector<8x384xf32> to vector<8x128xf32>
    %454 = vector.extract_strided_slice %452 {offsets = [0, 0], sizes = [8, 128], strides = [1, 1]} : vector<8x384xf32> to vector<8x128xf32>
    %455 = arith.addf %453, %454 : vector<8x128xf32>
    %456 = arith.negf %455 : vector<8x128xf32>
    %457 = math.exp %456 : vector<8x128xf32>
    %cst_116 = arith.constant 1.000000e+00 : f32
    %458 = vector.broadcast %cst_116 : f32 to vector<8x128xf32>
    %459 = arith.addf %458, %457 : vector<8x128xf32>
    %460 = arith.divf %458, %459 : vector<8x128xf32>
    %461 = vector.extract_strided_slice %450 {offsets = [0, 128], sizes = [8, 128], strides = [1, 1]} : vector<8x384xf32> to vector<8x128xf32>
    %462 = vector.extract_strided_slice %452 {offsets = [0, 128], sizes = [8, 128], strides = [1, 1]} : vector<8x384xf32> to vector<8x128xf32>
    %463 = arith.addf %461, %462 : vector<8x128xf32>
    %464 = arith.negf %463 : vector<8x128xf32>
    %465 = math.exp %464 : vector<8x128xf32>
    %cst_117 = arith.constant 1.000000e+00 : f32
    %466 = vector.broadcast %cst_117 : f32 to vector<8x128xf32>
    %467 = arith.addf %466, %465 : vector<8x128xf32>
    %468 = arith.divf %466, %467 : vector<8x128xf32>
    %469 = vector.extract_strided_slice %450 {offsets = [0, 256], sizes = [8, 128], strides = [1, 1]} : vector<8x384xf32> to vector<8x128xf32>
    %470 = vector.extract_strided_slice %452 {offsets = [0, 256], sizes = [8, 128], strides = [1, 1]} : vector<8x384xf32> to vector<8x128xf32>
    %471 = arith.addf %470, %14 : vector<8x128xf32>
    %472 = arith.mulf %460, %471 : vector<8x128xf32>
    %473 = arith.addf %469, %472 : vector<8x128xf32>
    %474 = math.tanh %473 : vector<8x128xf32>
    %cst_118 = arith.constant 1.000000e+00 : f32
    %475 = vector.broadcast %cst_118 : f32 to vector<8x128xf32>
    %476 = arith.subf %475, %468 : vector<8x128xf32>
    %477 = arith.mulf %476, %474 : vector<8x128xf32>
    %478 = arith.mulf %468, %441 : vector<8x128xf32>
    %479 = arith.addf %477, %478 : vector<8x128xf32>
    %480 = arith.truncf %479 : vector<8x128xf32> to vector<8x128xbf16>
    %481 = arith.index_cast %c4_i32_112 : i32 to index
    %c0_119 = arith.constant 0 : index
    %c0_120 = arith.constant 0 : index
    %482 = vector.load %arg16[%481, %c0_119, %c0_120] : memref<7x8x128xbf16, #tpu.memory_space<vmem>>, vector<1x8x128xbf16>
    %483 = vector.shape_cast %482 : vector<1x8x128xbf16> to vector<8x128xbf16>
    %484 = vector.shape_cast %480 : vector<8x128xbf16> to vector<1x8x128xbf16>
    tpu.vector_store %arg16[%481, %c0_119, %c0_120], %484 {strides = array<i32>} : memref<7x8x128xbf16, #tpu.memory_space<vmem>>, vector<1x8x128xbf16>,
    %c5_i32_121 = arith.constant 5 : i32
    %c8_i32_122 = arith.constant 8 : i32
    %485 = arith.muli %c5_i32_121, %c8_i32_122 : i32
    %486 = tpu.assume_multiple %485, 8 : i32
    %487 = arith.index_cast %486 : i32 to index
    %c384_123 = arith.constant 384 : index
    %488 = vector.load %arg15[%487, %c384_123] : memref<64x768xf32, #tpu.memory_space<vmem>>, vector<8x384xf32>
    %489 = arith.truncf %479 : vector<8x128xf32> to vector<8x128xbf16>
    %cst_124 = arith.constant dense<0.000000e+00> : vector<8x384xf32>
    %490 = tpu.matmul %489, %8, %cst_124 {dimension_numbers = #tpu.dot_dimension_numbers<[1], [0], [0], [1], [0, 0, 1, 1], [], []>} : vector<8x128xbf16>, vector<128x384xbf16>, vector<8x384xf32> -> vector<8x384xf32>
    %491 = vector.extract_strided_slice %488 {offsets = [0, 0], sizes = [8, 128], strides = [1, 1]} : vector<8x384xf32> to vector<8x128xf32>
    %492 = vector.extract_strided_slice %490 {offsets = [0, 0], sizes = [8, 128], strides = [1, 1]} : vector<8x384xf32> to vector<8x128xf32>
    %493 = arith.addf %491, %492 : vector<8x128xf32>
    %494 = arith.negf %493 : vector<8x128xf32>
    %495 = math.exp %494 : vector<8x128xf32>
    %cst_125 = arith.constant 1.000000e+00 : f32
    %496 = vector.broadcast %cst_125 : f32 to vector<8x128xf32>
    %497 = arith.addf %496, %495 : vector<8x128xf32>
    %498 = arith.divf %496, %497 : vector<8x128xf32>
    %499 = vector.extract_strided_slice %488 {offsets = [0, 128], sizes = [8, 128], strides = [1, 1]} : vector<8x384xf32> to vector<8x128xf32>
    %500 = vector.extract_strided_slice %490 {offsets = [0, 128], sizes = [8, 128], strides = [1, 1]} : vector<8x384xf32> to vector<8x128xf32>
    %501 = arith.addf %499, %500 : vector<8x128xf32>
    %502 = arith.negf %501 : vector<8x128xf32>
    %503 = math.exp %502 : vector<8x128xf32>
    %cst_126 = arith.constant 1.000000e+00 : f32
    %504 = vector.broadcast %cst_126 : f32 to vector<8x128xf32>
    %505 = arith.addf %504, %503 : vector<8x128xf32>
    %506 = arith.divf %504, %505 : vector<8x128xf32>
    %507 = vector.extract_strided_slice %488 {offsets = [0, 256], sizes = [8, 128], strides = [1, 1]} : vector<8x384xf32> to vector<8x128xf32>
    %508 = vector.extract_strided_slice %490 {offsets = [0, 256], sizes = [8, 128], strides = [1, 1]} : vector<8x384xf32> to vector<8x128xf32>
    %509 = arith.addf %508, %14 : vector<8x128xf32>
    %510 = arith.mulf %498, %509 : vector<8x128xf32>
    %511 = arith.addf %507, %510 : vector<8x128xf32>
    %512 = math.tanh %511 : vector<8x128xf32>
    %cst_127 = arith.constant 1.000000e+00 : f32
    %513 = vector.broadcast %cst_127 : f32 to vector<8x128xf32>
    %514 = arith.subf %513, %506 : vector<8x128xf32>
    %515 = arith.mulf %514, %512 : vector<8x128xf32>
    %516 = arith.mulf %506, %479 : vector<8x128xf32>
    %517 = arith.addf %515, %516 : vector<8x128xf32>
    %518 = arith.truncf %517 : vector<8x128xf32> to vector<8x128xbf16>
    %519 = arith.index_cast %c5_i32_121 : i32 to index
    %c0_128 = arith.constant 0 : index
    %c0_129 = arith.constant 0 : index
    %520 = vector.load %arg16[%519, %c0_128, %c0_129] : memref<7x8x128xbf16, #tpu.memory_space<vmem>>, vector<1x8x128xbf16>
    %521 = vector.shape_cast %520 : vector<1x8x128xbf16> to vector<8x128xbf16>
    %522 = vector.shape_cast %518 : vector<8x128xbf16> to vector<1x8x128xbf16>
    tpu.vector_store %arg16[%519, %c0_128, %c0_129], %522 {strides = array<i32>} : memref<7x8x128xbf16, #tpu.memory_space<vmem>>, vector<1x8x128xbf16>,
    %c6_i32_130 = arith.constant 6 : i32
    %c8_i32_131 = arith.constant 8 : i32
    %523 = arith.muli %c6_i32_130, %c8_i32_131 : i32
    %524 = tpu.assume_multiple %523, 8 : i32
    %525 = arith.index_cast %524 : i32 to index
    %c384_132 = arith.constant 384 : index
    %526 = vector.load %arg15[%525, %c384_132] : memref<64x768xf32, #tpu.memory_space<vmem>>, vector<8x384xf32>
    %527 = arith.truncf %517 : vector<8x128xf32> to vector<8x128xbf16>
    %cst_133 = arith.constant dense<0.000000e+00> : vector<8x384xf32>
    %528 = tpu.matmul %527, %8, %cst_133 {dimension_numbers = #tpu.dot_dimension_numbers<[1], [0], [0], [1], [0, 0, 1, 1], [], []>} : vector<8x128xbf16>, vector<128x384xbf16>, vector<8x384xf32> -> vector<8x384xf32>
    %529 = vector.extract_strided_slice %526 {offsets = [0, 0], sizes = [8, 128], strides = [1, 1]} : vector<8x384xf32> to vector<8x128xf32>
    %530 = vector.extract_strided_slice %528 {offsets = [0, 0], sizes = [8, 128], strides = [1, 1]} : vector<8x384xf32> to vector<8x128xf32>
    %531 = arith.addf %529, %530 : vector<8x128xf32>
    %532 = arith.negf %531 : vector<8x128xf32>
    %533 = math.exp %532 : vector<8x128xf32>
    %cst_134 = arith.constant 1.000000e+00 : f32
    %534 = vector.broadcast %cst_134 : f32 to vector<8x128xf32>
    %535 = arith.addf %534, %533 : vector<8x128xf32>
    %536 = arith.divf %534, %535 : vector<8x128xf32>
    %537 = vector.extract_strided_slice %526 {offsets = [0, 128], sizes = [8, 128], strides = [1, 1]} : vector<8x384xf32> to vector<8x128xf32>
    %538 = vector.extract_strided_slice %528 {offsets = [0, 128], sizes = [8, 128], strides = [1, 1]} : vector<8x384xf32> to vector<8x128xf32>
    %539 = arith.addf %537, %538 : vector<8x128xf32>
    %540 = arith.negf %539 : vector<8x128xf32>
    %541 = math.exp %540 : vector<8x128xf32>
    %cst_135 = arith.constant 1.000000e+00 : f32
    %542 = vector.broadcast %cst_135 : f32 to vector<8x128xf32>
    %543 = arith.addf %542, %541 : vector<8x128xf32>
    %544 = arith.divf %542, %543 : vector<8x128xf32>
    %545 = vector.extract_strided_slice %526 {offsets = [0, 256], sizes = [8, 128], strides = [1, 1]} : vector<8x384xf32> to vector<8x128xf32>
    %546 = vector.extract_strided_slice %528 {offsets = [0, 256], sizes = [8, 128], strides = [1, 1]} : vector<8x384xf32> to vector<8x128xf32>
    %547 = arith.addf %546, %14 : vector<8x128xf32>
    %548 = arith.mulf %536, %547 : vector<8x128xf32>
    %549 = arith.addf %545, %548 : vector<8x128xf32>
    %550 = math.tanh %549 : vector<8x128xf32>
    %cst_136 = arith.constant 1.000000e+00 : f32
    %551 = vector.broadcast %cst_136 : f32 to vector<8x128xf32>
    %552 = arith.subf %551, %544 : vector<8x128xf32>
    %553 = arith.mulf %552, %550 : vector<8x128xf32>
    %554 = arith.mulf %544, %517 : vector<8x128xf32>
    %555 = arith.addf %553, %554 : vector<8x128xf32>
    %556 = arith.truncf %555 : vector<8x128xf32> to vector<8x128xbf16>
    %557 = arith.index_cast %c6_i32_130 : i32 to index
    %c0_137 = arith.constant 0 : index
    %c0_138 = arith.constant 0 : index
    %558 = vector.load %arg16[%557, %c0_137, %c0_138] : memref<7x8x128xbf16, #tpu.memory_space<vmem>>, vector<1x8x128xbf16>
    %559 = vector.shape_cast %558 : vector<1x8x128xbf16> to vector<8x128xbf16>
    %560 = vector.shape_cast %556 : vector<8x128xbf16> to vector<1x8x128xbf16>
    tpu.vector_store %arg16[%557, %c0_137, %c0_138], %560 {strides = array<i32>} : memref<7x8x128xbf16, #tpu.memory_space<vmem>>, vector<1x8x128xbf16>,
    %c7_i32_139 = arith.constant 7 : i32
    %c0_140 = arith.constant 0 : index
    %c0_141 = arith.constant 0 : index
    %561 = vector.load %arg7[%c0_140, %c0_141] : memref<128x128xbf16, #tpu.memory_space<vmem>>, vector<128x128xbf16>
    %c0_142 = arith.constant 0 : index
    %c0_143 = arith.constant 0 : index
    %562 = vector.load %arg8[%c0_142, %c0_143] : memref<1x128xf32, #tpu.memory_space<vmem>>, vector<1x128xf32>
    %cst_144 = arith.constant 0.000000e+00 : bf16
    %563 = vector.broadcast %cst_144 : bf16 to vector<8x128xbf16>
    %c0_145 = arith.constant 0 : index
    %c0_146 = arith.constant 0 : index
    %564 = vector.load %arg14[%c0_145, %c0_146] : memref<8x1024xbf16, #tpu.memory_space<vmem>>, vector<8x128xbf16>
    tpu.vector_store %arg14[%c0_145, %c0_146], %563 {strides = array<i32>} : memref<8x1024xbf16, #tpu.memory_space<vmem>>, vector<8x128xbf16>,
    %c0_147 = arith.constant 0 : index
    %c0_148 = arith.constant 0 : index
    %c0_149 = arith.constant 0 : index
    %565 = vector.load %arg16[%c0_147, %c0_148, %c0_149] : memref<7x8x128xbf16, #tpu.memory_space<vmem>>, vector<1x8x128xbf16>
    %566 = vector.shape_cast %565 : vector<1x8x128xbf16> to vector<8x128xbf16>
    %cst_150 = arith.constant dense<0.000000e+00> : vector<8x128xf32>
    %567 = tpu.matmul %566, %561, %cst_150 {dimension_numbers = #tpu.dot_dimension_numbers<[1], [0], [0], [1], [0, 0, 1, 1], [], []>} : vector<8x128xbf16>, vector<128x128xbf16>, vector<8x128xf32> -> vector<8x128xf32>
    %568 = vector.broadcast %562 : vector<1x128xf32> to vector<8x128xf32>
    %569 = arith.addf %567, %568 : vector<8x128xf32>
    %570 = arith.truncf %569 : vector<8x128xf32> to vector<8x128xbf16>
    %c0_151 = arith.constant 0 : index
    %c128 = arith.constant 128 : index
    %571 = vector.load %arg14[%c0_151, %c128] : memref<8x1024xbf16, #tpu.memory_space<vmem>>, vector<8x128xbf16>
    tpu.vector_store %arg14[%c0_151, %c128], %570 {strides = array<i32>} : memref<8x1024xbf16, #tpu.memory_space<vmem>>, vector<8x128xbf16>,
    %c1 = arith.constant 1 : index
    %c0_152 = arith.constant 0 : index
    %c0_153 = arith.constant 0 : index
    %572 = vector.load %arg16[%c1, %c0_152, %c0_153] : memref<7x8x128xbf16, #tpu.memory_space<vmem>>, vector<1x8x128xbf16>
    %573 = vector.shape_cast %572 : vector<1x8x128xbf16> to vector<8x128xbf16>
    %cst_154 = arith.constant dense<0.000000e+00> : vector<8x128xf32>
    %574 = tpu.matmul %573, %561, %cst_154 {dimension_numbers = #tpu.dot_dimension_numbers<[1], [0], [0], [1], [0, 0, 1, 1], [], []>} : vector<8x128xbf16>, vector<128x128xbf16>, vector<8x128xf32> -> vector<8x128xf32>
    %575 = vector.broadcast %562 : vector<1x128xf32> to vector<8x128xf32>
    %576 = arith.addf %574, %575 : vector<8x128xf32>
    %577 = arith.truncf %576 : vector<8x128xf32> to vector<8x128xbf16>
    %c0_155 = arith.constant 0 : index
    %c256 = arith.constant 256 : index
    %578 = vector.load %arg14[%c0_155, %c256] : memref<8x1024xbf16, #tpu.memory_space<vmem>>, vector<8x128xbf16>
    tpu.vector_store %arg14[%c0_155, %c256], %577 {strides = array<i32>} : memref<8x1024xbf16, #tpu.memory_space<vmem>>, vector<8x128xbf16>,
    %c2 = arith.constant 2 : index
    %c0_156 = arith.constant 0 : index
    %c0_157 = arith.constant 0 : index
    %579 = vector.load %arg16[%c2, %c0_156, %c0_157] : memref<7x8x128xbf16, #tpu.memory_space<vmem>>, vector<1x8x128xbf16>
    %580 = vector.shape_cast %579 : vector<1x8x128xbf16> to vector<8x128xbf16>
    %cst_158 = arith.constant dense<0.000000e+00> : vector<8x128xf32>
    %581 = tpu.matmul %580, %561, %cst_158 {dimension_numbers = #tpu.dot_dimension_numbers<[1], [0], [0], [1], [0, 0, 1, 1], [], []>} : vector<8x128xbf16>, vector<128x128xbf16>, vector<8x128xf32> -> vector<8x128xf32>
    %582 = vector.broadcast %562 : vector<1x128xf32> to vector<8x128xf32>
    %583 = arith.addf %581, %582 : vector<8x128xf32>
    %584 = arith.truncf %583 : vector<8x128xf32> to vector<8x128xbf16>
    %c0_159 = arith.constant 0 : index
    %c384_160 = arith.constant 384 : index
    %585 = vector.load %arg14[%c0_159, %c384_160] : memref<8x1024xbf16, #tpu.memory_space<vmem>>, vector<8x128xbf16>
    tpu.vector_store %arg14[%c0_159, %c384_160], %584 {strides = array<i32>} : memref<8x1024xbf16, #tpu.memory_space<vmem>>, vector<8x128xbf16>,
    %c3 = arith.constant 3 : index
    %c0_161 = arith.constant 0 : index
    %c0_162 = arith.constant 0 : index
    %586 = vector.load %arg16[%c3, %c0_161, %c0_162] : memref<7x8x128xbf16, #tpu.memory_space<vmem>>, vector<1x8x128xbf16>
    %587 = vector.shape_cast %586 : vector<1x8x128xbf16> to vector<8x128xbf16>
    %cst_163 = arith.constant dense<0.000000e+00> : vector<8x128xf32>
    %588 = tpu.matmul %587, %561, %cst_163 {dimension_numbers = #tpu.dot_dimension_numbers<[1], [0], [0], [1], [0, 0, 1, 1], [], []>} : vector<8x128xbf16>, vector<128x128xbf16>, vector<8x128xf32> -> vector<8x128xf32>
    %589 = vector.broadcast %562 : vector<1x128xf32> to vector<8x128xf32>
    %590 = arith.addf %588, %589 : vector<8x128xf32>
    %591 = arith.truncf %590 : vector<8x128xf32> to vector<8x128xbf16>
    %c0_164 = arith.constant 0 : index
    %c512 = arith.constant 512 : index
    %592 = vector.load %arg14[%c0_164, %c512] : memref<8x1024xbf16, #tpu.memory_space<vmem>>, vector<8x128xbf16>
    tpu.vector_store %arg14[%c0_164, %c512], %591 {strides = array<i32>} : memref<8x1024xbf16, #tpu.memory_space<vmem>>, vector<8x128xbf16>,
    %c4 = arith.constant 4 : index
    %c0_165 = arith.constant 0 : index
    %c0_166 = arith.constant 0 : index
    %593 = vector.load %arg16[%c4, %c0_165, %c0_166] : memref<7x8x128xbf16, #tpu.memory_space<vmem>>, vector<1x8x128xbf16>
    %594 = vector.shape_cast %593 : vector<1x8x128xbf16> to vector<8x128xbf16>
    %cst_167 = arith.constant dense<0.000000e+00> : vector<8x128xf32>
    %595 = tpu.matmul %594, %561, %cst_167 {dimension_numbers = #tpu.dot_dimension_numbers<[1], [0], [0], [1], [0, 0, 1, 1], [], []>} : vector<8x128xbf16>, vector<128x128xbf16>, vector<8x128xf32> -> vector<8x128xf32>
    %596 = vector.broadcast %562 : vector<1x128xf32> to vector<8x128xf32>
    %597 = arith.addf %595, %596 : vector<8x128xf32>
    %598 = arith.truncf %597 : vector<8x128xf32> to vector<8x128xbf16>
    %c0_168 = arith.constant 0 : index
    %c640 = arith.constant 640 : index
    %599 = vector.load %arg14[%c0_168, %c640] : memref<8x1024xbf16, #tpu.memory_space<vmem>>, vector<8x128xbf16>
    tpu.vector_store %arg14[%c0_168, %c640], %598 {strides = array<i32>} : memref<8x1024xbf16, #tpu.memory_space<vmem>>, vector<8x128xbf16>,
    %c5 = arith.constant 5 : index
    %c0_169 = arith.constant 0 : index
    %c0_170 = arith.constant 0 : index
    %600 = vector.load %arg16[%c5, %c0_169, %c0_170] : memref<7x8x128xbf16, #tpu.memory_space<vmem>>, vector<1x8x128xbf16>
    %601 = vector.shape_cast %600 : vector<1x8x128xbf16> to vector<8x128xbf16>
    %cst_171 = arith.constant dense<0.000000e+00> : vector<8x128xf32>
    %602 = tpu.matmul %601, %561, %cst_171 {dimension_numbers = #tpu.dot_dimension_numbers<[1], [0], [0], [1], [0, 0, 1, 1], [], []>} : vector<8x128xbf16>, vector<128x128xbf16>, vector<8x128xf32> -> vector<8x128xf32>
    %603 = vector.broadcast %562 : vector<1x128xf32> to vector<8x128xf32>
    %604 = arith.addf %602, %603 : vector<8x128xf32>
    %605 = arith.truncf %604 : vector<8x128xf32> to vector<8x128xbf16>
    %c0_172 = arith.constant 0 : index
    %c768 = arith.constant 768 : index
    %606 = vector.load %arg14[%c0_172, %c768] : memref<8x1024xbf16, #tpu.memory_space<vmem>>, vector<8x128xbf16>
    tpu.vector_store %arg14[%c0_172, %c768], %605 {strides = array<i32>} : memref<8x1024xbf16, #tpu.memory_space<vmem>>, vector<8x128xbf16>,
    %c6 = arith.constant 6 : index
    %c0_173 = arith.constant 0 : index
    %c0_174 = arith.constant 0 : index
    %607 = vector.load %arg16[%c6, %c0_173, %c0_174] : memref<7x8x128xbf16, #tpu.memory_space<vmem>>, vector<1x8x128xbf16>
    %608 = vector.shape_cast %607 : vector<1x8x128xbf16> to vector<8x128xbf16>
    %cst_175 = arith.constant dense<0.000000e+00> : vector<8x128xf32>
    %609 = tpu.matmul %608, %561, %cst_175 {dimension_numbers = #tpu.dot_dimension_numbers<[1], [0], [0], [1], [0, 0, 1, 1], [], []>} : vector<8x128xbf16>, vector<128x128xbf16>, vector<8x128xf32> -> vector<8x128xf32>
    %610 = vector.broadcast %562 : vector<1x128xf32> to vector<8x128xf32>
    %611 = arith.addf %609, %610 : vector<8x128xf32>
    %612 = arith.truncf %611 : vector<8x128xf32> to vector<8x128xbf16>
    %c0_176 = arith.constant 0 : index
    %c896 = arith.constant 896 : index
    %613 = vector.load %arg14[%c0_176, %c896] : memref<8x1024xbf16, #tpu.memory_space<vmem>>, vector<8x128xbf16>
    tpu.vector_store %arg14[%c0_176, %c896], %612 {strides = array<i32>} : memref<8x1024xbf16, #tpu.memory_space<vmem>>, vector<8x128xbf16>,
    return
  }
}

</mosaic_0001>

<bundles_post_ra>
// kernel: seq3seq_forward.1
= control target key start
LH: loop header
LB: loop body
LE: loop exit
PB: predicated region body
PF: predicated region fallthrough
CT: control target
= control target key end

     0   :  { %v5714_v1 = vmov 0   ;;  %vm179_vm0 = vcmask 261120   ;;  %v5716_v25 = vmov 0.0   ;;  %vm4123_vm1 = vmmov 0   ;;  %s5699_s1 = inlined_call_operand.vmem [shape: bf16[32,768], index: 1, kind: input, shape index: {}]   ;;  %s5700_s0 = inlined_call_operand.vmem [shape: bf16[64,32], index: 0, kind: input, shape index: {}]   ;;  %s5701_s3 = inlined_call_operand.vmem [shape: bf16[128,384], index: 3, kind: input, shape index: {}]   ;;  %s5702_s2 = inlined_call_operand.vmem [shape: f32[1,768], index: 2, kind: input, shape index: {}]   ;;  %s5703_s4 = inlined_call_operand.vmem [shape: f32[1,128], index: 4, kind: input, shape index: {}]   ;;  %s5704_s9 = inlined_call_operand.vmem [shape: bf16[128,64], index: 9, kind: input, shape index: {}]   ;;  %s5705_s5 = inlined_call_operand.vmem [shape: bf16[128,384], index: 5, kind: input, shape index: {}]   ;;  %s5706_s11 = inlined_call_operand.vmem [shape: bf16[64,128], index: 11, kind: input, shape index: {}]   ;;  %s5707_s10 = inlined_call_operand.vmem [shape: f32[1,64], index: 10, kind: input, shape index: {}]   ;;  %s5708_s12 = inlined_call_operand.vmem [shape: f32[1,128], index: 12, kind: input, shape index: {}]   ;;  %s5709_s13 = inlined_call_operand.vmem [shape: f32[8,128], index: 13, kind: output, shape index: {0}]   ;;  %s5710_s6 = inlined_call_operand.vmem [shape: f32[1,128], index: 6, kind: input, shape index: {}]   ;;  %s5711_s7 = inlined_call_operand.vmem [shape: bf16[128,128], index: 7, kind: input, shape index: {}]   ;;  %s5712_s14 = inlined_call_operand.vmem [shape: bf16[8,1024], index: 14, kind: output, shape index: {1}]   ;;  %s5713_s8 = inlined_call_operand.vmem [shape: f32[1,128], index: 8, kind: input, shape index: {}]  }
   0x1   :  { %v3839_v0 = vld [vmem:[%s5699_s1 + $0x34] ss:$24 sps:$4 sm:$0xff]   ;;  %224 = vmatprep.mubr.bf16.mxu0 %v5714_v1  ;;  %297 = vmatprep.mubr.bf16.mxu1 %v5714_v1  ;;  %v3843_v3 = vld [vmem:[%s5699_s1 + $0x30] ss:$24 sps:$4 sm:$0xff]   ;;  %v3845_v5 = vld [vmem:[%s5699_s1 + $0x4] ss:$24 sps:$4 sm:$0xff]   ;;  %v69_v42 = vlaneseq }
   0x2   :  { %v3841_v2 = vld [vmem:[%s5699_s1 + $0x3c] ss:$24 sps:$4 sm:$0xff]   ;;  %204 = vmatprep.subr.bf16.mxu0 %v3839_v0  ;;  %v3844_v4 = vld [vmem:[%s5699_s1 + $0x38] ss:$24 sps:$4 sm:$0xff]   ;;  %v3847_v6 = vld [vmem:[%s5699_s1 + $0xc] ss:$24 sps:$4 sm:$0xff]  }
   0x3   :  { %277 = vmatprep.subr.bf16.mxu1 %v3841_v2  ;;  %205 = vmatpush1.bf16.msra.mxu0 %v3843_v3  ;;  %v3849_v7 = vld [vmem:[%s5699_s1] ss:$24 sps:$4 sm:$0xff]   ;;  %v3854_v11 = vld [vmem:[%s5699_s1 + $0x44] ss:$24 sps:$4 sm:$0xff]   ;;  %v4244_v13 = vld [vmem:[%s5701_s3 + $0xa8] ss:$12 sps:$4 sm:$0xff]  }
   0x4   :  { %278 = vmatpush1.bf16.msra.mxu1 %v3844_v4  ;;  %206 = vmatprep.subr.bf16.mxu0 %v3845_v5  ;;  %v3850_v8 = vld [vmem:[%s5699_s1 + $0x8] ss:$24 sps:$4 sm:$0xff]   ;;  %v4239_v12 = vld [vmem:[%s5701_s3 + $0xac] ss:$12 sps:$4 sm:$0xff]   ;;  %v4260_v15 = vld [vmem:[%s5701_s3 + $0x90] ss:$12 sps:$4 sm:$0xff]  }
   0x5   :  { %279 = vmatprep.subr.bf16.mxu1 %v3847_v6  ;;  %v4228_v9 = vld [vmem:[%s5700_s0] sm:$0xff]   ;;  %v4267_v16 = vld [vmem:[%s5701_s3 + $0x7c] ss:$12 sps:$4 sm:$0xff]   ;;  %v3871_v19 = vld [vmem:[%s5699_s1 + $0x14] ss:$24 sps:$4 sm:$0xff]   ;;  %v4470_v43 = vshrl.u32 %v69_v42, 7 }
   0x6   :  { %v3852_v10 = vld [vmem:[%s5699_s1 + $0x40] ss:$24 sps:$4 sm:$0xff]   ;;  %v3861_v17 = vld [vmem:[%s5700_s0 + $0x8] sm:$0xff]   ;;  %v4286_v20 = vld [vmem:[%s5701_s3 + $0x64] ss:$12 sps:$4 sm:$0xff]   ;;  %vm1697_vm2 = vcmask 523264  }
   0x7   :  { %207 = vmatpush1.bf16.msra.mxu0 %v3849_v7  ;;  %v4249_v14 = vld [vmem:[%s5701_s3 + $0x94] ss:$12 sps:$4 sm:$0xff]   ;;  %v4276_v18 = vld [vmem:[%s5701_s3 + $0x78] ss:$12 sps:$4 sm:$0xff]   ;;  %v3869_v21 = vld [vmem:[%s5699_s1 + $0x10] ss:$24 sps:$4 sm:$0xff]  }
   0x8   :  { %280 = vmatpush1.bf16.msra.mxu1 %v3850_v8  ;;  %350 = vmatprep.subr.bf16.mxu0 %v3854_v11  ;;  %v4297_v22 = vld [vmem:[%s5701_s3 + $0x60] ss:$12 sps:$4 sm:$0xff]   ;;  %v3868_v24 = vld [vmem:[%s5700_s0 + $0x10] sm:$0xff]   ;;  %v4337_v29 = vld [vmem:[%s5701_s3 + $0x1c] ss:$12 sps:$4 sm:$0xff]   ;;  %v71_v44 = vsub.s32 0, %v4470_v43 }
   0x9   :  { %671 = vmatprep.subr.bf16.mxu1 %v4239_v12  ;;  %v4305_v23 = vld [vmem:[%s5701_s3 + $0x4c] ss:$12 sps:$4 sm:$0xff]   ;;  %v4315_v26 = vld [vmem:[%s5701_s3 + $0x48] ss:$12 sps:$4 sm:$0xff]   ;;  %v4329_v28 = vld [vmem:[%s5701_s3 + $0x30] ss:$12 sps:$4 sm:$0xff]  }
   0xa   :  { %3036 = vmatmul.mubr.msk.bf16.vlgmr.msra.gmra.mxu0 %vm179_vm0, %v4228_v9  ;;  %v4321_v27 = vld [vmem:[%s5701_s3 + $0x34] ss:$12 sps:$4 sm:$0xff]   ;;  %v3878_v30 = vld [vmem:[%s5700_s0 + $0x18] sm:$0xff]   ;;  %v4352_v32 = vld [vmem:[%s5701_s3 + $0x4] ss:$12 sps:$4 sm:$0xff]   ;;  %v79_v45 = vsub.s32 2, %v4470_v43 }
   0xb   :  { %3040 = vmatmul.mubr.msk.bf16.vlgmr.msra.gmra.mxu1 %vm179_vm0, %v4228_v9  ;;  %351 = vmatpush1.bf16.msra.mxu0 %v3852_v10  ;;  %v4346_v31 = vld [vmem:[%s5701_s3 + $0x18] ss:$12 sps:$4 sm:$0xff]   ;;  %v4360_v33 = vld [vmem:[%s5701_s3] ss:$12 sps:$4 sm:$0xff]   ;;  %v4369_v34 = vld [vmem:[%s5701_s3 + $0xb0] ss:$12 sps:$4 sm:$0xff]  }
   0xc   :  { %672 = vmatpush1.bf16.msra.mxu1 %v4244_v13  ;;  %234 = vmatprep.mubr.bf16.mxu0 %v5714_v1  ;;  %v4379_v35 = vld [vmem:[%s5701_s3 + $0x98] ss:$12 sps:$4 sm:$0xff]   ;;  %v4390_v36 = vld [vmem:[%s5701_s3 + $0x80] ss:$12 sps:$4 sm:$0xff]   ;;  %v4400_v37 = vld [vmem:[%s5701_s3 + $0x68] ss:$12 sps:$4 sm:$0xff]  }
   0xd   :  { %673 = vmatprep.subr.bf16.mxu1 %v4249_v14  ;;  %307 = vmatprep.mubr.bf16.mxu1 %v5714_v1  ;;  %v4410_v38 = vld [vmem:[%s5701_s3 + $0x50] ss:$12 sps:$4 sm:$0xff]   ;;  %v4420_v39 = vld [vmem:[%s5701_s3 + $0x38] ss:$12 sps:$4 sm:$0xff]   ;;  %v4430_v40 = vld [vmem:[%s5701_s3 + $0x20] ss:$12 sps:$4 sm:$0xff]  }
   0xe   :  { %352 = vmatprep.subr.bf16.mxu0 %v3871_v19  ;;  %v4440_v41 = vld [vmem:[%s5701_s3 + $0x8] ss:$12 sps:$4 sm:$0xff]   ;;  %v4477_v46 = vld [vmem:[%s5702_s2] sm:$0x3f]  ;;  %v75_v49 = vsub.s32 1, %v4470_v43  ;;  %v83_v50 = vsub.s32 3, %v4470_v43 }
   0xf   :  { %353 = vmatpush1.bf16.msra.mxu0 %v3869_v21  ;;  %v72_v53 = vrot.slane %v4477_v46, %v71_v44  ;;  %v4491_v54 = vrot.slane %v4477_v46, %v79_v45 }
  0x10   :  { %674 = vmatpush1.bf16.msra.mxu1 %v4260_v15  ;;  %3364 = vmatprep.subr.bf16.mxu0 %v5716_v25  ;;  %v4494_v57 = vrot.slane %v4477_v46, %v75_v49  ;;  %v4497_v58 = vrot.slane %v4477_v46, %v83_v50 }
  0x11   :  { %675 = vmatprep.subr.bf16.mxu1 %v4267_v16 }
  0x12   :  { %3037 = vmatmul.mubr.msk.bf16.gmra.mxu0 %vm179_vm0, %v3861_v17  ;;  %5722 = vst [vmem:[#allocation5_spill] sm:$0xff] %v4497_v58 }
  0x13   :  { %3041 = vmatmul.mubr.msk.bf16.gmra.mxu1 %vm179_vm0, %v3861_v17  ;;  %244 = vmatprep.mubr.bf16.mxu0 %v5714_v1 }
  0x14   :  { %676 = vmatpush1.bf16.msra.mxu1 %v4276_v18  ;;  %317 = vmatprep.mubr.bf16.mxu1 %v5714_v1 }
  0x15   :  { %677 = vmatprep.subr.bf16.mxu1 %v4286_v20 }
  0x18   :  { %678 = vmatpush1.bf16.msra.mxu1 %v4297_v22 }
  0x19   :  { %679 = vmatprep.subr.bf16.mxu1 %v4305_v23 }
  0x1a   :  { %3038 = vmatmul.mubr.msk.bf16.gmra.mxu0 %vm179_vm0, %v3868_v24 }
  0x1b   :  { %3042 = vmatmul.mubr.msk.bf16.gmra.mxu1 %vm179_vm0, %v3868_v24  ;;  %254 = vmatprep.mubr.bf16.mxu0 %v5714_v1 }
  0x1c   :  { %680 = vmatpush1.bf16.msra.mxu1 %v4315_v26  ;;  %327 = vmatprep.mubr.bf16.mxu1 %v5714_v1 }
  0x1d   :  { %681 = vmatprep.subr.bf16.mxu1 %v4321_v27 }
  0x20   :  { %682 = vmatpush1.bf16.msra.mxu1 %v4329_v28 }
  0x21   :  { %683 = vmatprep.subr.bf16.mxu1 %v4337_v29 }
  0x22   :  { %3039 = vmatmul.mubr.msk.bf16.gmra.mxu0 %vm179_vm0, %v3878_v30 }
  0x23   :  { %3043 = vmatmul.mubr.msk.bf16.gmra.mxu1 %vm179_vm0, %v3878_v30  ;;  %370 = vmatprep.mubr.bf16.mxu0 %v5714_v1 }
  0x24   :  { %684 = vmatpush1.bf16.msra.mxu1 %v4346_v31  ;;  %703 = vmatprep.mubr.bf16.mxu1 %v5714_v1 }
  0x25   :  { %685 = vmatprep.subr.bf16.mxu1 %v4352_v32 }
  0x28   :  { %686 = vmatpush1.bf16.msra.mxu1 %v4360_v33 }
  0x29   :  { %781 = vmatprep.subr.bf16.mxu1 %v4239_v12 }
  0x2a   :  { %3044 = vmatmul.mubr.msk.bf16.vlgmr.msra.gmra.mxu0 %vm179_vm0, %v4228_v9 }
  0x2b   :  { %704 = vmatmul.mubr.bf16.vlgmr.msra.gmra.mxu1 %v5714_v1  ;;  %3365 = vmatpush3.bf16.msra.mxu0 %v4369_v34 }
  0x2c   :  { %380 = vmatprep.mubr.bf16.mxu0 %v5714_v1  ;;  %3366 = vmatprep.subr.bf16.mxu0 %v5716_v25 }
  0x2d   :  { %782 = vmatpush1.bf16.msra.mxu1 %v4244_v13  ;;  %813 = vmatprep.mubr.bf16.mxu1 %v5714_v1 }
  0x2e   :  { %783 = vmatprep.subr.bf16.mxu1 %v4249_v14 }
  0x2f   :  { %3367 = vmatpush3.bf16.msra.mxu0 %v4379_v35 }
  0x30   :  { %3368 = vmatprep.subr.bf16.mxu0 %v5716_v25 }
  0x31   :  { %784 = vmatpush1.bf16.msra.mxu1 %v4260_v15 }
  0x32   :  { %785 = vmatprep.subr.bf16.mxu1 %v4267_v16  ;;  %3045 = vmatmul.mubr.msk.bf16.gmra.mxu0 %vm179_vm0, %v3861_v17 }
  0x33   :  { %3369 = vmatpush3.bf16.msra.mxu0 %v4390_v36  ;;  %390 = vmatprep.mubr.bf16.mxu0 %v5714_v1 }
  0x34   :  { %3370 = vmatprep.subr.bf16.mxu0 %v5716_v25 }
  0x35   :  { %786 = vmatpush1.bf16.msra.mxu1 %v4276_v18 }
  0x36   :  { %787 = vmatprep.subr.bf16.mxu1 %v4286_v20 }
  0x37   :  { %3371 = vmatpush3.bf16.msra.mxu0 %v4400_v37 }
  0x38   :  { %3372 = vmatprep.subr.bf16.mxu0 %v5716_v25 }
  0x39   :  { %788 = vmatpush1.bf16.msra.mxu1 %v4297_v22 }
  0x3a   :  { %789 = vmatprep.subr.bf16.mxu1 %v4305_v23  ;;  %3046 = vmatmul.mubr.msk.bf16.gmra.mxu0 %vm179_vm0, %v3868_v24 }
  0x3b   :  { %3373 = vmatpush3.bf16.msra.mxu0 %v4410_v38  ;;  %400 = vmatprep.mubr.bf16.mxu0 %v5714_v1 }
  0x3c   :  { %3374 = vmatprep.subr.bf16.mxu0 %v5716_v25 }
  0x3d   :  { %790 = vmatpush1.bf16.msra.mxu1 %v4315_v26 }
  0x3e   :  { %791 = vmatprep.subr.bf16.mxu1 %v4321_v27 }
  0x3f   :  { %3375 = vmatpush3.bf16.msra.mxu0 %v4420_v39 }
  0x40   :  { %3376 = vmatprep.subr.bf16.mxu0 %v5716_v25 }
  0x41   :  { %792 = vmatpush1.bf16.msra.mxu1 %v4329_v28 }
  0x42   :  { %793 = vmatprep.subr.bf16.mxu1 %v4337_v29  ;;  %3047 = vmatmul.mubr.msk.bf16.gmra.mxu0 %vm179_vm0, %v3878_v30 }
  0x43   :  { %3377 = vmatpush3.bf16.msra.mxu0 %v4430_v40  ;;  %3380 = vmatprep.mubr.msk.bf16.mxu0 %vm4123_vm1, %v5716_v25 }
  0x44   :  { %3378 = vmatprep.subr.bf16.mxu0 %v5716_v25 }
  0x45   :  { %794 = vmatpush1.bf16.msra.mxu1 %v4346_v31 }
  0x46   :  { %795 = vmatprep.subr.bf16.mxu1 %v4352_v32 }
  0x47   :  { %3379 = vmatpush3.bf16.msra.mxu0 %v4440_v41 }
  0x48   :  { %3384 = vmatprep.subr.bf16.mxu0 %v5716_v25 }
  0x49   :  { %796 = vmatpush1.bf16.msra.mxu1 %v4360_v33 }
  0x4a   :  { %891 = vmatprep.subr.bf16.mxu1 %v4239_v12  ;;  %3381 = vmatmul.mubr.bf16.vlgmr.msra.gmra.mxu0 %v5714_v1 }
  0x4b   :  { %3385 = vmatpush3.bf16.msra.mxu0 %v4369_v34  ;;  %3400 = vmatprep.mubr.msk.bf16.mxu0 %vm4123_vm1, %v5716_v25 }
  0x4c   :  { %3386 = vmatprep.subr.bf16.mxu0 %v5716_v25 }
  0x4f   :  { %3387 = vmatpush3.bf16.msra.mxu0 %v4379_v35 }
  0x50   :  { %3388 = vmatprep.subr.bf16.mxu0 %v5716_v25 }
  0x53   :  { %3389 = vmatpush3.bf16.msra.mxu0 %v4390_v36 }
  0x54   :  { %3390 = vmatprep.subr.bf16.mxu0 %v5716_v25 }
  0x57   :  { %3391 = vmatpush3.bf16.msra.mxu0 %v4400_v37 }
  0x58   :  { %3392 = vmatprep.subr.bf16.mxu0 %v5716_v25 }
  0x5b   :  { %3393 = vmatpush3.bf16.msra.mxu0 %v4410_v38 }
  0x5c   :  { %3394 = vmatprep.subr.bf16.mxu0 %v5716_v25 }
  0x5f   :  { %3395 = vmatpush3.bf16.msra.mxu0 %v4420_v39 }
  0x60   :  { %3396 = vmatprep.subr.bf16.mxu0 %v5716_v25 }
  0x63   :  { %3397 = vmatpush3.bf16.msra.mxu0 %v4430_v40 }
  0x64   :  { %3398 = vmatprep.subr.bf16.mxu0 %v5716_v25 }
  0x67   :  { %3399 = vmatpush3.bf16.msra.mxu0 %v4440_v41 }
  0x68   :  { %3404 = vmatprep.subr.bf16.mxu0 %v5716_v25 }
  0xca   :  { %v4479_v47 = vpop.f32.mrf.mxu0 }
  0xcb   :  { %v4481_v48 = vpop.f32.mrf.mxu1 }
  0xcc   :  { %v4485_v51 = vpop.f32.mrf.mxu0 }
  0xcd   :  { %v4487_v52 = vpop.f32.mrf.mxu1 }
  0xce   :  { %5721 = vst [vmem:[#allocation4_spill] sm:$0xff] %v4487_v52  ;;  %v230_v55 = vpop.f32.mrf.mxu0  ;;  %v91_v52 = vsub.s32 5, %v4470_v43 }
  0xcf   :  { %v303_v56 = vpop.f32.mrf.mxu1  ;;  %v4499_v59 = vadd.f32 %v230_v55, %v72_v53 }
  0xd0   :  { %v4502_v60 = vadd.f32 %v303_v56, %v4491_v54  ;;  %v232_v61 = vpop.f32.mrf.mxu0 }
  0xd1   :  { %v305_v62 = vpop.f32.mrf.mxu1  ;;  %v4505_v63 = vadd.f32 %v232_v61, %v4494_v57 }
  0xd2   :  { %v4508_v0 = vadd.f32 %v305_v62, %v4497_v58  ;;  %v236_v2 = vpop.f32.mrf.mxu0 }
  0xd3   :  { %v309_v3 = vpop.f32.mrf.mxu1  ;;  %v4510_v4 = vadd.f32 %v236_v2, %v72_v53 }
  0xd4   :  { %5723 = vst [vmem:[#allocation6_spill] sm:$0xff] %v4508_v0  ;;  %v4513_v5 = vadd.f32 %v309_v3, %v4491_v54  ;;  %v238_v6 = vpop.f32.mrf.mxu0 }
  0xd5   :  { %v311_v7 = vpop.f32.mrf.mxu1  ;;  %v4516_v8 = vadd.f32 %v238_v6, %v4494_v57 }
  0xd6   :  { %v4519_v9 = vadd.f32 %v311_v7, %v4497_v58  ;;  %v240_v10 = vpop.f32.mrf.mxu0 }
  0xd7   :  { %v313_v11 = vpop.f32.mrf.mxu1  ;;  %v4521_v17 = vadd.f32 %v240_v10, %v72_v53 }
  0xd8   :  { %5724 = vst [vmem:[#allocation7_spill] sm:$0xff] %v4519_v9  ;;  %v4524_v19 = vadd.f32 %v313_v11, %v4491_v54  ;;  %v242_v21 = vpop.f32.mrf.mxu0 }
  0xd9   :  { %v315_v24 = vpop.f32.mrf.mxu1  ;;  %v4527_v30 = vadd.f32 %v242_v21, %v4494_v57 }
  0xda   :  { %v4530_v42 = vadd.f32 %v315_v24, %v4497_v58  ;;  %v246_v44 = vpop.f32.mrf.mxu0 }
  0xdb   :  { %v319_v45 = vpop.f32.mrf.mxu1  ;;  %v4532_v49 = vadd.f32 %v246_v44, %v72_v53 }
  0xdc   :  { %5725 = vst [vmem:[#allocation8_spill] sm:$0xff] %v4530_v42  ;;  %v4535_v50 = vadd.f32 %v319_v45, %v4491_v54  ;;  %v248_v55 = vpop.f32.mrf.mxu0 }
  0xdd   :  { %v321_v56 = vpop.f32.mrf.mxu1  ;;  %v4538_v61 = vadd.f32 %v248_v55, %v4494_v57 }
  0xde   :  { %v4541_v62 = vadd.f32 %v321_v56, %v4497_v58  ;;  %v250_v2 = vpop.f32.mrf.mxu0 }
  0xdf   :  { %v323_v3 = vpop.f32.mrf.mxu1  ;;  %v4543_v6 = vadd.f32 %v250_v2, %v72_v53 }
  0xe0   :  { %5726 = vst [vmem:[#allocation9_spill] sm:$0xff] %v4541_v62  ;;  %v4546_v7 = vadd.f32 %v323_v3, %v4491_v54  ;;  %v252_v10 = vpop.f32.mrf.mxu0 }
  0xe1   :  { %v325_v11 = vpop.f32.mrf.mxu1  ;;  %v4549_v21 = vadd.f32 %v252_v10, %v4494_v57 }
  0xe2   :  { %v4552_v24 = vadd.f32 %v325_v11, %v4497_v58  ;;  %v256_v44 = vpop.f32.mrf.mxu0 }
  0xe3   :  { %v329_v45 = vpop.f32.mrf.mxu1  ;;  %v4554_v55 = vadd.f32 %v256_v44, %v72_v53 }
  0xe4   :  { %5727 = vst [vmem:[#allocation10_spill] sm:$0xff] %v4552_v24  ;;  %v4557_v56 = vadd.f32 %v329_v45, %v4491_v54  ;;  %v258_v2 = vpop.f32.mrf.mxu0  ;;  %v227_v45 = vadd.f32 %v4479_v47, %v72_v53 }
  0xe5   :  { %v331_v1 = vpop.f32.mrf.mxu1  ;;  %v4560_v3 = vadd.f32 %v258_v2, %v4494_v57  ;;  %v87_v2 = vsub.s32 4, %v4470_v43 }
  0xe6   :  { %v4563_v25 = vadd.f32 %v331_v1, %v4497_v58  ;;  %v260_v10 = vpop.f32.mrf.mxu0 }
  0xe7   :  { %v333_v62 = vpop.f32.mrf.mxu1  ;;  %v4565_v42 = vadd.f32 %v260_v10, %v72_v53  ;;  %v229_v53 = vadd.f32 %v4485_v51, %v4494_v57 }
  0xe8   :  { %5728 = vst [vmem:[#allocation11_spill] sm:$0xff] %v4563_v25  ;;  %v4568_v11 = vadd.f32 %v333_v62, %v4491_v54  ;;  %v262_v44 = vpop.f32.mrf.mxu0  ;;  %v4581_v62 = vrot.slane %v4477_v46, %v87_v2 }
  0xe9   :  { %v335_v24 = vpop.f32.mrf.mxu1  ;;  %v4572_v9 = vadd.f32 %v262_v44, %v4494_v57  ;;  %v4586_v44 = vrot.slane %v4477_v46, %v91_v52 }
  0xea   :  { %5729 = vst [vmem:[#allocation12_spill] sm:$0xff] %v4568_v11  ;;  %v4575_v0 = vpop.f32.mrf.mxu0  ;;  %5733 = vst [vmem:[#allocation16_spill] sm:$0xff] %v4581_v62 }
  0xeb   :  { %5730 = vst [vmem:[#allocation13_spill] sm:$0xff] %v4572_v9  ;;  %5731 = vst [vmem:[#allocation14_spill] sm:$0xff] %v4575_v0  ;;  %v705_v1 = vpop.f32.mrf.mxu1 }
  0xec   :  { %v752_v25 = vadd.f32 %v705_v1, %v227_v45  ;;  %v4578_v10 = vpop.f32.mrf.mxu0  ;;  %5734 = vst [vmem:[#allocation17_spill] sm:$0xff] %v4586_v44 }
  0xed   :  { %5732 = vst [vmem:[#allocation15_spill] sm:$0xff] %v4578_v10  ;;  %v707_v58 = vpop.f32.mrf.mxu1 }
  0xee   :  { %v3074_v24 = vmul.f32 -1.442695, %v752_v25  ;;  %v376_v11 = vpop.f32.mrf.mxu0  ;;  %v759_v10 = vadd.f32 %v707_v58, %v229_v53 }
  0xef   :  { %v709_v47 = vpop.f32.mrf.mxu1  ;;  %v4589_v45 = vadd.f32 %v376_v11, %v4581_v62 }
  0xf0   :  { %3945 = vpow2.f32 %v3074_v24  ;;  %v378_v43 = vpop.f32.mrf.mxu0  ;;  %v3075_v9 = vmul.f32 -1.442695, %v759_v10 }
  0xf1   :  { %5735 = vst [vmem:[#allocation18_spill] sm:$0xff] %v4589_v45  ;;  %v710_v1 = vpop.f32.mrf.mxu1  ;;  %v4592_v0 = vadd.f32 %v378_v43, %v4586_v44 }
  0xf2   :  { %v382_v2 = vpop.f32.mrf.mxu0  ;;  %3947 = vpow2.f32 %v3075_v9 }
  0xf3   :  { %5736 = vst [vmem:[#allocation19_spill] sm:$0xff] %v4592_v0  ;;  %v4595_v25 = vadd.f32 %v382_v2, %v4581_v62 }
  0xf4   :  { %v384_v47 = vpop.f32.mrf.mxu0 }
  0xf5   :  { %5737 = vst [vmem:[#allocation20_spill] sm:$0xff] %v4595_v25  ;;  %v4598_v51 = vadd.f32 %v384_v47, %v4586_v44 }
  0xf6   :  { %v386_v46 = vpop.f32.mrf.mxu0 }
  0xf7   :  { %5738 = vst [vmem:[#allocation21_spill] sm:$0xff] %v4598_v51  ;;  %v4601_v52 = vadd.f32 %v386_v46, %v4581_v62 }
  0xf8   :  { %v388_v57 = vpop.f32.mrf.mxu0 }
  0xf9   :  { %5739 = vst [vmem:[#allocation22_spill] sm:$0xff] %v4601_v52  ;;  %v4604_v58 = vadd.f32 %v388_v57, %v4586_v44 }
  0xfa   :  { %v392_v11 = vpop.f32.mrf.mxu0 }
  0xfb   :  { %5740 = vst [vmem:[#allocation23_spill] sm:$0xff] %v4604_v58  ;;  %v4607_v24 = vadd.f32 %v392_v11, %v4581_v62 }
  0xfc   :  { %v394_v43 = vpop.f32.mrf.mxu0 }
  0xfd   :  { %5741 = vst [vmem:[#allocation24_spill] sm:$0xff] %v4607_v24  ;;  %v3946_v53 = vpop.eup %3945  ;;  %v4610_v10 = vadd.f32 %v394_v43, %v4586_v44 }
  0xfe   :  { %v756_v1 = vadd.f32 1.0, %v3946_v53  ;;  %v396_v2 = vpop.f32.mrf.mxu0 }
  0xff   :  { %5742 = vst [vmem:[#allocation25_spill] sm:$0xff] %v4610_v10  ;;  %v4613_v47 = vadd.f32 %v396_v2, %v4581_v62  ;;  %v3948_v53 = vpop.eup %3947 }
 0x100   :  { %3949 = vrcp.f32 %v756_v1  ;;  %v398_v46 = vpop.f32.mrf.mxu0  ;;  %v4627_v1 = vld [vmem:[%s5703_s4] ss:$0 sm:$0xff]  ;;  %v763_v2 = vadd.f32 1.0, %v3948_v53 }
 0x101   :  { %5743 = vst [vmem:[#allocation26_spill] sm:$0xff] %v4613_v47  ;;  %v4616_v9 = vadd.f32 %v398_v46, %v4586_v44 }
 0x102   :  { %v402_v57 = vpop.f32.mrf.mxu0  ;;  %3951 = vrcp.f32 %v763_v2 }
 0x103   :  { %5744 = vst [vmem:[#allocation27_spill] sm:$0xff] %v4616_v9  ;;  %v4619_v58 = vadd.f32 %v402_v57, %v4581_v62  ;;  %v300_v57 = vadd.f32 %v4481_v48, %v4491_v54  ;;  %v5747_v48 = vmov 0.0   ;;  %v5748_v54 = vmov 0  }
 0x104   :  { %v404_v11 = vpop.f32.mrf.mxu0  ;;  %2649 = vst [vmem:[%s5712_s14] sm:$0xf] %v5748_v54 }
 0x105   :  { %5745 = vst [vmem:[#allocation28_spill] sm:$0xff] %v4619_v58  ;;  %v4622_v24 = vadd.f32 %v404_v11, %v4586_v44 }
 0x106   :  { %v406_v43 = vpop.f32.mrf.mxu0 }
 0x107   :  { %5746 = vst [vmem:[#allocation29_spill] sm:$0xff] %v4622_v24 }
 0x108   :  { %v408_v10 = vpop.f32.mrf.mxu0 }
 0x10a   :  { %v746_v47 = vpop.f32.mrf.mxu0 }
 0x10b   :  { %v766_v46 = vadd.f32 %v4627_v1, %v746_v47 }
 0x10c   :  { %v3382_v52 = vpop.f32.mrf.mxu0 }
 0x10d   :  { %v3950_v9 = vpop.eup %3949 }
 0x10e   :  { %v767_v11 = vmul.f32 %v3950_v9, %v766_v46  ;;  %v749_v24 = vpop.f32.mrf.mxu0 }
 0x10f   :  { %v3952_v10 = vpop.eup %3951 }
 0x110   :  { %v768_v58 = vadd.f32 %v767_v11, %v300_v57  ;;  %v3383_v43 = vpop.f32.mrf.mxu0  ;;  %v770_v51 = vsub.f32 1.0, %v3952_v10  ;;  %v772_v45 = vmul.f32 0.0, %v3952_v10 }
 0x112   :  { %3953 = vtanh.f32 %v768_v58 }
 0x11f   :  { %v3954_v25 = vpop.eup %3953 }
 0x120   :  { %v771_v0 = vmul.f32 %v3954_v25, %v770_v51 }
 0x122   :  { %v4632_v53 = vadd.f32 %v772_v45, %v771_v0 }
 0x124   :  { %v780_v47 = vpack.c.bf16 %v4632_v53, %v4632_v53 }
 0x126   :  { %814 = vmatmul.mubr.bf16.vlgmr.msra.gmra.mxu1 %v780_v47  ;;  %3401 = vmatmul.mubr.bf16.vlgmr.msra.gmra.mxu0 %v780_v47 }
 0x127   :  { %892 = vmatpush1.bf16.msra.mxu1 %v4244_v13  ;;  %3405 = vmatpush3.bf16.msra.mxu0 %v4369_v34 }
 0x128   :  { %893 = vmatprep.subr.bf16.mxu1 %v4249_v14  ;;  %3406 = vmatprep.subr.bf16.mxu0 %v5747_v48 }
 0x129   :  { %923 = vmatprep.mubr.bf16.mxu1 %v5748_v54  ;;  %3420 = vmatprep.mubr.msk.bf16.mxu0 %vm4123_vm1, %v5747_v48 }
 0x12b   :  { %894 = vmatpush1.bf16.msra.mxu1 %v4260_v15  ;;  %3407 = vmatpush3.bf16.msra.mxu0 %v4379_v35 }
 0x12c   :  { %895 = vmatprep.subr.bf16.mxu1 %v4267_v16  ;;  %3408 = vmatprep.subr.bf16.mxu0 %v5747_v48 }
 0x12f   :  { %896 = vmatpush1.bf16.msra.mxu1 %v4276_v18  ;;  %3409 = vmatpush3.bf16.msra.mxu0 %v4390_v36 }
 0x130   :  { %897 = vmatprep.subr.bf16.mxu1 %v4286_v20  ;;  %3410 = vmatprep.subr.bf16.mxu0 %v5747_v48 }
 0x133   :  { %898 = vmatpush1.bf16.msra.mxu1 %v4297_v22  ;;  %3411 = vmatpush3.bf16.msra.mxu0 %v4400_v37 }
 0x134   :  { %899 = vmatprep.subr.bf16.mxu1 %v4305_v23  ;;  %3412 = vmatprep.subr.bf16.mxu0 %v5747_v48 }
 0x137   :  { %900 = vmatpush1.bf16.msra.mxu1 %v4315_v26  ;;  %3413 = vmatpush3.bf16.msra.mxu0 %v4410_v38 }
 0x138   :  { %901 = vmatprep.subr.bf16.mxu1 %v4321_v27  ;;  %3414 = vmatprep.subr.bf16.mxu0 %v5747_v48 }
 0x13b   :  { %902 = vmatpush1.bf16.msra.mxu1 %v4329_v28  ;;  %3415 = vmatpush3.bf16.msra.mxu0 %v4420_v39 }
 0x13c   :  { %903 = vmatprep.subr.bf16.mxu1 %v4337_v29  ;;  %3416 = vmatprep.subr.bf16.mxu0 %v5747_v48 }
 0x13f   :  { %904 = vmatpush1.bf16.msra.mxu1 %v4346_v31  ;;  %3417 = vmatpush3.bf16.msra.mxu0 %v4430_v40 }
 0x140   :  { %905 = vmatprep.subr.bf16.mxu1 %v4352_v32  ;;  %3418 = vmatprep.subr.bf16.mxu0 %v5747_v48 }
 0x143   :  { %906 = vmatpush1.bf16.msra.mxu1 %v4360_v33  ;;  %3419 = vmatpush3.bf16.msra.mxu0 %v4440_v41 }
 0x144   :  { %1001 = vmatprep.subr.bf16.mxu1 %v4239_v12  ;;  %3424 = vmatprep.subr.bf16.mxu0 %v5747_v48 }
 0x1e6   :  { %v815_v0 = vpop.f32.mrf.mxu1  ;;  %v856_v45 = vpop.f32.mrf.mxu0 }
 0x1e7   :  { %v862_v25 = vadd.f32 %v815_v0, %v4499_v59  ;;  %v876_v62 = vadd.f32 %v4627_v1, %v856_v45 }
 0x1e8   :  { %v817_v51 = vpop.f32.mrf.mxu1  ;;  %v3402_v52 = vpop.f32.mrf.mxu0 }
 0x1e9   :  { %v3076_v58 = vmul.f32 -1.442695, %v862_v25  ;;  %v869_v57 = vadd.f32 %v817_v51, %v4505_v63 }
 0x1ea   :  { %v819_v24 = vpop.f32.mrf.mxu1  ;;  %v859_v9 = vpop.f32.mrf.mxu0 }
 0x1eb   :  { %3955 = vpow2.f32 %v3076_v58  ;;  %v3077_v11 = vmul.f32 -1.442695, %v869_v57 }
 0x1ec   :  { %v820_v2 = vpop.f32.mrf.mxu1  ;;  %v3403_v46 = vpop.f32.mrf.mxu0 }
 0x1ed   :  { %3957 = vpow2.f32 %v3077_v11 }
 0x1f8   :  { %v3956_v43 = vpop.eup %3955 }
 0x1f9   :  { %v866_v10 = vadd.f32 1.0, %v3956_v43 }
 0x1fa   :  { %v3958_v47 = vpop.eup %3957 }
 0x1fb   :  { %3959 = vrcp.f32 %v866_v10  ;;  %v873_v44 = vadd.f32 1.0, %v3958_v47 }
 0x1fd   :  { %3961 = vrcp.f32 %v873_v44 }
 0x208   :  { %v3960_v59 = vpop.eup %3959 }
 0x209   :  { %v877_v0 = vmul.f32 %v3960_v59, %v876_v62 }
 0x20a   :  { %v3962_v52 = vpop.eup %3961 }
 0x20b   :  { %v878_v25 = vadd.f32 %v877_v0, %v4502_v60  ;;  %v880_v58 = vsub.f32 1.0, %v3962_v52  ;;  %v882_v63 = vmul.f32 %v3962_v52, %v4632_v53 }
 0x20d   :  { %3963 = vtanh.f32 %v878_v25 }
 0x21a   :  { %v3964_v24 = vpop.eup %3963 }
 0x21b   :  { %v881_v9 = vmul.f32 %v3964_v24, %v880_v58 }
 0x21d   :  { %v4676_v51 = vadd.f32 %v882_v63, %v881_v9 }
 0x21f   :  { %v890_v2 = vpack.c.bf16 %v4676_v51, %v4676_v51 }
 0x221   :  { %924 = vmatmul.mubr.bf16.vlgmr.msra.gmra.mxu1 %v890_v2  ;;  %3421 = vmatmul.mubr.bf16.vlgmr.msra.gmra.mxu0 %v890_v2 }
 0x222   :  { %1002 = vmatpush1.bf16.msra.mxu1 %v4244_v13  ;;  %3425 = vmatpush3.bf16.msra.mxu0 %v4369_v34 }
 0x223   :  { %1003 = vmatprep.subr.bf16.mxu1 %v4249_v14  ;;  %3426 = vmatprep.subr.bf16.mxu0 %v5747_v48 }
 0x224   :  { %1033 = vmatprep.mubr.bf16.mxu1 %v5748_v54  ;;  %3440 = vmatprep.mubr.msk.bf16.mxu0 %vm4123_vm1, %v5747_v48 }
 0x226   :  { %1004 = vmatpush1.bf16.msra.mxu1 %v4260_v15  ;;  %3427 = vmatpush3.bf16.msra.mxu0 %v4379_v35 }
 0x227   :  { %1005 = vmatprep.subr.bf16.mxu1 %v4267_v16  ;;  %3428 = vmatprep.subr.bf16.mxu0 %v5747_v48 }
 0x22a   :  { %1006 = vmatpush1.bf16.msra.mxu1 %v4276_v18  ;;  %3429 = vmatpush3.bf16.msra.mxu0 %v4390_v36 }
 0x22b   :  { %1007 = vmatprep.subr.bf16.mxu1 %v4286_v20  ;;  %3430 = vmatprep.subr.bf16.mxu0 %v5747_v48 }
 0x22e   :  { %1008 = vmatpush1.bf16.msra.mxu1 %v4297_v22  ;;  %3431 = vmatpush3.bf16.msra.mxu0 %v4400_v37 }
 0x22f   :  { %1009 = vmatprep.subr.bf16.mxu1 %v4305_v23  ;;  %3432 = vmatprep.subr.bf16.mxu0 %v5747_v48 }
 0x232   :  { %1010 = vmatpush1.bf16.msra.mxu1 %v4315_v26  ;;  %3433 = vmatpush3.bf16.msra.mxu0 %v4410_v38 }
 0x233   :  { %1011 = vmatprep.subr.bf16.mxu1 %v4321_v27  ;;  %3434 = vmatprep.subr.bf16.mxu0 %v5747_v48 }
 0x236   :  { %1012 = vmatpush1.bf16.msra.mxu1 %v4329_v28  ;;  %3435 = vmatpush3.bf16.msra.mxu0 %v4420_v39 }
 0x237   :  { %1013 = vmatprep.subr.bf16.mxu1 %v4337_v29  ;;  %3436 = vmatprep.subr.bf16.mxu0 %v5747_v48 }
 0x23a   :  { %1014 = vmatpush1.bf16.msra.mxu1 %v4346_v31  ;;  %3437 = vmatpush3.bf16.msra.mxu0 %v4430_v40 }
 0x23b   :  { %1015 = vmatprep.subr.bf16.mxu1 %v4352_v32  ;;  %3438 = vmatprep.subr.bf16.mxu0 %v5747_v48 }
 0x23e   :  { %1016 = vmatpush1.bf16.msra.mxu1 %v4360_v33  ;;  %3439 = vmatpush3.bf16.msra.mxu0 %v4440_v41 }
 0x23f   :  { %1111 = vmatprep.subr.bf16.mxu1 %v4239_v12  ;;  %3444 = vmatprep.subr.bf16.mxu0 %v5747_v48 }
 0x2e1   :  { %v925_v60 = vpop.f32.mrf.mxu1  ;;  %v966_v62 = vpop.f32.mrf.mxu0 }
 0x2e2   :  { %v972_v44 = vadd.f32 %v925_v60, %v4510_v4  ;;  %v986_v24 = vadd.f32 %v4627_v1, %v966_v62 }
 0x2e3   :  { %v927_v53 = vpop.f32.mrf.mxu1  ;;  %v3422_v45 = vpop.f32.mrf.mxu0 }
 0x2e4   :  { %v3078_v46 = vmul.f32 -1.442695, %v972_v44  ;;  %v979_v47 = vadd.f32 %v927_v53, %v4516_v8 }
 0x2e5   :  { %v929_v57 = vpop.f32.mrf.mxu1  ;;  %v969_v11 = vpop.f32.mrf.mxu0 }
 0x2e6   :  { %3965 = vpow2.f32 %v3078_v46  ;;  %v3079_v59 = vmul.f32 -1.442695, %v979_v47 }
 0x2e7   :  { %v930_v43 = vpop.f32.mrf.mxu1  ;;  %v3423_v10 = vpop.f32.mrf.mxu0 }
 0x2e8   :  { %3967 = vpow2.f32 %v3079_v59 }
 0x2f3   :  { %v3966_v0 = vpop.eup %3965 }
 0x2f4   :  { %v976_v25 = vadd.f32 1.0, %v3966_v0 }
 0x2f5   :  { %v3968_v52 = vpop.eup %3967 }
 0x2f6   :  { %3969 = vrcp.f32 %v976_v25  ;;  %v983_v58 = vadd.f32 1.0, %v3968_v52 }
 0x2f8   :  { %3971 = vrcp.f32 %v983_v58 }
 0x303   :  { %v3970_v4 = vpop.eup %3969 }
 0x304   :  { %v987_v9 = vmul.f32 %v3970_v4, %v986_v24 }
 0x305   :  { %v3972_v2 = vpop.eup %3971 }
 0x306   :  { %v988_v63 = vadd.f32 %v987_v9, %v4513_v5  ;;  %v990_v60 = vsub.f32 1.0, %v3972_v2  ;;  %v992_v8 = vmul.f32 %v3972_v2, %v4676_v51 }
 0x308   :  { %3973 = vtanh.f32 %v988_v63 }
 0x315   :  { %v3974_v44 = vpop.eup %3973 }
 0x316   :  { %v991_v45 = vmul.f32 %v3974_v44, %v990_v60 }
 0x318   :  { %v4720_v53 = vadd.f32 %v992_v8, %v991_v45 }
 0x31a   :  { %v1000_v46 = vpack.c.bf16 %v4720_v53, %v4720_v53 }
 0x31c   :  { %1034 = vmatmul.mubr.bf16.vlgmr.msra.gmra.mxu1 %v1000_v46  ;;  %3441 = vmatmul.mubr.bf16.vlgmr.msra.gmra.mxu0 %v1000_v46 }
 0x31d   :  { %1112 = vmatpush1.bf16.msra.mxu1 %v4244_v13  ;;  %3445 = vmatpush3.bf16.msra.mxu0 %v4369_v34 }
 0x31e   :  { %1113 = vmatprep.subr.bf16.mxu1 %v4249_v14  ;;  %3446 = vmatprep.subr.bf16.mxu0 %v5747_v48 }
 0x31f   :  { %1143 = vmatprep.mubr.bf16.mxu1 %v5748_v54  ;;  %3460 = vmatprep.mubr.msk.bf16.mxu0 %vm4123_vm1, %v5747_v48 }
 0x321   :  { %1114 = vmatpush1.bf16.msra.mxu1 %v4260_v15  ;;  %3447 = vmatpush3.bf16.msra.mxu0 %v4379_v35 }
 0x322   :  { %1115 = vmatprep.subr.bf16.mxu1 %v4267_v16  ;;  %3448 = vmatprep.subr.bf16.mxu0 %v5747_v48 }
 0x325   :  { %1116 = vmatpush1.bf16.msra.mxu1 %v4276_v18  ;;  %3449 = vmatpush3.bf16.msra.mxu0 %v4390_v36 }
 0x326   :  { %1117 = vmatprep.subr.bf16.mxu1 %v4286_v20  ;;  %3450 = vmatprep.subr.bf16.mxu0 %v5747_v48 }
 0x329   :  { %1118 = vmatpush1.bf16.msra.mxu1 %v4297_v22  ;;  %3451 = vmatpush3.bf16.msra.mxu0 %v4400_v37 }
 0x32a   :  { %1119 = vmatprep.subr.bf16.mxu1 %v4305_v23  ;;  %3452 = vmatprep.subr.bf16.mxu0 %v5747_v48 }
 0x32d   :  { %1120 = vmatpush1.bf16.msra.mxu1 %v4315_v26  ;;  %3453 = vmatpush3.bf16.msra.mxu0 %v4410_v38 }
 0x32e   :  { %1121 = vmatprep.subr.bf16.mxu1 %v4321_v27  ;;  %3454 = vmatprep.subr.bf16.mxu0 %v5747_v48 }
 0x331   :  { %1122 = vmatpush1.bf16.msra.mxu1 %v4329_v28  ;;  %3455 = vmatpush3.bf16.msra.mxu0 %v4420_v39 }
 0x332   :  { %1123 = vmatprep.subr.bf16.mxu1 %v4337_v29  ;;  %3456 = vmatprep.subr.bf16.mxu0 %v5747_v48 }
 0x335   :  { %1124 = vmatpush1.bf16.msra.mxu1 %v4346_v31  ;;  %3457 = vmatpush3.bf16.msra.mxu0 %v4430_v40 }
 0x336   :  { %1125 = vmatprep.subr.bf16.mxu1 %v4352_v32  ;;  %3458 = vmatprep.subr.bf16.mxu0 %v5747_v48 }
 0x339   :  { %1126 = vmatpush1.bf16.msra.mxu1 %v4360_v33  ;;  %3459 = vmatpush3.bf16.msra.mxu0 %v4440_v41 }
 0x33a   :  { %1221 = vmatprep.subr.bf16.mxu1 %v4239_v12  ;;  %3464 = vmatprep.subr.bf16.mxu0 %v5747_v48 }
 0x3dc   :  { %v1035_v13 = vpop.f32.mrf.mxu1  ;;  %v1076_v5 = vpop.f32.mrf.mxu0 }
 0x3dd   :  { %v1082_v51 = vadd.f32 %v1035_v13, %v4521_v17  ;;  %v1096_v4 = vadd.f32 %v4627_v1, %v1076_v5  ;;  %v4771_v13 = vld [vmem:[%s5701_s3 + $0xa8] ss:$12 sps:$4 sm:$0xff]  }
 0x3de   :  { %v1037_v62 = vpop.f32.mrf.mxu1  ;;  %v3442_v57 = vpop.f32.mrf.mxu0 }
 0x3df   :  { %v3080_v11 = vmul.f32 -1.442695, %v1082_v51  ;;  %v1089_v0 = vadd.f32 %v1037_v62, %v4527_v30 }
 0x3e0   :  { %v1039_v43 = vpop.f32.mrf.mxu1  ;;  %v1079_v10 = vpop.f32.mrf.mxu0 }
 0x3e1   :  { %3975 = vpow2.f32 %v3080_v11  ;;  %v3081_v25 = vmul.f32 -1.442695, %v1089_v0 }
 0x3e2   :  { %v1040_v47 = vpop.f32.mrf.mxu1  ;;  %v3443_v59 = vpop.f32.mrf.mxu0 }
 0x3e3   :  { %3977 = vpow2.f32 %v3081_v25  ;;  %v4837_v25 = vld [vmem:[%s5701_s3 + $0x90] ss:$12 sps:$4 sm:$0xff]  }
 0x3ee   :  { %v3976_v52 = vpop.eup %3975 }
 0x3ef   :  { %v1086_v12 = vadd.f32 1.0, %v3976_v52  ;;  %v4851_v52 = vld [vmem:[%s5701_s3 + $0x78] ss:$12 sps:$4 sm:$0xff]  }
 0x3f0   :  { %v3978_v58 = vpop.eup %3977 }
 0x3f1   :  { %3979 = vrcp.f32 %v1086_v12  ;;  %v1093_v24 = vadd.f32 1.0, %v3978_v58  ;;  %v4865_v12 = vld [vmem:[%s5701_s3 + $0x60] ss:$12 sps:$4 sm:$0xff]   ;;  %v4879_v58 = vld [vmem:[%s5701_s3 + $0x48] ss:$12 sps:$4 sm:$0xff]  }
 0x3f3   :  { %3981 = vrcp.f32 %v1093_v24  ;;  %v4893_v24 = vld [vmem:[%s5701_s3 + $0x30] ss:$12 sps:$4 sm:$0xff]  }
 0x3fe   :  { %v3980_v17 = vpop.eup %3979 }
 0x3ff   :  { %v1097_v9 = vmul.f32 %v3980_v17, %v1096_v4  ;;  %v4907_v4 = vld [vmem:[%s5701_s3 + $0x18] ss:$12 sps:$4 sm:$0xff]   ;;  %v4921_v17 = vld [vmem:[%s5701_s3] ss:$12 sps:$4 sm:$0xff]  }
 0x400   :  { %v3982_v2 = vpop.eup %3981 }
 0x401   :  { %v1098_v63 = vadd.f32 %v1097_v9, %v4524_v19  ;;  %v1100_v60 = vsub.f32 1.0, %v3982_v2  ;;  %v1102_v30 = vmul.f32 %v3982_v2, %v4720_v53 }
 0x403   :  { %3983 = vtanh.f32 %v1098_v63 }
 0x410   :  { %v3984_v44 = vpop.eup %3983 }
 0x411   :  { %v1101_v45 = vmul.f32 %v3984_v44, %v1100_v60 }
 0x413   :  { %v4764_v8 = vadd.f32 %v1102_v30, %v1101_v45 }
 0x415   :  { %v1110_v46 = vpack.c.bf16 %v4764_v8, %v4764_v8 }
 0x417   :  { %1144 = vmatmul.mubr.bf16.vlgmr.msra.gmra.mxu1 %v1110_v46  ;;  %3461 = vmatmul.mubr.bf16.vlgmr.msra.gmra.mxu0 %v1110_v46 }
 0x418   :  { %1222 = vmatpush1.bf16.msra.mxu1 %v4771_v13  ;;  %3465 = vmatpush3.bf16.msra.mxu0 %v4369_v34 }
 0x419   :  { %1223 = vmatprep.subr.bf16.mxu1 %v4249_v14  ;;  %3466 = vmatprep.subr.bf16.mxu0 %v5747_v48  ;;  %v4809_v14 = vld [vmem:[%s5701_s3 + $0xac] ss:$12 sps:$4 sm:$0xff]  }
 0x41a   :  { %1253 = vmatprep.mubr.bf16.mxu1 %v5748_v54  ;;  %3480 = vmatprep.mubr.msk.bf16.mxu0 %vm4123_vm1, %v5747_v48 }
 0x41c   :  { %1224 = vmatpush1.bf16.msra.mxu1 %v4260_v15  ;;  %3467 = vmatpush3.bf16.msra.mxu0 %v4379_v35 }
 0x41d   :  { %1225 = vmatprep.subr.bf16.mxu1 %v4267_v16  ;;  %3468 = vmatprep.subr.bf16.mxu0 %v5747_v48 }
 0x420   :  { %1226 = vmatpush1.bf16.msra.mxu1 %v4276_v18  ;;  %3469 = vmatpush3.bf16.msra.mxu0 %v4390_v36 }
 0x421   :  { %1227 = vmatprep.subr.bf16.mxu1 %v4286_v20  ;;  %3470 = vmatprep.subr.bf16.mxu0 %v5747_v48 }
 0x424   :  { %1228 = vmatpush1.bf16.msra.mxu1 %v4297_v22  ;;  %3471 = vmatpush3.bf16.msra.mxu0 %v4400_v37 }
 0x425   :  { %1229 = vmatprep.subr.bf16.mxu1 %v4305_v23  ;;  %3472 = vmatprep.subr.bf16.mxu0 %v5747_v48 }
 0x428   :  { %1230 = vmatpush1.bf16.msra.mxu1 %v4315_v26  ;;  %3473 = vmatpush3.bf16.msra.mxu0 %v4410_v38 }
 0x429   :  { %1231 = vmatprep.subr.bf16.mxu1 %v4321_v27  ;;  %3474 = vmatprep.subr.bf16.mxu0 %v5747_v48 }
 0x42c   :  { %1232 = vmatpush1.bf16.msra.mxu1 %v4329_v28  ;;  %3475 = vmatpush3.bf16.msra.mxu0 %v4420_v39 }
 0x42d   :  { %1233 = vmatprep.subr.bf16.mxu1 %v4337_v29  ;;  %3476 = vmatprep.subr.bf16.mxu0 %v5747_v48 }
 0x430   :  { %1234 = vmatpush1.bf16.msra.mxu1 %v4346_v31  ;;  %3477 = vmatpush3.bf16.msra.mxu0 %v4430_v40 }
 0x431   :  { %1235 = vmatprep.subr.bf16.mxu1 %v4352_v32  ;;  %3478 = vmatprep.subr.bf16.mxu0 %v5747_v48 }
 0x434   :  { %1236 = vmatpush1.bf16.msra.mxu1 %v4360_v33  ;;  %3479 = vmatpush3.bf16.msra.mxu0 %v4440_v41 }
 0x435   :  { %1331 = vmatprep.subr.bf16.mxu1 %v4809_v14  ;;  %3484 = vmatprep.subr.bf16.mxu0 %v5747_v48 }
 0x4d7   :  { %v1145_v15 = vpop.f32.mrf.mxu1  ;;  %v1186_v16 = vpop.f32.mrf.mxu0 }
 0x4d8   :  { %v1192_v18 = vadd.f32 %v1145_v15, %v4532_v49  ;;  %v1206_v51 = vadd.f32 %v4627_v1, %v1186_v16 }
 0x4d9   :  { %v1147_v20 = vpop.f32.mrf.mxu1  ;;  %v3462_v22 = vpop.f32.mrf.mxu0 }
 0x4da   :  { %v3082_v23 = vmul.f32 -1.442695, %v1192_v18  ;;  %v1199_v31 = vadd.f32 %v1147_v20, %v4538_v61 }
 0x4db   :  { %v1149_v26 = vpop.f32.mrf.mxu1  ;;  %v1189_v27 = vpop.f32.mrf.mxu0 }
 0x4dc   :  { %3985 = vpow2.f32 %v3082_v23  ;;  %v3083_v32 = vmul.f32 -1.442695, %v1199_v31 }
 0x4dd   :  { %v1150_v28 = vpop.f32.mrf.mxu1  ;;  %v3463_v29 = vpop.f32.mrf.mxu0 }
 0x4de   :  { %3987 = vpow2.f32 %v3083_v32 }
 0x4e9   :  { %v3986_v33 = vpop.eup %3985 }
 0x4ea   :  { %v1196_v19 = vadd.f32 1.0, %v3986_v33 }
 0x4eb   :  { %v3988_v53 = vpop.eup %3987 }
 0x4ec   :  { %3989 = vrcp.f32 %v1196_v19  ;;  %v1203_v5 = vadd.f32 1.0, %v3988_v53  ;;  %v4113_v19 = vld [vmem:[%s5701_s3 + $0x80] ss:$12 sps:$4 sm:$0xff]   ;;  %v4114_v53 = vld [vmem:[%s5701_s3 + $0x68] ss:$12 sps:$4 sm:$0xff]  }
 0x4ee   :  { %3991 = vrcp.f32 %v1203_v5  ;;  %v4115_v5 = vld [vmem:[%s5701_s3 + $0x50] ss:$12 sps:$4 sm:$0xff]  }
 0x4f9   :  { %v3990_v49 = vpop.eup %3989 }
 0x4fa   :  { %v1207_v62 = vmul.f32 %v3990_v49, %v1206_v51  ;;  %v4116_v51 = vld [vmem:[%s5701_s3 + $0x38] ss:$12 sps:$4 sm:$0xff]   ;;  %v4117_v49 = vld [vmem:[%s5701_s3 + $0x20] ss:$12 sps:$4 sm:$0xff]  }
 0x4fb   :  { %v3992_v11 = vpop.eup %3991 }
 0x4fc   :  { %v1208_v57 = vadd.f32 %v1207_v62, %v4535_v50  ;;  %v1210_v43 = vsub.f32 1.0, %v3992_v11  ;;  %v1212_v61 = vmul.f32 %v3992_v11, %v4764_v8  ;;  %v4827_v50 = vld [vmem:[%s5701_s3 + $0x94] ss:$12 sps:$4 sm:$0xff]  }
 0x4fd   :  { %v4118_v62 = vld [vmem:[%s5701_s3 + $0x8] ss:$12 sps:$4 sm:$0xff]  }
 0x4fe   :  { %3993 = vtanh.f32 %v1208_v57 }
 0x50b   :  { %v3994_v10 = vpop.eup %3993 }
 0x50c   :  { %v1211_v47 = vmul.f32 %v3994_v10, %v1210_v43 }
 0x50e   :  { %v4818_v59 = vadd.f32 %v1212_v61, %v1211_v47 }
 0x510   :  { %v1220_v0 = vpack.c.bf16 %v4818_v59, %v4818_v59 }
 0x512   :  { %1254 = vmatmul.mubr.bf16.vlgmr.msra.gmra.mxu1 %v1220_v0  ;;  %3481 = vmatmul.mubr.bf16.vlgmr.msra.gmra.mxu0 %v1220_v0 }
 0x513   :  { %1332 = vmatpush1.bf16.msra.mxu1 %v4771_v13  ;;  %3485 = vmatpush3.bf16.msra.mxu0 %v4369_v34  ;;  %v4844_v34 = vld [vmem:[%s5701_s3 + $0x7c] ss:$12 sps:$4 sm:$0xff]  }
 0x514   :  { %1333 = vmatprep.subr.bf16.mxu1 %v4827_v50  ;;  %3486 = vmatprep.subr.bf16.mxu0 %v5747_v48 }
 0x515   :  { %1363 = vmatprep.mubr.bf16.mxu1 %v5748_v54  ;;  %3500 = vmatprep.mubr.msk.bf16.mxu0 %vm4123_vm1, %v5747_v48 }
 0x517   :  { %1334 = vmatpush1.bf16.msra.mxu1 %v4837_v25  ;;  %3487 = vmatpush3.bf16.msra.mxu0 %v4379_v35  ;;  %v4858_v35 = vld [vmem:[%s5701_s3 + $0x64] ss:$12 sps:$4 sm:$0xff]  }
 0x518   :  { %1335 = vmatprep.subr.bf16.mxu1 %v4844_v34  ;;  %3488 = vmatprep.subr.bf16.mxu0 %v5747_v48 }
 0x51b   :  { %1336 = vmatpush1.bf16.msra.mxu1 %v4851_v52  ;;  %3489 = vmatpush3.bf16.msra.mxu0 %v4390_v36  ;;  %v4872_v36 = vld [vmem:[%s5701_s3 + $0x4c] ss:$12 sps:$4 sm:$0xff]  }
 0x51c   :  { %1337 = vmatprep.subr.bf16.mxu1 %v4858_v35  ;;  %3490 = vmatprep.subr.bf16.mxu0 %v5747_v48 }
 0x51f   :  { %1338 = vmatpush1.bf16.msra.mxu1 %v4865_v12  ;;  %3491 = vmatpush3.bf16.msra.mxu0 %v4400_v37  ;;  %v4886_v37 = vld [vmem:[%s5701_s3 + $0x34] ss:$12 sps:$4 sm:$0xff]  }
 0x520   :  { %1339 = vmatprep.subr.bf16.mxu1 %v4872_v36  ;;  %3492 = vmatprep.subr.bf16.mxu0 %v5747_v48 }
 0x523   :  { %1340 = vmatpush1.bf16.msra.mxu1 %v4879_v58  ;;  %3493 = vmatpush3.bf16.msra.mxu0 %v4410_v38  ;;  %v4900_v38 = vld [vmem:[%s5701_s3 + $0x1c] ss:$12 sps:$4 sm:$0xff]  }
 0x524   :  { %1341 = vmatprep.subr.bf16.mxu1 %v4886_v37  ;;  %3494 = vmatprep.subr.bf16.mxu0 %v5747_v48 }
 0x527   :  { %1342 = vmatpush1.bf16.msra.mxu1 %v4893_v24  ;;  %3495 = vmatpush3.bf16.msra.mxu0 %v4420_v39  ;;  %v4914_v39 = vld [vmem:[%s5701_s3 + $0x4] ss:$12 sps:$4 sm:$0xff]  }
 0x528   :  { %1343 = vmatprep.subr.bf16.mxu1 %v4900_v38  ;;  %3496 = vmatprep.subr.bf16.mxu0 %v5747_v48 }
 0x52b   :  { %1344 = vmatpush1.bf16.msra.mxu1 %v4907_v4  ;;  %3497 = vmatpush3.bf16.msra.mxu0 %v4430_v40 }
 0x52c   :  { %1345 = vmatprep.subr.bf16.mxu1 %v4914_v39  ;;  %3498 = vmatprep.subr.bf16.mxu0 %v5747_v48 }
 0x52f   :  { %1346 = vmatpush1.bf16.msra.mxu1 %v4921_v17  ;;  %3499 = vmatpush3.bf16.msra.mxu0 %v4440_v41 }
 0x530   :  { %1441 = vmatprep.subr.bf16.mxu1 %v4809_v14  ;;  %3504 = vmatprep.subr.bf16.mxu0 %v5747_v48 }
 0x5d2   :  { %v1255_v40 = vpop.f32.mrf.mxu1  ;;  %v1296_v9 = vpop.f32.mrf.mxu0 }
 0x5d3   :  { %v1302_v63 = vadd.f32 %v1255_v40, %v4543_v6  ;;  %v1316_v22 = vadd.f32 %v4627_v1, %v1296_v9 }
 0x5d4   :  { %v1257_v2 = vpop.f32.mrf.mxu1  ;;  %v3482_v60 = vpop.f32.mrf.mxu0 }
 0x5d5   :  { %v3084_v44 = vmul.f32 -1.442695, %v1302_v63  ;;  %v1309_v15 = vadd.f32 %v1257_v2, %v4549_v21  ;;  %v3895_v2 = vld [vmem:[%s5704_s9 + $0x28] sm:$0xff]   ;;  %v3896_v60 = vld [vmem:[%s5704_s9 + $0x20] sm:$0xff]  }
 0x5d6   :  { %v1259_v45 = vpop.f32.mrf.mxu1  ;;  %v1299_v30 = vpop.f32.mrf.mxu0 }
 0x5d7   :  { %3995 = vpow2.f32 %v3084_v44  ;;  %v3085_v16 = vmul.f32 -1.442695, %v1309_v15  ;;  %v3897_v44 = vld [vmem:[%s5704_s9 + $0x18] sm:$0xff]   ;;  %v3898_v45 = vld [vmem:[%s5704_s9 + $0x10] sm:$0xff]   ;;  %v3899_v30 = vld [vmem:[%s5704_s9 + $0x8] sm:$0xff]  }
 0x5d8   :  { %v1260_v8 = vpop.f32.mrf.mxu1  ;;  %v3483_v46 = vpop.f32.mrf.mxu0  ;;  %v3925_v15 = vld [vmem:[%s5706_s11 + $0x18] sm:$0xff]  }
 0x5d9   :  { %3997 = vpow2.f32 %v3085_v16  ;;  %v3900_v8 = vld [vmem:[%s5704_s9] sm:$0xff]   ;;  %v5034_v46 = vld [vmem:[%s5705_s5 + $0xac] ss:$12 sps:$4 sm:$0xff]   ;;  %v3926_v16 = vld [vmem:[%s5706_s11 + $0x10] sm:$0xff]  }
 0x5e4   :  { %v3996_v41 = vpop.eup %3995 }
 0x5e5   :  { %v1306_v14 = vadd.f32 1.0, %v3996_v41  ;;  %v3927_v41 = vld [vmem:[%s5706_s11 + $0x8] sm:$0xff]  }
 0x5e6   :  { %v3998_v18 = vpop.eup %3997 }
 0x5e7   :  { %3999 = vrcp.f32 %v1306_v14  ;;  %v1313_v20 = vadd.f32 1.0, %v3998_v18 }
 0x5e9   :  { %4001 = vrcp.f32 %v1313_v20 }
 0x5f4   :  { %v4000_v6 = vpop.eup %3999 }
 0x5f5   :  { %v1317_v23 = vmul.f32 %v4000_v6, %v1316_v22 }
 0x5f6   :  { %v4002_v27 = vpop.eup %4001 }
 0x5f7   :  { %v1318_v26 = vadd.f32 %v1317_v23, %v4546_v7  ;;  %v1320_v28 = vsub.f32 1.0, %v4002_v27  ;;  %v1322_v21 = vmul.f32 %v4002_v27, %v4818_v59  ;;  %v4111_v7 = vld [vmem:[%s5701_s3 + $0xb0] ss:$12 sps:$4 sm:$0xff]  }
 0x5f9   :  { %4003 = vtanh.f32 %v1318_v26 }
 0x606   :  { %v4004_v29 = vpop.eup %4003 }
 0x607   :  { %v1321_v31 = vmul.f32 %v4004_v29, %v1320_v28 }
 0x609   :  { %v4932_v32 = vadd.f32 %v1322_v21, %v1321_v31  ;;  %v5749_v31 = vld [vmem:[#allocation13_spill] sm:$0xff] }
 0x60b   :  { %v1330_v33 = vpack.c.bf16 %v4932_v32, %v4932_v32 }
 0x60d   :  { %1364 = vmatmul.mubr.bf16.vlgmr.msra.gmra.mxu1 %v1330_v33  ;;  %3501 = vmatmul.mubr.bf16.vlgmr.msra.gmra.mxu0 %v1330_v33 }
 0x60e   :  { %1442 = vmatpush1.bf16.msra.mxu1 %v4771_v13  ;;  %3505 = vmatpush3.bf16.msra.mxu0 %v4111_v7  ;;  %v4112_v13 = vld [vmem:[%s5701_s3 + $0x98] ss:$12 sps:$4 sm:$0xff]  }
 0x60f   :  { %1443 = vmatprep.subr.bf16.mxu1 %v4827_v50  ;;  %3506 = vmatprep.subr.bf16.mxu0 %v5747_v48 }
 0x610   :  { %1473 = vmatprep.mubr.bf16.mxu1 %v5748_v54  ;;  %3520 = vmatprep.mubr.msk.bf16.mxu0 %vm4123_vm1, %v5747_v48 }
 0x612   :  { %1444 = vmatpush1.bf16.msra.mxu1 %v4837_v25  ;;  %3507 = vmatpush3.bf16.msra.mxu0 %v4112_v13 }
 0x613   :  { %1445 = vmatprep.subr.bf16.mxu1 %v4844_v34  ;;  %3508 = vmatprep.subr.bf16.mxu0 %v5747_v48 }
 0x616   :  { %1446 = vmatpush1.bf16.msra.mxu1 %v4851_v52  ;;  %3509 = vmatpush3.bf16.msra.mxu0 %v4113_v19 }
 0x617   :  { %1447 = vmatprep.subr.bf16.mxu1 %v4858_v35  ;;  %3510 = vmatprep.subr.bf16.mxu0 %v5747_v48 }
 0x61a   :  { %1448 = vmatpush1.bf16.msra.mxu1 %v4865_v12  ;;  %3511 = vmatpush3.bf16.msra.mxu0 %v4114_v53 }
 0x61b   :  { %1449 = vmatprep.subr.bf16.mxu1 %v4872_v36  ;;  %3512 = vmatprep.subr.bf16.mxu0 %v5747_v48 }
 0x61e   :  { %1450 = vmatpush1.bf16.msra.mxu1 %v4879_v58  ;;  %3513 = vmatpush3.bf16.msra.mxu0 %v4115_v5 }
 0x61f   :  { %1451 = vmatprep.subr.bf16.mxu1 %v4886_v37  ;;  %3514 = vmatprep.subr.bf16.mxu0 %v5747_v48 }
 0x622   :  { %1452 = vmatpush1.bf16.msra.mxu1 %v4893_v24  ;;  %3515 = vmatpush3.bf16.msra.mxu0 %v4116_v51 }
 0x623   :  { %1453 = vmatprep.subr.bf16.mxu1 %v4900_v38  ;;  %3516 = vmatprep.subr.bf16.mxu0 %v5747_v48 }
 0x626   :  { %1454 = vmatpush1.bf16.msra.mxu1 %v4907_v4  ;;  %3517 = vmatpush3.bf16.msra.mxu0 %v4117_v49  ;;  %v5750_v49 = vld [vmem:[#allocation12_spill] sm:$0xff] }
 0x627   :  { %1455 = vmatprep.subr.bf16.mxu1 %v4914_v39  ;;  %3518 = vmatprep.subr.bf16.mxu0 %v5747_v48 }
 0x62a   :  { %1456 = vmatpush1.bf16.msra.mxu1 %v4921_v17  ;;  %3519 = vmatpush3.bf16.msra.mxu0 %v4118_v62 }
 0x62b   :  { %3524 = vmatprep.subr.bf16.mxu1 %v5747_v48  ;;  %3544 = vmatprep.subr.bf16.mxu0 %v5747_v48 }
 0x6cd   :  { %v1365_v57 = vpop.f32.mrf.mxu1  ;;  %v1406_v11 = vpop.f32.mrf.mxu0 }
 0x6ce   :  { %v1412_v43 = vadd.f32 %v1365_v57, %v4554_v55  ;;  %v1426_v37 = vadd.f32 %v4627_v1, %v1406_v11  ;;  %v3894_v1 = vld [vmem:[%s5704_s9 + $0x30] sm:$0xff]  }
 0x6cf   :  { %v1367_v10 = vpop.f32.mrf.mxu1  ;;  %v3502_v47 = vpop.f32.mrf.mxu0 }
 0x6d0   :  { %v3086_v61 = vmul.f32 -1.442695, %v1412_v43  ;;  %v1419_v34 = vadd.f32 %v1367_v10, %v4560_v3 }
 0x6d1   :  { %v1369_v59 = vpop.f32.mrf.mxu1  ;;  %v1409_v0 = vpop.f32.mrf.mxu0 }
 0x6d2   :  { %4005 = vpow2.f32 %v3086_v61  ;;  %v3087_v52 = vmul.f32 -1.442695, %v1419_v34  ;;  %v5061_v59 = vld [vmem:[%s5705_s5 + $0xa8] ss:$12 sps:$4 sm:$0xff]  }
 0x6d3   :  { %v1370_v50 = vpop.f32.mrf.mxu1  ;;  %v3503_v25 = vpop.f32.mrf.mxu0  ;;  %v5084_v34 = vld [vmem:[%s5705_s5 + $0x7c] ss:$12 sps:$4 sm:$0xff]  }
 0x6d4   :  { %4007 = vpow2.f32 %v3087_v52  ;;  %v5070_v50 = vld [vmem:[%s5705_s5 + $0x94] ss:$12 sps:$4 sm:$0xff]   ;;  %v5077_v25 = vld [vmem:[%s5705_s5 + $0x90] ss:$12 sps:$4 sm:$0xff]   ;;  %v5090_v52 = vld [vmem:[%s5705_s5 + $0x78] ss:$12 sps:$4 sm:$0xff]  }
 0x6df   :  { %v4006_v35 = vpop.eup %4005 }
 0x6e0   :  { %v1416_v12 = vadd.f32 1.0, %v4006_v35  ;;  %v5096_v35 = vld [vmem:[%s5705_s5 + $0x64] ss:$12 sps:$4 sm:$0xff]  }
 0x6e1   :  { %v4008_v36 = vpop.eup %4007 }
 0x6e2   :  { %4009 = vrcp.f32 %v1416_v12  ;;  %v1423_v58 = vadd.f32 1.0, %v4008_v36  ;;  %v5102_v12 = vld [vmem:[%s5705_s5 + $0x60] ss:$12 sps:$4 sm:$0xff]  }
 0x6e3   :  { %v5108_v36 = vld [vmem:[%s5705_s5 + $0x4c] ss:$12 sps:$4 sm:$0xff]  }
 0x6e4   :  { %4011 = vrcp.f32 %v1423_v58  ;;  %v5114_v58 = vld [vmem:[%s5705_s5 + $0x48] ss:$12 sps:$4 sm:$0xff]  }
 0x6ef   :  { %v4010_v55 = vpop.eup %4009 }
 0x6f0   :  { %v1427_v24 = vmul.f32 %v4010_v55, %v1426_v37  ;;  %v5120_v37 = vld [vmem:[%s5705_s5 + $0x34] ss:$12 sps:$4 sm:$0xff]   ;;  %v5126_v55 = vld [vmem:[%s5705_s5 + $0x30] ss:$12 sps:$4 sm:$0xff]  }
 0x6f1   :  { %v4012_v4 = vpop.eup %4011 }
 0x6f2   :  { %v1428_v38 = vadd.f32 %v1427_v24, %v4557_v56  ;;  %v1430_v39 = vsub.f32 1.0, %v4012_v4  ;;  %v1432_v3 = vmul.f32 %v4012_v4, %v4932_v32  ;;  %v3893_v56 = vld [vmem:[%s5704_s9 + $0x38] sm:$0xff]   ;;  %v5144_v4 = vld [vmem:[%s5705_s5 + $0x4] ss:$12 sps:$4 sm:$0xff]  }
 0x6f3   :  { %v5132_v24 = vld [vmem:[%s5705_s5 + $0x1c] ss:$12 sps:$4 sm:$0xff]  }
 0x6f4   :  { %4013 = vtanh.f32 %v1428_v38  ;;  %v5138_v38 = vld [vmem:[%s5705_s5 + $0x18] ss:$12 sps:$4 sm:$0xff]  }
 0x701   :  { %v4014_v17 = vpop.eup %4013 }
 0x702   :  { %v1431_v40 = vmul.f32 %v4014_v17, %v1430_v39  ;;  %v5150_v39 = vld [vmem:[%s5705_s5] ss:$12 sps:$4 sm:$0xff]  }
 0x703   :  { %v3928_v17 = vld [vmem:[%s5706_s11] sm:$0xff]  }
 0x704   :  { %v4992_v9 = vadd.f32 %v1432_v3, %v1431_v40  ;;  %v3090_v40 = vld [vmem:[%s5707_s10] ss:$0 sm:$0xff] }
 0x706   :  { %v1440_v63 = vpack.c.bf16 %v4992_v9, %v4992_v9 }
 0x708   :  { %1474 = vmatmul.mubr.bf16.vlgmr.msra.gmra.mxu1 %v1440_v63  ;;  %3521 = vmatmul.mubr.bf16.vlgmr.msra.gmra.mxu0 %v1440_v63 }
 0x709   :  { %3540 = vmatprep.mubr.msk.bf16.mxu1 %vm4123_vm1, %v5747_v48  ;;  %3552 = vmatprep.mubr.msk.bf16.mxu0 %vm4123_vm1, %v5747_v48 }
 0x70a   :  { %3525 = vmatpush3.bf16.msra.mxu1 %v3893_v56  ;;  %3545 = vmatpush3.bf16.msra.mxu0 %v3925_v15  ;;  %v5212_v15 = vld [vmem:[%s5705_s5 + $0x50] ss:$12 sps:$4 sm:$0xff]  }
 0x70b   :  { %3526 = vmatprep.subr.bf16.mxu1 %v5747_v48  ;;  %3546 = vmatprep.subr.bf16.mxu0 %v5747_v48 }
 0x70e   :  { %3527 = vmatpush3.bf16.msra.mxu1 %v3894_v1  ;;  %3547 = vmatpush3.bf16.msra.mxu0 %v3926_v16  ;;  %v5219_v16 = vld [vmem:[%s5705_s5 + $0x38] ss:$12 sps:$4 sm:$0xff]  }
 0x70f   :  { %3528 = vmatprep.subr.bf16.mxu1 %v5747_v48  ;;  %3548 = vmatprep.subr.bf16.mxu0 %v5747_v48 }
 0x712   :  { %3529 = vmatpush3.bf16.msra.mxu1 %v3895_v2  ;;  %3549 = vmatpush3.bf16.msra.mxu0 %v3927_v41  ;;  %v5183_v2 = vld [vmem:[%s5705_s5 + $0xb0] ss:$12 sps:$4 sm:$0xff]   ;;  %v5226_v41 = vld [vmem:[%s5705_s5 + $0x20] ss:$12 sps:$4 sm:$0xff]  }
 0x713   :  { %3530 = vmatprep.subr.bf16.mxu1 %v5747_v48  ;;  %3550 = vmatprep.subr.bf16.mxu0 %v5747_v48 }
 0x716   :  { %3531 = vmatpush3.bf16.msra.mxu1 %v3896_v60  ;;  %3551 = vmatpush3.bf16.msra.mxu0 %v3928_v17 }
 0x717   :  { %3532 = vmatprep.subr.bf16.mxu1 %v5747_v48  ;;  %3556 = vmatprep.subr.bf16.mxu0 %v5747_v48 }
 0x71a   :  { %3533 = vmatpush3.bf16.msra.mxu1 %v3897_v44 }
 0x71b   :  { %3534 = vmatprep.subr.bf16.mxu1 %v5747_v48 }
 0x71e   :  { %3535 = vmatpush3.bf16.msra.mxu1 %v3898_v45  ;;  %v5189_v45 = vld [vmem:[%s5705_s5 + $0x98] ss:$12 sps:$4 sm:$0xff]  }
 0x71f   :  { %3536 = vmatprep.subr.bf16.mxu1 %v5747_v48 }
 0x722   :  { %3537 = vmatpush3.bf16.msra.mxu1 %v3899_v30  ;;  %v5198_v30 = vld [vmem:[%s5705_s5 + $0x80] ss:$12 sps:$4 sm:$0xff]  }
 0x723   :  { %3538 = vmatprep.subr.bf16.mxu1 %v5747_v48 }
 0x726   :  { %3539 = vmatpush3.bf16.msra.mxu1 %v3900_v8  ;;  %v5205_v8 = vld [vmem:[%s5705_s5 + $0x68] ss:$12 sps:$4 sm:$0xff]  }
 0x727   :  { %1873 = vmatprep.subr.bf16.mxu1 %v5034_v46 }
 0x7c8   :  { %v1475_v14 = vpop.f32.mrf.mxu1  ;;  %v1516_v18 = vpop.f32.mrf.mxu0 }
 0x7c9   :  { %v1522_v20 = vadd.f32 %v1475_v14, %v4565_v42  ;;  %v4119_v42 = vld [vmem:[%s5703_s4] ss:$0 sm:$0xff]  ;;  %v5751_v14 = vld [vmem:[#allocation5_spill] sm:$0xff] }
 0x7ca   :  { %v1477_v22 = vpop.f32.mrf.mxu1  ;;  %v3522_v6 = vpop.f32.mrf.mxu0  ;;  %v1536_v53 = vadd.f32 %v4119_v42, %v1516_v18  ;;  %v5752_v18 = vld [vmem:[#allocation4_spill] sm:$0xff] }
 0x7cb   :  { %v3088_v23 = vmul.f32 -1.442695, %v1522_v20  ;;  %v1529_v21 = vadd.f32 %v1477_v22, %v5749_v31  ;;  %v302_v20 = vadd.f32 %v5752_v18, %v5751_v14  ;;  %v5235_v6 = vld [vmem:[%s5705_s5 + $0x8] ss:$12 sps:$4 sm:$0xff]  }
 0x7cc   :  { %v1479_v26 = vpop.f32.mrf.mxu1  ;;  %v1519_v27 = vpop.f32.mrf.mxu0 }
 0x7cd   :  { %4015 = vpow2.f32 %v3088_v23  ;;  %v3089_v32 = vmul.f32 -1.442695, %v1529_v21  ;;  %v5753_v23 = vld [vmem:[#allocation16_spill] sm:$0xff]  ;;  %v5754_v26 = vld [vmem:[#allocation14_spill] sm:$0xff] }
 0x7ce   :  { %v1480_v28 = vpop.f32.mrf.mxu1  ;;  %v3523_v29 = vpop.f32.mrf.mxu0  ;;  %v373_v27 = vadd.f32 %v5754_v26, %v5753_v23 }
 0x7cf   :  { %4017 = vpow2.f32 %v3089_v32 }
 0x7da   :  { %v4016_v33 = vpop.eup %4015 }
 0x7db   :  { %v1526_v7 = vadd.f32 1.0, %v4016_v33 }
 0x7dc   :  { %v4018_v13 = vpop.eup %4017 }
 0x7dd   :  { %4019 = vrcp.f32 %v1526_v7  ;;  %v1533_v19 = vadd.f32 1.0, %v4018_v13  ;;  %v3099_v7 = vld [vmem:[%s5708_s12] ss:$0 sm:$0xff] }
 0x7df   :  { %4021 = vrcp.f32 %v1533_v19 }
 0x7ea   :  { %v4020_v5 = vpop.eup %4019 }
 0x7eb   :  { %v1537_v51 = vmul.f32 %v4020_v5, %v1536_v53 }
 0x7ec   :  { %v4022_v57 = vpop.eup %4021 }
 0x7ed   :  { %v1538_v62 = vadd.f32 %v1537_v51, %v5750_v49  ;;  %v1540_v11 = vsub.f32 1.0, %v4022_v57  ;;  %v1542_v47 = vmul.f32 %v4022_v57, %v4992_v9 }
 0x7ef   :  { %4023 = vtanh.f32 %v1538_v62 }
 0x7fc   :  { %v4024_v43 = vpop.eup %4023 }
 0x7fd   :  { %v1541_v10 = vmul.f32 %v4024_v43, %v1540_v11  ;;  %v5270_v11 = vld [vmem:[%s5710_s6] ss:$0 sm:$0xff] }
 0x7ff   :  { %v5056_v61 = vadd.f32 %v1542_v47, %v1541_v10 }
 0x801   :  { %v5065_v0 = vpack.c.bf16 %v5056_v61, %v5056_v61 }
 0x803   :  { %3541 = vmatmul.mubr.bf16.vlgmr.msra.gmra.mxu1 %v5065_v0 }
 0x804   :  { %1874 = vmatpush1.bf16.msra.mxu1 %v5061_v59  ;;  %1905 = vmatprep.mubr.bf16.mxu1 %v5748_v54 }
 0x805   :  { %1875 = vmatprep.subr.bf16.mxu1 %v5070_v50 }
 0x808   :  { %1876 = vmatpush1.bf16.msra.mxu1 %v5077_v25 }
 0x809   :  { %1877 = vmatprep.subr.bf16.mxu1 %v5084_v34 }
 0x80c   :  { %1878 = vmatpush1.bf16.msra.mxu1 %v5090_v52 }
 0x80d   :  { %1879 = vmatprep.subr.bf16.mxu1 %v5096_v35 }
 0x810   :  { %1880 = vmatpush1.bf16.msra.mxu1 %v5102_v12 }
 0x811   :  { %1881 = vmatprep.subr.bf16.mxu1 %v5108_v36 }
 0x814   :  { %1882 = vmatpush1.bf16.msra.mxu1 %v5114_v58 }
 0x815   :  { %1883 = vmatprep.subr.bf16.mxu1 %v5120_v37 }
 0x818   :  { %1884 = vmatpush1.bf16.msra.mxu1 %v5126_v55 }
 0x819   :  { %1885 = vmatprep.subr.bf16.mxu1 %v5132_v24 }
 0x81c   :  { %1886 = vmatpush1.bf16.msra.mxu1 %v5138_v38 }
 0x81d   :  { %1887 = vmatprep.subr.bf16.mxu1 %v5144_v4 }
 0x820   :  { %1888 = vmatpush1.bf16.msra.mxu1 %v5150_v39 }
 0x821   :  { %1981 = vmatprep.subr.bf16.mxu1 %v5034_v46 }
 0x823   :  { %1906 = vmatmul.mubr.bf16.vlgmr.msra.gmra.mxu1 %v5065_v0 }
 0x824   :  { %1982 = vmatpush1.bf16.msra.mxu1 %v5061_v59  ;;  %2013 = vmatprep.mubr.bf16.mxu1 %v5748_v54 }
 0x825   :  { %1983 = vmatprep.subr.bf16.mxu1 %v5070_v50 }
 0x828   :  { %1984 = vmatpush1.bf16.msra.mxu1 %v5077_v25 }
 0x829   :  { %1985 = vmatprep.subr.bf16.mxu1 %v5084_v34 }
 0x82c   :  { %1986 = vmatpush1.bf16.msra.mxu1 %v5090_v52 }
 0x82d   :  { %1987 = vmatprep.subr.bf16.mxu1 %v5096_v35 }
 0x830   :  { %1988 = vmatpush1.bf16.msra.mxu1 %v5102_v12 }
 0x831   :  { %1989 = vmatprep.subr.bf16.mxu1 %v5108_v36 }
 0x834   :  { %1990 = vmatpush1.bf16.msra.mxu1 %v5114_v58 }
 0x835   :  { %1991 = vmatprep.subr.bf16.mxu1 %v5120_v37 }
 0x838   :  { %1992 = vmatpush1.bf16.msra.mxu1 %v5126_v55 }
 0x839   :  { %1993 = vmatprep.subr.bf16.mxu1 %v5132_v24 }
 0x83c   :  { %1994 = vmatpush1.bf16.msra.mxu1 %v5138_v38 }
 0x83d   :  { %1995 = vmatprep.subr.bf16.mxu1 %v5144_v4 }
 0x840   :  { %1996 = vmatpush1.bf16.msra.mxu1 %v5150_v39 }
 0x841   :  { %2090 = vmatprep.subr.bf16.mxu1 %v5034_v46 }
 0x8c3   :  { %v1650_v3 = vpop.f32.mrf.mxu1 }
 0x8c4   :  { %v1651_v9 = vadd.f32 %v3090_v40, %v1650_v3  ;;  %v5755_v40 = vld [vmem:[#allocation17_spill] sm:$0xff]  ;;  %v5756_v3 = vld [vmem:[#allocation15_spill] sm:$0xff] }
 0x8c5   :  { %v3542_v63 = vpop.f32.mrf.mxu1 }
 0x8c6   :  { %v1656_v56 = vmax.f32 %v1651_v9, 0.0  ;;  %v375_v9 = vadd.f32 %v5756_v3, %v5755_v40 }
 0x8c7   :  { %v1653_v1 = vpop.f32.mrf.mxu1 }
 0x8c8   :  { %v1657_v60 = vpack.c.bf16 %v1656_v56, %v1656_v56 }
 0x8c9   :  { %v3543_v44 = vpop.f32.mrf.mxu1 }
 0x8ca   :  { %3553 = vmatmul.mubr.msk.bf16.vlgmr.msra.gmra.mxu0 %vm1697_vm2, %v1657_v60 }
 0x8cb   :  { %3557 = vmatpush3.bf16.msra.mxu0 %v5183_v2  ;;  %3572 = vmatprep.mubr.msk.bf16.mxu0 %vm4123_vm1, %v5747_v48 }
 0x8cc   :  { %3558 = vmatprep.subr.bf16.mxu0 %v5747_v48 }
 0x8cf   :  { %3559 = vmatpush3.bf16.msra.mxu0 %v5189_v45 }
 0x8d0   :  { %3560 = vmatprep.subr.bf16.mxu0 %v5747_v48 }
 0x8d3   :  { %3561 = vmatpush3.bf16.msra.mxu0 %v5198_v30 }
 0x8d4   :  { %3562 = vmatprep.subr.bf16.mxu0 %v5747_v48 }
 0x8d7   :  { %3563 = vmatpush3.bf16.msra.mxu0 %v5205_v8 }
 0x8d8   :  { %3564 = vmatprep.subr.bf16.mxu0 %v5747_v48 }
 0x8db   :  { %3565 = vmatpush3.bf16.msra.mxu0 %v5212_v15 }
 0x8dc   :  { %3566 = vmatprep.subr.bf16.mxu0 %v5747_v48 }
 0x8df   :  { %3567 = vmatpush3.bf16.msra.mxu0 %v5219_v16 }
 0x8e0   :  { %3568 = vmatprep.subr.bf16.mxu0 %v5747_v48 }
 0x8e3   :  { %v1907_v22 = vpop.f32.mrf.mxu1  ;;  %3569 = vmatpush3.bf16.msra.mxu0 %v5226_v41 }
 0x8e4   :  { %v1954_v28 = vadd.f32 %v1907_v22, %v302_v20  ;;  %3570 = vmatprep.subr.bf16.mxu0 %v5747_v48 }
 0x8e5   :  { %v1909_v29 = vpop.f32.mrf.mxu1 }
 0x8e6   :  { %v1961_v31 = vadd.f32 %v1909_v29, %v373_v27  ;;  %v3129_v33 = vmul.f32 -1.442695, %v1954_v28  ;;  %v5757_v28 = vld [vmem:[#allocation6_spill] sm:$0xff] }
 0x8e7   :  { %v1911_v21 = vpop.f32.mrf.mxu1  ;;  %3571 = vmatpush3.bf16.msra.mxu0 %v5235_v6 }
 0x8e8   :  { %3576 = vmatprep.subr.bf16.mxu0 %v5747_v48  ;;  %4025 = vpow2.f32 %v3129_v33  ;;  %v3130_v51 = vmul.f32 -1.442695, %v1961_v31 }
 0x8e9   :  { %v1912_v32 = vpop.f32.mrf.mxu1 }
 0x8ea   :  { %3573 = vmatmul.mubr.bf16.vlgmr.msra.gmra.mxu0 %v5065_v0  ;;  %4027 = vpow2.f32 %v3130_v51 }
 0x8eb   :  { %3577 = vmatpush3.bf16.msra.mxu0 %v5183_v2  ;;  %3592 = vmatprep.mubr.msk.bf16.mxu0 %vm4123_vm1, %v5747_v48 }
 0x8ec   :  { %3578 = vmatprep.subr.bf16.mxu0 %v5747_v48 }
 0x8ef   :  { %3579 = vmatpush3.bf16.msra.mxu0 %v5189_v45 }
 0x8f0   :  { %3580 = vmatprep.subr.bf16.mxu0 %v5747_v48 }
 0x8f3   :  { %3581 = vmatpush3.bf16.msra.mxu0 %v5198_v30 }
 0x8f4   :  { %3582 = vmatprep.subr.bf16.mxu0 %v5747_v48 }
 0x8f5   :  { %v4026_v49 = vpop.eup %4025 }
 0x8f6   :  { %v1958_v62 = vadd.f32 1.0, %v4026_v49 }
 0x8f7   :  { %3583 = vmatpush3.bf16.msra.mxu0 %v5205_v8  ;;  %v4028_v57 = vpop.eup %4027 }
 0x8f8   :  { %3584 = vmatprep.subr.bf16.mxu0 %v5747_v48  ;;  %4029 = vrcp.f32 %v1958_v62  ;;  %v1965_v43 = vadd.f32 1.0, %v4028_v57 }
 0x8fa   :  { %4031 = vrcp.f32 %v1965_v43 }
 0x8fb   :  { %3585 = vmatpush3.bf16.msra.mxu0 %v5212_v15 }
 0x8fc   :  { %3586 = vmatprep.subr.bf16.mxu0 %v5747_v48 }
 0x8ff   :  { %3587 = vmatpush3.bf16.msra.mxu0 %v5219_v16 }
 0x900   :  { %3588 = vmatprep.subr.bf16.mxu0 %v5747_v48 }
 0x903   :  { %3589 = vmatpush3.bf16.msra.mxu0 %v5226_v41 }
 0x904   :  { %3590 = vmatprep.subr.bf16.mxu0 %v5747_v48 }
 0x905   :  { %v4030_v0 = vpop.eup %4029 }
 0x907   :  { %3591 = vmatpush3.bf16.msra.mxu0 %v5235_v6  ;;  %v4032_v44 = vpop.eup %4031 }
 0x908   :  { %3596 = vmatprep.subr.bf16.mxu0 %v5747_v48  ;;  %v1972_v14 = vsub.f32 1.0, %v4032_v44  ;;  %v1974_v22 = vmul.f32 %v4032_v44, %v5056_v61 }
 0x98a   :  { %v1735_v13 = vpop.f32.mrf.mxu0 }
 0x98b   :  { %v1736_v19 = vadd.f32 %v3099_v7, %v1735_v13 }
 0x98c   :  { %v3554_v42 = vpop.f32.mrf.mxu0 }
 0x98d   :  { %1741 = vst [vmem:[%s5709_s13] sm:$0xff] %v1736_v19  ;;  %v5758_v42 = vld [vmem:[#allocation18_spill] sm:$0xff] }
 0x98e   :  { %v1738_v53 = vpop.f32.mrf.mxu0 }
 0x990   :  { %v3555_v5 = vpop.f32.mrf.mxu0 }
 0x9aa   :  { %v1948_v10 = vpop.f32.mrf.mxu0 }
 0x9ab   :  { %v1968_v47 = vadd.f32 %v5270_v11, %v1948_v10 }
 0x9ac   :  { %v3574_v17 = vpop.f32.mrf.mxu0 }
 0x9ad   :  { %v1969_v63 = vmul.f32 %v4030_v0, %v1968_v47  ;;  %v5759_v0 = vld [vmem:[#allocation19_spill] sm:$0xff] }
 0x9ae   :  { %v1951_v56 = vpop.f32.mrf.mxu0 }
 0x9af   :  { %v1970_v1 = vadd.f32 %v1969_v63, %v375_v9 }
 0x9b0   :  { %v3575_v60 = vpop.f32.mrf.mxu0 }
 0x9b1   :  { %4033 = vtanh.f32 %v1970_v1 }
 0x9be   :  { %v4034_v18 = vpop.eup %4033 }
 0x9bf   :  { %v1973_v20 = vmul.f32 %v4034_v18, %v1972_v14  ;;  %v5760_v18 = vld [vmem:[#allocation7_spill] sm:$0xff] }
 0x9c1   :  { %v5276_v23 = vadd.f32 %v1974_v22, %v1973_v20 }
 0x9c3   :  { %v1976_v26 = vpack.c.bf16 %v5276_v23, %v5276_v23 }
 0x9c5   :  { %1977 = vst [vmem:[#allocation3] sm:$0xf] %v1976_v26  ;;  %2014 = vmatmul.mubr.bf16.vlgmr.msra.gmra.mxu1 %v1976_v26  ;;  %3593 = vmatmul.mubr.bf16.vlgmr.msra.gmra.mxu0 %v1976_v26 }
 0x9c6   :  { %2091 = vmatpush1.bf16.msra.mxu1 %v5061_v59  ;;  %3597 = vmatpush3.bf16.msra.mxu0 %v5183_v2 }
 0x9c7   :  { %2092 = vmatprep.subr.bf16.mxu1 %v5070_v50  ;;  %3598 = vmatprep.subr.bf16.mxu0 %v5747_v48 }
 0x9c8   :  { %2122 = vmatprep.mubr.bf16.mxu1 %v5748_v54  ;;  %3612 = vmatprep.mubr.msk.bf16.mxu0 %vm4123_vm1, %v5747_v48 }
 0x9ca   :  { %2093 = vmatpush1.bf16.msra.mxu1 %v5077_v25  ;;  %3599 = vmatpush3.bf16.msra.mxu0 %v5189_v45 }
 0x9cb   :  { %2094 = vmatprep.subr.bf16.mxu1 %v5084_v34  ;;  %3600 = vmatprep.subr.bf16.mxu0 %v5747_v48 }
 0x9ce   :  { %2095 = vmatpush1.bf16.msra.mxu1 %v5090_v52  ;;  %3601 = vmatpush3.bf16.msra.mxu0 %v5198_v30 }
 0x9cf   :  { %2096 = vmatprep.subr.bf16.mxu1 %v5096_v35  ;;  %3602 = vmatprep.subr.bf16.mxu0 %v5747_v48 }
 0x9d2   :  { %2097 = vmatpush1.bf16.msra.mxu1 %v5102_v12  ;;  %3603 = vmatpush3.bf16.msra.mxu0 %v5205_v8 }
 0x9d3   :  { %2098 = vmatprep.subr.bf16.mxu1 %v5108_v36  ;;  %3604 = vmatprep.subr.bf16.mxu0 %v5747_v48 }
 0x9d6   :  { %2099 = vmatpush1.bf16.msra.mxu1 %v5114_v58  ;;  %3605 = vmatpush3.bf16.msra.mxu0 %v5212_v15 }
 0x9d7   :  { %2100 = vmatprep.subr.bf16.mxu1 %v5120_v37  ;;  %3606 = vmatprep.subr.bf16.mxu0 %v5747_v48 }
 0x9da   :  { %2101 = vmatpush1.bf16.msra.mxu1 %v5126_v55  ;;  %3607 = vmatpush3.bf16.msra.mxu0 %v5219_v16 }
 0x9db   :  { %2102 = vmatprep.subr.bf16.mxu1 %v5132_v24  ;;  %3608 = vmatprep.subr.bf16.mxu0 %v5747_v48 }
 0x9de   :  { %2103 = vmatpush1.bf16.msra.mxu1 %v5138_v38  ;;  %3609 = vmatpush3.bf16.msra.mxu0 %v5226_v41 }
 0x9df   :  { %2104 = vmatprep.subr.bf16.mxu1 %v5144_v4  ;;  %3610 = vmatprep.subr.bf16.mxu0 %v5747_v48 }
 0x9e2   :  { %2105 = vmatpush1.bf16.msra.mxu1 %v5150_v39  ;;  %3611 = vmatpush3.bf16.msra.mxu0 %v5235_v6 }
 0x9e3   :  { %2199 = vmatprep.subr.bf16.mxu1 %v5034_v46  ;;  %3616 = vmatprep.subr.bf16.mxu0 %v5747_v48 }
 0xa85   :  { %v2015_v61 = vpop.f32.mrf.mxu1  ;;  %v2056_v27 = vpop.f32.mrf.mxu0 }
 0xa86   :  { %v2062_v29 = vadd.f32 %v2015_v61, %v5757_v28  ;;  %v2076_v43 = vadd.f32 %v5270_v11, %v2056_v27 }
 0xa87   :  { %v2017_v31 = vpop.f32.mrf.mxu1  ;;  %v3594_v21 = vpop.f32.mrf.mxu0 }
 0xa88   :  { %v3131_v32 = vmul.f32 -1.442695, %v2062_v29  ;;  %v2069_v53 = vadd.f32 %v2017_v31, %v5758_v42  ;;  %v5761_v31 = vld [vmem:[#allocation20_spill] sm:$0xff] }
 0xa89   :  { %v2019_v33 = vpop.f32.mrf.mxu1  ;;  %v2059_v7 = vpop.f32.mrf.mxu0 }
 0xa8a   :  { %4035 = vpow2.f32 %v3131_v32  ;;  %v3132_v5 = vmul.f32 -1.442695, %v2069_v53 }
 0xa8b   :  { %v2020_v13 = vpop.f32.mrf.mxu1  ;;  %v3595_v19 = vpop.f32.mrf.mxu0 }
 0xa8c   :  { %4037 = vpow2.f32 %v3132_v5 }
 0xa97   :  { %v4036_v51 = vpop.eup %4035 }
 0xa98   :  { %v2066_v49 = vadd.f32 1.0, %v4036_v51  ;;  %v5762_v51 = vld [vmem:[#allocation21_spill] sm:$0xff] }
 0xa99   :  { %v4038_v62 = vpop.eup %4037 }
 0xa9a   :  { %4039 = vrcp.f32 %v2066_v49  ;;  %v2073_v57 = vadd.f32 1.0, %v4038_v62 }
 0xa9c   :  { %4041 = vrcp.f32 %v2073_v57 }
 0xaa7   :  { %v4040_v10 = vpop.eup %4039 }
 0xaa8   :  { %v2077_v47 = vmul.f32 %v4040_v10, %v2076_v43 }
 0xaa9   :  { %v4042_v40 = vpop.eup %4041 }
 0xaaa   :  { %v2078_v17 = vadd.f32 %v2077_v47, %v5759_v0  ;;  %v2080_v3 = vsub.f32 1.0, %v4042_v40  ;;  %v2082_v56 = vmul.f32 %v4042_v40, %v5276_v23 }
 0xaac   :  { %4043 = vtanh.f32 %v2078_v17 }
 0xab9   :  { %v4044_v9 = vpop.eup %4043 }
 0xaba   :  { %v2081_v63 = vmul.f32 %v4044_v9, %v2080_v3  ;;  %v5763_v9 = vld [vmem:[#allocation8_spill] sm:$0xff] }
 0xabc   :  { %v5320_v1 = vadd.f32 %v2082_v56, %v2081_v63 }
 0xabe   :  { %v2084_v60 = vpack.c.bf16 %v5320_v1, %v5320_v1 }
 0xac0   :  { %2086 = vst [vmem:[#allocation3 + $0x4] sm:$0xf] %v2084_v60  ;;  %2123 = vmatmul.mubr.bf16.vlgmr.msra.gmra.mxu1 %v2084_v60  ;;  %3613 = vmatmul.mubr.bf16.vlgmr.msra.gmra.mxu0 %v2084_v60 }
 0xac1   :  { %2200 = vmatpush1.bf16.msra.mxu1 %v5061_v59  ;;  %3617 = vmatpush3.bf16.msra.mxu0 %v5183_v2 }
 0xac2   :  { %2201 = vmatprep.subr.bf16.mxu1 %v5070_v50  ;;  %3618 = vmatprep.subr.bf16.mxu0 %v5747_v48 }
 0xac3   :  { %2231 = vmatprep.mubr.bf16.mxu1 %v5748_v54  ;;  %3632 = vmatprep.mubr.msk.bf16.mxu0 %vm4123_vm1, %v5747_v48 }
 0xac5   :  { %2202 = vmatpush1.bf16.msra.mxu1 %v5077_v25  ;;  %3619 = vmatpush3.bf16.msra.mxu0 %v5189_v45 }
 0xac6   :  { %2203 = vmatprep.subr.bf16.mxu1 %v5084_v34  ;;  %3620 = vmatprep.subr.bf16.mxu0 %v5747_v48 }
 0xac9   :  { %2204 = vmatpush1.bf16.msra.mxu1 %v5090_v52  ;;  %3621 = vmatpush3.bf16.msra.mxu0 %v5198_v30 }
 0xaca   :  { %2205 = vmatprep.subr.bf16.mxu1 %v5096_v35  ;;  %3622 = vmatprep.subr.bf16.mxu0 %v5747_v48 }
 0xacd   :  { %2206 = vmatpush1.bf16.msra.mxu1 %v5102_v12  ;;  %3623 = vmatpush3.bf16.msra.mxu0 %v5205_v8 }
 0xace   :  { %2207 = vmatprep.subr.bf16.mxu1 %v5108_v36  ;;  %3624 = vmatprep.subr.bf16.mxu0 %v5747_v48 }
 0xad1   :  { %2208 = vmatpush1.bf16.msra.mxu1 %v5114_v58  ;;  %3625 = vmatpush3.bf16.msra.mxu0 %v5212_v15 }
 0xad2   :  { %2209 = vmatprep.subr.bf16.mxu1 %v5120_v37  ;;  %3626 = vmatprep.subr.bf16.mxu0 %v5747_v48 }
 0xad5   :  { %2210 = vmatpush1.bf16.msra.mxu1 %v5126_v55  ;;  %3627 = vmatpush3.bf16.msra.mxu0 %v5219_v16 }
 0xad6   :  { %2211 = vmatprep.subr.bf16.mxu1 %v5132_v24  ;;  %3628 = vmatprep.subr.bf16.mxu0 %v5747_v48 }
 0xad9   :  { %2212 = vmatpush1.bf16.msra.mxu1 %v5138_v38  ;;  %3629 = vmatpush3.bf16.msra.mxu0 %v5226_v41 }
 0xada   :  { %2213 = vmatprep.subr.bf16.mxu1 %v5144_v4  ;;  %3630 = vmatprep.subr.bf16.mxu0 %v5747_v48 }
 0xadd   :  { %2214 = vmatpush1.bf16.msra.mxu1 %v5150_v39  ;;  %3631 = vmatpush3.bf16.msra.mxu0 %v5235_v6 }
 0xade   :  { %2308 = vmatprep.subr.bf16.mxu1 %v5034_v46  ;;  %3636 = vmatprep.subr.bf16.mxu0 %v5747_v48 }
 0xb80   :  { %v2124_v44 = vpop.f32.mrf.mxu1  ;;  %v2165_v14 = vpop.f32.mrf.mxu0 }
 0xb81   :  { %v2171_v20 = vadd.f32 %v2124_v44, %v5760_v18  ;;  %v2185_v42 = vadd.f32 %v5270_v11, %v2165_v14 }
 0xb82   :  { %v2126_v22 = vpop.f32.mrf.mxu1  ;;  %v3614_v23 = vpop.f32.mrf.mxu0 }
 0xb83   :  { %v3133_v26 = vmul.f32 -1.442695, %v2171_v20  ;;  %v2178_v21 = vadd.f32 %v2126_v22, %v5761_v31  ;;  %v5764_v22 = vld [vmem:[#allocation22_spill] sm:$0xff] }
 0xb84   :  { %v2128_v61 = vpop.f32.mrf.mxu1  ;;  %v2168_v27 = vpop.f32.mrf.mxu0 }
 0xb85   :  { %4045 = vpow2.f32 %v3133_v26  ;;  %v3134_v32 = vmul.f32 -1.442695, %v2178_v21 }
 0xb86   :  { %v2129_v28 = vpop.f32.mrf.mxu1  ;;  %v3615_v29 = vpop.f32.mrf.mxu0 }
 0xb87   :  { %4047 = vpow2.f32 %v3134_v32 }
 0xb92   :  { %v4046_v33 = vpop.eup %4045 }
 0xb93   :  { %v2175_v7 = vadd.f32 1.0, %v4046_v33  ;;  %v5765_v33 = vld [vmem:[#allocation23_spill] sm:$0xff] }
 0xb94   :  { %v4048_v13 = vpop.eup %4047 }
 0xb95   :  { %4049 = vrcp.f32 %v2175_v7  ;;  %v2182_v19 = vadd.f32 1.0, %v4048_v13 }
 0xb97   :  { %4051 = vrcp.f32 %v2182_v19 }
 0xba2   :  { %v4050_v53 = vpop.eup %4049 }
 0xba3   :  { %v2186_v5 = vmul.f32 %v4050_v53, %v2185_v42 }
 0xba4   :  { %v4052_v62 = vpop.eup %4051 }
 0xba5   :  { %v2187_v49 = vadd.f32 %v2186_v5, %v5762_v51  ;;  %v2189_v57 = vsub.f32 1.0, %v4052_v62  ;;  %v2191_v47 = vmul.f32 %v4052_v62, %v5320_v1 }
 0xba7   :  { %4053 = vtanh.f32 %v2187_v49 }
 0xbb4   :  { %v4054_v43 = vpop.eup %4053 }
 0xbb5   :  { %v2190_v10 = vmul.f32 %v4054_v43, %v2189_v57  ;;  %v5766_v43 = vld [vmem:[#allocation9_spill] sm:$0xff] }
 0xbb7   :  { %v5364_v0 = vadd.f32 %v2191_v47, %v2190_v10 }
 0xbb9   :  { %v2193_v17 = vpack.c.bf16 %v5364_v0, %v5364_v0 }
 0xbbb   :  { %2195 = vst [vmem:[#allocation3 + $0x8] sm:$0xf] %v2193_v17  ;;  %2232 = vmatmul.mubr.bf16.vlgmr.msra.gmra.mxu1 %v2193_v17  ;;  %3633 = vmatmul.mubr.bf16.vlgmr.msra.gmra.mxu0 %v2193_v17 }
 0xbbc   :  { %2309 = vmatpush1.bf16.msra.mxu1 %v5061_v59  ;;  %3637 = vmatpush3.bf16.msra.mxu0 %v5183_v2 }
 0xbbd   :  { %2310 = vmatprep.subr.bf16.mxu1 %v5070_v50  ;;  %3638 = vmatprep.subr.bf16.mxu0 %v5747_v48 }
 0xbbe   :  { %2340 = vmatprep.mubr.bf16.mxu1 %v5748_v54  ;;  %3652 = vmatprep.mubr.msk.bf16.mxu0 %vm4123_vm1, %v5747_v48 }
 0xbc0   :  { %2311 = vmatpush1.bf16.msra.mxu1 %v5077_v25  ;;  %3639 = vmatpush3.bf16.msra.mxu0 %v5189_v45 }
 0xbc1   :  { %2312 = vmatprep.subr.bf16.mxu1 %v5084_v34  ;;  %3640 = vmatprep.subr.bf16.mxu0 %v5747_v48 }
 0xbc4   :  { %2313 = vmatpush1.bf16.msra.mxu1 %v5090_v52  ;;  %3641 = vmatpush3.bf16.msra.mxu0 %v5198_v30 }
 0xbc5   :  { %2314 = vmatprep.subr.bf16.mxu1 %v5096_v35  ;;  %3642 = vmatprep.subr.bf16.mxu0 %v5747_v48 }
 0xbc8   :  { %2315 = vmatpush1.bf16.msra.mxu1 %v5102_v12  ;;  %3643 = vmatpush3.bf16.msra.mxu0 %v5205_v8 }
 0xbc9   :  { %2316 = vmatprep.subr.bf16.mxu1 %v5108_v36  ;;  %3644 = vmatprep.subr.bf16.mxu0 %v5747_v48 }
 0xbcc   :  { %2317 = vmatpush1.bf16.msra.mxu1 %v5114_v58  ;;  %3645 = vmatpush3.bf16.msra.mxu0 %v5212_v15 }
 0xbcd   :  { %2318 = vmatprep.subr.bf16.mxu1 %v5120_v37  ;;  %3646 = vmatprep.subr.bf16.mxu0 %v5747_v48 }
 0xbd0   :  { %2319 = vmatpush1.bf16.msra.mxu1 %v5126_v55  ;;  %3647 = vmatpush3.bf16.msra.mxu0 %v5219_v16 }
 0xbd1   :  { %2320 = vmatprep.subr.bf16.mxu1 %v5132_v24  ;;  %3648 = vmatprep.subr.bf16.mxu0 %v5747_v48 }
 0xbd4   :  { %2321 = vmatpush1.bf16.msra.mxu1 %v5138_v38  ;;  %3649 = vmatpush3.bf16.msra.mxu0 %v5226_v41 }
 0xbd5   :  { %2322 = vmatprep.subr.bf16.mxu1 %v5144_v4  ;;  %3650 = vmatprep.subr.bf16.mxu0 %v5747_v48 }
 0xbd8   :  { %2323 = vmatpush1.bf16.msra.mxu1 %v5150_v39  ;;  %3651 = vmatpush3.bf16.msra.mxu0 %v5235_v6 }
 0xbd9   :  { %2417 = vmatprep.subr.bf16.mxu1 %v5034_v46  ;;  %3656 = vmatprep.subr.bf16.mxu0 %v5747_v48 }
 0xc7b   :  { %v2233_v40 = vpop.f32.mrf.mxu1  ;;  %v2274_v3 = vpop.f32.mrf.mxu0 }
 0xc7c   :  { %v2280_v63 = vadd.f32 %v2233_v40, %v5763_v9  ;;  %v2294_v31 = vadd.f32 %v5270_v11, %v2274_v3 }
 0xc7d   :  { %v2235_v56 = vpop.f32.mrf.mxu1  ;;  %v3634_v1 = vpop.f32.mrf.mxu0 }
 0xc7e   :  { %v3135_v60 = vmul.f32 -1.442695, %v2280_v63  ;;  %v2287_v23 = vadd.f32 %v2235_v56, %v5764_v22  ;;  %v5767_v56 = vld [vmem:[#allocation24_spill] sm:$0xff] }
 0xc7f   :  { %v2237_v44 = vpop.f32.mrf.mxu1  ;;  %v2277_v14 = vpop.f32.mrf.mxu0 }
 0xc80   :  { %4055 = vpow2.f32 %v3135_v60  ;;  %v3136_v26 = vmul.f32 -1.442695, %v2287_v23 }
 0xc81   :  { %v2238_v18 = vpop.f32.mrf.mxu1  ;;  %v3635_v20 = vpop.f32.mrf.mxu0 }
 0xc82   :  { %4057 = vpow2.f32 %v3136_v26  ;;  %v5768_v26 = vld [vmem:[#allocation25_spill] sm:$0xff] }
 0xc8d   :  { %v4056_v61 = vpop.eup %4055 }
 0xc8e   :  { %v2284_v27 = vadd.f32 1.0, %v4056_v61 }
 0xc8f   :  { %v4058_v28 = vpop.eup %4057 }
 0xc90   :  { %4059 = vrcp.f32 %v2284_v27  ;;  %v2291_v29 = vadd.f32 1.0, %v4058_v28 }
 0xc92   :  { %4061 = vrcp.f32 %v2291_v29 }
 0xc9d   :  { %v4060_v21 = vpop.eup %4059 }
 0xc9e   :  { %v2295_v32 = vmul.f32 %v4060_v21, %v2294_v31 }
 0xc9f   :  { %v4062_v13 = vpop.eup %4061 }
 0xca0   :  { %v2296_v7 = vadd.f32 %v2295_v32, %v5765_v33  ;;  %v2298_v19 = vsub.f32 1.0, %v4062_v13  ;;  %v2300_v5 = vmul.f32 %v4062_v13, %v5364_v0 }
 0xca2   :  { %4063 = vtanh.f32 %v2296_v7 }
 0xcaf   :  { %v4064_v42 = vpop.eup %4063 }
 0xcb0   :  { %v2299_v53 = vmul.f32 %v4064_v42, %v2298_v19 }
 0xcb2   :  { %v5408_v51 = vadd.f32 %v2300_v5, %v2299_v53 }
 0xcb4   :  { %v2302_v49 = vpack.c.bf16 %v5408_v51, %v5408_v51 }
 0xcb6   :  { %2304 = vst [vmem:[#allocation3 + $0xc] sm:$0xf] %v2302_v49  ;;  %2341 = vmatmul.mubr.bf16.vlgmr.msra.gmra.mxu1 %v2302_v49  ;;  %3653 = vmatmul.mubr.bf16.vlgmr.msra.gmra.mxu0 %v2302_v49  ;;  %v5510_v49 = vld [vmem:[%s5711_s7 + $0x30] sm:$0xff]  }
 0xcb7   :  { %2418 = vmatpush1.bf16.msra.mxu1 %v5061_v59  ;;  %3657 = vmatpush3.bf16.msra.mxu0 %v5183_v2 }
 0xcb8   :  { %2419 = vmatprep.subr.bf16.mxu1 %v5070_v50  ;;  %3658 = vmatprep.subr.bf16.mxu0 %v5747_v48 }
 0xcb9   :  { %2449 = vmatprep.mubr.bf16.mxu1 %v5748_v54  ;;  %3672 = vmatprep.mubr.msk.bf16.mxu0 %vm4123_vm1, %v5747_v48 }
 0xcbb   :  { %2420 = vmatpush1.bf16.msra.mxu1 %v5077_v25  ;;  %3659 = vmatpush3.bf16.msra.mxu0 %v5189_v45 }
 0xcbc   :  { %2421 = vmatprep.subr.bf16.mxu1 %v5084_v34  ;;  %3660 = vmatprep.subr.bf16.mxu0 %v5747_v48 }
 0xcbf   :  { %2422 = vmatpush1.bf16.msra.mxu1 %v5090_v52  ;;  %3661 = vmatpush3.bf16.msra.mxu0 %v5198_v30 }
 0xcc0   :  { %2423 = vmatprep.subr.bf16.mxu1 %v5096_v35  ;;  %3662 = vmatprep.subr.bf16.mxu0 %v5747_v48 }
 0xcc3   :  { %2424 = vmatpush1.bf16.msra.mxu1 %v5102_v12  ;;  %3663 = vmatpush3.bf16.msra.mxu0 %v5205_v8 }
 0xcc4   :  { %2425 = vmatprep.subr.bf16.mxu1 %v5108_v36  ;;  %3664 = vmatprep.subr.bf16.mxu0 %v5747_v48 }
 0xcc7   :  { %2426 = vmatpush1.bf16.msra.mxu1 %v5114_v58  ;;  %3665 = vmatpush3.bf16.msra.mxu0 %v5212_v15 }
 0xcc8   :  { %2427 = vmatprep.subr.bf16.mxu1 %v5120_v37  ;;  %3666 = vmatprep.subr.bf16.mxu0 %v5747_v48 }
 0xccb   :  { %2428 = vmatpush1.bf16.msra.mxu1 %v5126_v55  ;;  %3667 = vmatpush3.bf16.msra.mxu0 %v5219_v16 }
 0xccc   :  { %2429 = vmatprep.subr.bf16.mxu1 %v5132_v24  ;;  %3668 = vmatprep.subr.bf16.mxu0 %v5747_v48 }
 0xccf   :  { %2430 = vmatpush1.bf16.msra.mxu1 %v5138_v38  ;;  %3669 = vmatpush3.bf16.msra.mxu0 %v5226_v41 }
 0xcd0   :  { %2431 = vmatprep.subr.bf16.mxu1 %v5144_v4  ;;  %3670 = vmatprep.subr.bf16.mxu0 %v5747_v48 }
 0xcd3   :  { %2432 = vmatpush1.bf16.msra.mxu1 %v5150_v39  ;;  %3671 = vmatpush3.bf16.msra.mxu0 %v5235_v6 }
 0xcd4   :  { %2526 = vmatprep.subr.bf16.mxu1 %v5034_v46  ;;  %3676 = vmatprep.subr.bf16.mxu0 %v5747_v48 }
 0xd76   :  { %v2342_v62 = vpop.f32.mrf.mxu1  ;;  %v2383_v57 = vpop.f32.mrf.mxu0 }
 0xd77   :  { %v2389_v10 = vadd.f32 %v2342_v62, %v5766_v43  ;;  %v2403_v20 = vadd.f32 %v5270_v11, %v2383_v57  ;;  %v5523_v62 = vld [vmem:[%s5711_s7 + $0x28] sm:$0xff]   ;;  %v5532_v57 = vld [vmem:[%s5711_s7 + $0x20] sm:$0xff]   ;;  %v5541_v43 = vld [vmem:[%s5711_s7 + $0x18] sm:$0xff]  }
 0xd78   :  { %v2344_v47 = vpop.f32.mrf.mxu1  ;;  %v3654_v0 = vpop.f32.mrf.mxu0 }
 0xd79   :  { %v3137_v17 = vmul.f32 -1.442695, %v2389_v10  ;;  %v2396_v1 = vadd.f32 %v2344_v47, %v5767_v56  ;;  %v5550_v10 = vld [vmem:[%s5711_s7 + $0x10] sm:$0xff]   ;;  %v5559_v47 = vld [vmem:[%s5711_s7 + $0x8] sm:$0xff]   ;;  %v5568_v0 = vld [vmem:[%s5711_s7] sm:$0xff]  }
 0xd7a   :  { %v2346_v40 = vpop.f32.mrf.mxu1  ;;  %v2386_v3 = vpop.f32.mrf.mxu0 }
 0xd7b   :  { %4065 = vpow2.f32 %v3137_v17  ;;  %v3138_v60 = vmul.f32 -1.442695, %v2396_v1  ;;  %v2650_v17 = vld [vmem:[#allocation3] sm:$0xf]  ;;  %v2747_v40 = vld [vmem:[#allocation3 + $0x4] sm:$0xf] }
 0xd7c   :  { %v2347_v9 = vpop.f32.mrf.mxu1  ;;  %v3655_v63 = vpop.f32.mrf.mxu0  ;;  %v2790_v3 = vld [vmem:[#allocation3 + $0x8] sm:$0xf] }
 0xd7d   :  { %4067 = vpow2.f32 %v3138_v60  ;;  %v2833_v9 = vld [vmem:[#allocation3 + $0xc] sm:$0xf]  ;;  %v5772_v60 = vld [vmem:[#allocation11_spill] sm:$0xff] }
 0xd88   :  { %v4066_v44 = vpop.eup %4065 }
 0xd89   :  { %v2393_v46 = vadd.f32 1.0, %v4066_v44 }
 0xd8a   :  { %v4068_v14 = vpop.eup %4067 }
 0xd8b   :  { %4069 = vrcp.f32 %v2393_v46  ;;  %v2400_v18 = vadd.f32 1.0, %v4068_v14 }
 0xd8d   :  { %4071 = vrcp.f32 %v2400_v18 }
 0xd98   :  { %v4070_v22 = vpop.eup %4069 }
 0xd99   :  { %v2404_v23 = vmul.f32 %v4070_v22, %v2403_v20 }
 0xd9a   :  { %v4072_v27 = vpop.eup %4071 }
 0xd9b   :  { %v2405_v61 = vadd.f32 %v2404_v23, %v5768_v26  ;;  %v2407_v28 = vsub.f32 1.0, %v4072_v27  ;;  %v2409_v21 = vmul.f32 %v4072_v27, %v5408_v51  ;;  %v5501_v51 = vld [vmem:[%s5711_s7 + $0x38] sm:$0xff]  }
 0xd9d   :  { %4073 = vtanh.f32 %v2405_v61  ;;  %v5773_v61 = vld [vmem:[#allocation28_spill] sm:$0xff] }
 0xdaa   :  { %v4074_v29 = vpop.eup %4073 }
 0xdab   :  { %v2408_v31 = vmul.f32 %v4074_v29, %v2407_v28 }
 0xdad   :  { %v5452_v32 = vadd.f32 %v2409_v21, %v2408_v31  ;;  %v3143_v21 = vld [vmem:[%s5713_s8] ss:$0 sm:$0xff] }
 0xdaf   :  { %v2411_v33 = vpack.c.bf16 %v5452_v32, %v5452_v32 }
 0xdb1   :  { %2413 = vst [vmem:[#allocation3 + $0x10] sm:$0xf] %v2411_v33  ;;  %2450 = vmatmul.mubr.bf16.vlgmr.msra.gmra.mxu1 %v2411_v33  ;;  %3673 = vmatmul.mubr.bf16.vlgmr.msra.gmra.mxu0 %v2411_v33 }
 0xdb2   :  { %2527 = vmatpush1.bf16.msra.mxu1 %v5061_v59  ;;  %3677 = vmatpush3.bf16.msra.mxu0 %v5183_v2 }
 0xdb3   :  { %2528 = vmatprep.subr.bf16.mxu1 %v5070_v50  ;;  %3678 = vmatprep.subr.bf16.mxu0 %v5747_v48 }
 0xdb4   :  { %2558 = vmatprep.mubr.bf16.mxu1 %v5748_v54  ;;  %3692 = vmatprep.mubr.msk.bf16.mxu0 %vm4123_vm1, %v5747_v48 }
 0xdb6   :  { %2529 = vmatpush1.bf16.msra.mxu1 %v5077_v25  ;;  %3679 = vmatpush3.bf16.msra.mxu0 %v5189_v45  ;;  %v5769_v25 = vld [vmem:[#allocation10_spill] sm:$0xff] }
 0xdb7   :  { %2530 = vmatprep.subr.bf16.mxu1 %v5084_v34  ;;  %3680 = vmatprep.subr.bf16.mxu0 %v5747_v48 }
 0xdb8   :  { %v2876_v63 = vld [vmem:[#allocation3 + $0x10] sm:$0xf] }
 0xdba   :  { %2531 = vmatpush1.bf16.msra.mxu1 %v5090_v52  ;;  %3681 = vmatpush3.bf16.msra.mxu0 %v5198_v30 }
 0xdbb   :  { %2532 = vmatprep.subr.bf16.mxu1 %v5096_v35  ;;  %3682 = vmatprep.subr.bf16.mxu0 %v5747_v48 }
 0xdbe   :  { %2533 = vmatpush1.bf16.msra.mxu1 %v5102_v12  ;;  %3683 = vmatpush3.bf16.msra.mxu0 %v5205_v8 }
 0xdbf   :  { %2534 = vmatprep.subr.bf16.mxu1 %v5108_v36  ;;  %3684 = vmatprep.subr.bf16.mxu0 %v5747_v48 }
 0xdc2   :  { %2535 = vmatpush1.bf16.msra.mxu1 %v5114_v58  ;;  %3685 = vmatpush3.bf16.msra.mxu0 %v5212_v15 }
 0xdc3   :  { %2536 = vmatprep.subr.bf16.mxu1 %v5120_v37  ;;  %3686 = vmatprep.subr.bf16.mxu0 %v5747_v48 }
 0xdc6   :  { %2537 = vmatpush1.bf16.msra.mxu1 %v5126_v55  ;;  %3687 = vmatpush3.bf16.msra.mxu0 %v5219_v16 }
 0xdc7   :  { %2538 = vmatprep.subr.bf16.mxu1 %v5132_v24  ;;  %3688 = vmatprep.subr.bf16.mxu0 %v5747_v48  ;;  %v5770_v24 = vld [vmem:[#allocation26_spill] sm:$0xff] }
 0xdca   :  { %2539 = vmatpush1.bf16.msra.mxu1 %v5138_v38  ;;  %3689 = vmatpush3.bf16.msra.mxu0 %v5226_v41  ;;  %v5771_v41 = vld [vmem:[#allocation27_spill] sm:$0xff] }
 0xdcb   :  { %2540 = vmatprep.subr.bf16.mxu1 %v5144_v4  ;;  %3690 = vmatprep.subr.bf16.mxu0 %v5747_v48 }
 0xdce   :  { %2541 = vmatpush1.bf16.msra.mxu1 %v5150_v39  ;;  %3691 = vmatpush3.bf16.msra.mxu0 %v5235_v6 }
 0xdcf   :  { %3696 = vmatprep.subr.bf16.mxu1 %v5747_v48  ;;  %3716 = vmatprep.subr.bf16.mxu0 %v5747_v48 }
 0xe71   :  { %v2451_v59 = vpop.f32.mrf.mxu1  ;;  %v2492_v50 = vpop.f32.mrf.mxu0 }
 0xe72   :  { %v2498_v34 = vadd.f32 %v2451_v59, %v5769_v25  ;;  %v2512_v8 = vadd.f32 %v5270_v11, %v2492_v50  ;;  %v4120_v50 = vld [vmem:[%s5710_s6] ss:$0 sm:$0xff] }
 0xe73   :  { %v2453_v52 = vpop.f32.mrf.mxu1  ;;  %v3674_v35 = vpop.f32.mrf.mxu0 }
 0xe74   :  { %v3139_v12 = vmul.f32 -1.442695, %v2498_v34  ;;  %v2505_v38 = vadd.f32 %v2453_v52, %v5770_v24 }
 0xe75   :  { %v2455_v36 = vpop.f32.mrf.mxu1  ;;  %v2495_v58 = vpop.f32.mrf.mxu0 }
 0xe76   :  { %4075 = vpow2.f32 %v3139_v12  ;;  %v3140_v4 = vmul.f32 -1.442695, %v2505_v38 }
 0xe77   :  { %v2456_v37 = vpop.f32.mrf.mxu1  ;;  %v3675_v55 = vpop.f32.mrf.mxu0 }
 0xe78   :  { %4077 = vpow2.f32 %v3140_v4  ;;  %v5774_v4 = vld [vmem:[#allocation29_spill] sm:$0xff] }
 0xe83   :  { %v4076_v39 = vpop.eup %4075 }
 0xe84   :  { %v2502_v2 = vadd.f32 1.0, %v4076_v39 }
 0xe85   :  { %v4078_v45 = vpop.eup %4077 }
 0xe86   :  { %4079 = vrcp.f32 %v2502_v2  ;;  %v2509_v30 = vadd.f32 1.0, %v4078_v45 }
 0xe88   :  { %4081 = vrcp.f32 %v2509_v30 }
 0xe93   :  { %v4080_v15 = vpop.eup %4079 }
 0xe94   :  { %v2513_v16 = vmul.f32 %v4080_v15, %v2512_v8 }
 0xe95   :  { %v4082_v7 = vpop.eup %4081 }
 0xe96   :  { %v2514_v6 = vadd.f32 %v2513_v16, %v5771_v41  ;;  %v2516_v13 = vsub.f32 1.0, %v4082_v7  ;;  %v2518_v53 = vmul.f32 %v4082_v7, %v5452_v32 }
 0xe98   :  { %4083 = vtanh.f32 %v2514_v6 }
 0xea5   :  { %v4084_v19 = vpop.eup %4083 }
 0xea6   :  { %v2517_v42 = vmul.f32 %v4084_v19, %v2516_v13 }
 0xea8   :  { %v5496_v5 = vadd.f32 %v2518_v53, %v2517_v42 }
 0xeaa   :  { %v2520_v11 = vpack.c.bf16 %v5496_v5, %v5496_v5 }
 0xeac   :  { %2522 = vst [vmem:[#allocation3 + $0x14] sm:$0xf] %v2520_v11  ;;  %2559 = vmatmul.mubr.bf16.vlgmr.msra.gmra.mxu1 %v2520_v11  ;;  %3693 = vmatmul.mubr.bf16.vlgmr.msra.gmra.mxu0 %v2520_v11 }
 0xead   :  { %3697 = vmatpush3.bf16.msra.mxu1 %v5501_v51  ;;  %3717 = vmatpush3.bf16.msra.mxu0 %v5501_v51 }
 0xeae   :  { %3698 = vmatprep.subr.bf16.mxu1 %v5747_v48  ;;  %3718 = vmatprep.subr.bf16.mxu0 %v5747_v48 }
 0xeaf   :  { %3712 = vmatprep.mubr.msk.bf16.mxu1 %vm4123_vm1, %v5747_v48  ;;  %3732 = vmatprep.mubr.msk.bf16.mxu0 %vm4123_vm1, %v5747_v48 }
 0xeb1   :  { %3699 = vmatpush3.bf16.msra.mxu1 %v5510_v49  ;;  %3719 = vmatpush3.bf16.msra.mxu0 %v5510_v49 }
 0xeb2   :  { %3700 = vmatprep.subr.bf16.mxu1 %v5747_v48  ;;  %3720 = vmatprep.subr.bf16.mxu0 %v5747_v48 }
 0xeb3   :  { %v2919_v56 = vld [vmem:[#allocation3 + $0x14] sm:$0xf] }
 0xeb5   :  { %3701 = vmatpush3.bf16.msra.mxu1 %v5523_v62  ;;  %3721 = vmatpush3.bf16.msra.mxu0 %v5523_v62 }
 0xeb6   :  { %3702 = vmatprep.subr.bf16.mxu1 %v5747_v48  ;;  %3722 = vmatprep.subr.bf16.mxu0 %v5747_v48 }
 0xeb9   :  { %3703 = vmatpush3.bf16.msra.mxu1 %v5532_v57  ;;  %3723 = vmatpush3.bf16.msra.mxu0 %v5532_v57 }
 0xeba   :  { %3704 = vmatprep.subr.bf16.mxu1 %v5747_v48  ;;  %3724 = vmatprep.subr.bf16.mxu0 %v5747_v48 }
 0xebd   :  { %3705 = vmatpush3.bf16.msra.mxu1 %v5541_v43  ;;  %3725 = vmatpush3.bf16.msra.mxu0 %v5541_v43 }
 0xebe   :  { %3706 = vmatprep.subr.bf16.mxu1 %v5747_v48  ;;  %3726 = vmatprep.subr.bf16.mxu0 %v5747_v48 }
 0xec1   :  { %3707 = vmatpush3.bf16.msra.mxu1 %v5550_v10  ;;  %3727 = vmatpush3.bf16.msra.mxu0 %v5550_v10 }
 0xec2   :  { %3708 = vmatprep.subr.bf16.mxu1 %v5747_v48  ;;  %3728 = vmatprep.subr.bf16.mxu0 %v5747_v48 }
 0xec5   :  { %3709 = vmatpush3.bf16.msra.mxu1 %v5559_v47  ;;  %3729 = vmatpush3.bf16.msra.mxu0 %v5559_v47 }
 0xec6   :  { %3710 = vmatprep.subr.bf16.mxu1 %v5747_v48  ;;  %3730 = vmatprep.subr.bf16.mxu0 %v5747_v48 }
 0xec9   :  { %3711 = vmatpush3.bf16.msra.mxu1 %v5568_v0  ;;  %3731 = vmatpush3.bf16.msra.mxu0 %v5568_v0 }
 0xeca   :  { %3736 = vmatprep.subr.bf16.mxu1 %v5747_v48  ;;  %3756 = vmatprep.subr.bf16.mxu0 %v5747_v48 }
 0xecc   :  { %3713 = vmatmul.mubr.bf16.vlgmr.msra.gmra.mxu1 %v2650_v17  ;;  %3733 = vmatmul.mubr.bf16.vlgmr.msra.gmra.mxu0 %v2747_v40 }
 0xecd   :  { %3737 = vmatpush3.bf16.msra.mxu1 %v5501_v51  ;;  %3757 = vmatpush3.bf16.msra.mxu0 %v5501_v51 }
 0xece   :  { %3738 = vmatprep.subr.bf16.mxu1 %v5747_v48  ;;  %3758 = vmatprep.subr.bf16.mxu0 %v5747_v48 }
 0xecf   :  { %3752 = vmatprep.mubr.msk.bf16.mxu1 %vm4123_vm1, %v5747_v48  ;;  %3772 = vmatprep.mubr.msk.bf16.mxu0 %vm4123_vm1, %v5747_v48 }
 0xed1   :  { %3739 = vmatpush3.bf16.msra.mxu1 %v5510_v49  ;;  %3759 = vmatpush3.bf16.msra.mxu0 %v5510_v49 }
 0xed2   :  { %3740 = vmatprep.subr.bf16.mxu1 %v5747_v48  ;;  %3760 = vmatprep.subr.bf16.mxu0 %v5747_v48 }
 0xed5   :  { %3741 = vmatpush3.bf16.msra.mxu1 %v5523_v62  ;;  %3761 = vmatpush3.bf16.msra.mxu0 %v5523_v62 }
 0xed6   :  { %3742 = vmatprep.subr.bf16.mxu1 %v5747_v48  ;;  %3762 = vmatprep.subr.bf16.mxu0 %v5747_v48 }
 0xed9   :  { %3743 = vmatpush3.bf16.msra.mxu1 %v5532_v57  ;;  %3763 = vmatpush3.bf16.msra.mxu0 %v5532_v57 }
 0xeda   :  { %3744 = vmatprep.subr.bf16.mxu1 %v5747_v48  ;;  %3764 = vmatprep.subr.bf16.mxu0 %v5747_v48 }
 0xedd   :  { %3745 = vmatpush3.bf16.msra.mxu1 %v5541_v43  ;;  %3765 = vmatpush3.bf16.msra.mxu0 %v5541_v43 }
 0xede   :  { %3746 = vmatprep.subr.bf16.mxu1 %v5747_v48  ;;  %3766 = vmatprep.subr.bf16.mxu0 %v5747_v48 }
 0xee1   :  { %3747 = vmatpush3.bf16.msra.mxu1 %v5550_v10  ;;  %3767 = vmatpush3.bf16.msra.mxu0 %v5550_v10 }
 0xee2   :  { %3748 = vmatprep.subr.bf16.mxu1 %v5747_v48  ;;  %3768 = vmatprep.subr.bf16.mxu0 %v5747_v48 }
 0xee5   :  { %3749 = vmatpush3.bf16.msra.mxu1 %v5559_v47  ;;  %3769 = vmatpush3.bf16.msra.mxu0 %v5559_v47 }
 0xee6   :  { %3750 = vmatprep.subr.bf16.mxu1 %v5747_v48  ;;  %3770 = vmatprep.subr.bf16.mxu0 %v5747_v48 }
 0xee9   :  { %3751 = vmatpush3.bf16.msra.mxu1 %v5568_v0  ;;  %3771 = vmatpush3.bf16.msra.mxu0 %v5568_v0 }
 0xeea   :  { %3776 = vmatprep.subr.bf16.mxu1 %v5747_v48  ;;  %3796 = vmatprep.subr.bf16.mxu0 %v5747_v48 }
 0xeec   :  { %3753 = vmatmul.mubr.bf16.vlgmr.msra.gmra.mxu1 %v2790_v3  ;;  %3773 = vmatmul.mubr.bf16.vlgmr.msra.gmra.mxu0 %v2833_v9 }
 0xeed   :  { %3777 = vmatpush3.bf16.msra.mxu1 %v5501_v51  ;;  %3797 = vmatpush3.bf16.msra.mxu0 %v5501_v51 }
 0xeee   :  { %3778 = vmatprep.subr.bf16.mxu1 %v5747_v48  ;;  %3798 = vmatprep.subr.bf16.mxu0 %v5747_v48 }
 0xeef   :  { %3792 = vmatprep.mubr.msk.bf16.mxu1 %vm4123_vm1, %v5747_v48  ;;  %3812 = vmatprep.mubr.msk.bf16.mxu0 %vm4123_vm1, %v5747_v48 }
 0xef1   :  { %3779 = vmatpush3.bf16.msra.mxu1 %v5510_v49  ;;  %3799 = vmatpush3.bf16.msra.mxu0 %v5510_v49 }
 0xef2   :  { %3780 = vmatprep.subr.bf16.mxu1 %v5747_v48  ;;  %3800 = vmatprep.subr.bf16.mxu0 %v5747_v48 }
 0xef5   :  { %3781 = vmatpush3.bf16.msra.mxu1 %v5523_v62  ;;  %3801 = vmatpush3.bf16.msra.mxu0 %v5523_v62 }
 0xef6   :  { %3782 = vmatprep.subr.bf16.mxu1 %v5747_v48  ;;  %3802 = vmatprep.subr.bf16.mxu0 %v5747_v48 }
 0xef9   :  { %3783 = vmatpush3.bf16.msra.mxu1 %v5532_v57  ;;  %3803 = vmatpush3.bf16.msra.mxu0 %v5532_v57 }
 0xefa   :  { %3784 = vmatprep.subr.bf16.mxu1 %v5747_v48  ;;  %3804 = vmatprep.subr.bf16.mxu0 %v5747_v48 }
 0xefd   :  { %3785 = vmatpush3.bf16.msra.mxu1 %v5541_v43  ;;  %3805 = vmatpush3.bf16.msra.mxu0 %v5541_v43 }
 0xefe   :  { %3786 = vmatprep.subr.bf16.mxu1 %v5747_v48  ;;  %3806 = vmatprep.subr.bf16.mxu0 %v5747_v48 }
 0xf01   :  { %3787 = vmatpush3.bf16.msra.mxu1 %v5550_v10  ;;  %3807 = vmatpush3.bf16.msra.mxu0 %v5550_v10 }
 0xf02   :  { %3788 = vmatprep.subr.bf16.mxu1 %v5747_v48  ;;  %3808 = vmatprep.subr.bf16.mxu0 %v5747_v48 }
 0xf05   :  { %3789 = vmatpush3.bf16.msra.mxu1 %v5559_v47  ;;  %3809 = vmatpush3.bf16.msra.mxu0 %v5559_v47 }
 0xf06   :  { %3790 = vmatprep.subr.bf16.mxu1 %v5747_v48  ;;  %3810 = vmatprep.subr.bf16.mxu0 %v5747_v48 }
 0xf09   :  { %3791 = vmatpush3.bf16.msra.mxu1 %v5568_v0  ;;  %3811 = vmatpush3.bf16.msra.mxu0 %v5568_v0 }
 0xf0a   :  { %3816 = vmatprep.subr.bf16.mxu1 %v5747_v48 }
 0xf0c   :  { %3793 = vmatmul.mubr.bf16.vlgmr.msra.gmra.mxu1 %v2876_v63  ;;  %3813 = vmatmul.mubr.bf16.vlgmr.msra.gmra.mxu0 %v2919_v56 }
 0xf0d   :  { %3817 = vmatpush3.bf16.msra.mxu1 %v5501_v51  ;;  %3832 = vmatprep.mubr.msk.bf16.mxu1 %vm4123_vm1, %v5747_v48 }
 0xf0e   :  { %3818 = vmatprep.subr.bf16.mxu1 %v5747_v48 }
 0xf11   :  { %3819 = vmatpush3.bf16.msra.mxu1 %v5510_v49 }
 0xf12   :  { %3820 = vmatprep.subr.bf16.mxu1 %v5747_v48 }
 0xf15   :  { %3821 = vmatpush3.bf16.msra.mxu1 %v5523_v62 }
 0xf16   :  { %3822 = vmatprep.subr.bf16.mxu1 %v5747_v48 }
 0xf19   :  { %3823 = vmatpush3.bf16.msra.mxu1 %v5532_v57 }
 0xf1a   :  { %3824 = vmatprep.subr.bf16.mxu1 %v5747_v48 }
 0xf1d   :  { %3825 = vmatpush3.bf16.msra.mxu1 %v5541_v43 }
 0xf1e   :  { %3826 = vmatprep.subr.bf16.mxu1 %v5747_v48 }
 0xf21   :  { %3827 = vmatpush3.bf16.msra.mxu1 %v5550_v10 }
 0xf22   :  { %3828 = vmatprep.subr.bf16.mxu1 %v5747_v48 }
 0xf25   :  { %3829 = vmatpush3.bf16.msra.mxu1 %v5559_v47 }
 0xf26   :  { %3830 = vmatprep.subr.bf16.mxu1 %v5747_v48 }
 0xf29   :  { %3831 = vmatpush3.bf16.msra.mxu1 %v5568_v0 }
 0xf6c   :  { %v2560_v54 = vpop.f32.mrf.mxu1  ;;  %v2601_v1 = vpop.f32.mrf.mxu0 }
 0xf6d   :  { %v2607_v44 = vadd.f32 %v2560_v54, %v5772_v60  ;;  %v2621_v25 = vadd.f32 %v4120_v50, %v2601_v1 }
 0xf6e   :  { %v2562_v46 = vpop.f32.mrf.mxu1  ;;  %v3694_v14 = vpop.f32.mrf.mxu0 }
 0xf6f   :  { %v3141_v18 = vmul.f32 -1.442695, %v2607_v44  ;;  %v2614_v27 = vadd.f32 %v2562_v46, %v5773_v61 }
 0xf70   :  { %v2564_v20 = vpop.f32.mrf.mxu1  ;;  %v2604_v22 = vpop.f32.mrf.mxu0 }
 0xf71   :  { %4085 = vpow2.f32 %v3141_v18  ;;  %v3142_v28 = vmul.f32 -1.442695, %v2614_v27 }
 0xf72   :  { %v2565_v23 = vpop.f32.mrf.mxu1  ;;  %v3695_v26 = vpop.f32.mrf.mxu0 }
 0xf73   :  { %4087 = vpow2.f32 %v3142_v28 }
 0xf7e   :  { %v4086_v29 = vpop.eup %4085 }
 0xf7f   :  { %v2611_v48 = vadd.f32 1.0, %v4086_v29 }
 0xf80   :  { %v4088_v31 = vpop.eup %4087 }
 0xf81   :  { %4089 = vrcp.f32 %v2611_v48  ;;  %v2618_v32 = vadd.f32 1.0, %v4088_v31 }
 0xf83   :  { %4091 = vrcp.f32 %v2618_v32 }
 0xf8c   :  { %v2739_v33 = vpop.f32.mrf.mxu1  ;;  %v2782_v59 = vpop.f32.mrf.mxu0 }
 0xf8d   :  { %v2740_v34 = vadd.f32 %v3143_v21, %v2739_v33  ;;  %v2783_v52 = vadd.f32 %v3143_v21, %v2782_v59 }
 0xf8e   :  { %v4090_v35 = vpop.eup %4089  ;;  %v3714_v12 = vpop.f32.mrf.mxu1 }
 0xf8f   :  { %v3734_v36 = vpop.f32.mrf.mxu0  ;;  %v2622_v58 = vmul.f32 %v4090_v35, %v2621_v25  ;;  %v2745_v37 = vpack.c.bf16 %v2740_v34, %v2740_v34  ;;  %v2788_v55 = vpack.c.bf16 %v2783_v52, %v2783_v52 }
 0xf90   :  { %v2742_v24 = vpop.f32.mrf.mxu1  ;;  %v4092_v30 = vpop.eup %4091 }
 0xf91   :  { %v2785_v38 = vpop.f32.mrf.mxu0  ;;  %v2623_v39 = vadd.f32 %v2622_v58, %v5774_v4  ;;  %2746 = vst [vmem:[%s5712_s14 + $0x4] sm:$0xf] %v2745_v37  ;;  %2789 = vst [vmem:[%s5712_s14 + $0x8] sm:$0xf] %v2788_v55  ;;  %v2625_v8 = vsub.f32 1.0, %v4092_v30  ;;  %v2627_v41 = vmul.f32 %v4092_v30, %v5496_v5 }
 0xf92   :  { %v3715_v2 = vpop.f32.mrf.mxu1 }
 0xf93   :  { %v3735_v45 = vpop.f32.mrf.mxu0  ;;  %4093 = vtanh.f32 %v2623_v39 }
 0xfa0   :  { %v4094_v15 = vpop.eup %4093 }
 0xfa1   :  { %v2626_v16 = vmul.f32 %v4094_v15, %v2625_v8 }
 0xfa3   :  { %v2628_v6 = vadd.f32 %v2627_v41, %v2626_v16 }
 0xfa5   :  { %v2629_v7 = vpack.c.bf16 %v2628_v6, %v2628_v6 }
 0xfa7   :  { %2631 = vst [vmem:[#allocation3 + $0x18] sm:$0xf] %v2629_v7 }
 0xfac   :  { %v2825_v13 = vpop.f32.mrf.mxu1  ;;  %v2868_v19 = vpop.f32.mrf.mxu0 }
 0xfad   :  { %v2826_v42 = vadd.f32 %v3143_v21, %v2825_v13  ;;  %v2869_v53 = vadd.f32 %v3143_v21, %v2868_v19 }
 0xfae   :  { %v3754_v51 = vpop.f32.mrf.mxu1  ;;  %v3774_v11 = vpop.f32.mrf.mxu0  ;;  %v2962_v49 = vld [vmem:[#allocation3 + $0x18] sm:$0xf] }
 0xfaf   :  { %v2831_v62 = vpack.c.bf16 %v2826_v42, %v2826_v42  ;;  %v2874_v57 = vpack.c.bf16 %v2869_v53, %v2869_v53  ;;  %3833 = vmatmul.mubr.bf16.vlgmr.msra.gmra.mxu1 %v2962_v49 }
 0xfb0   :  { %v2828_v43 = vpop.f32.mrf.mxu1  ;;  %v2871_v10 = vpop.f32.mrf.mxu0 }
 0xfb1   :  { %2832 = vst [vmem:[%s5712_s14 + $0xc] sm:$0xf] %v2831_v62  ;;  %2875 = vst [vmem:[%s5712_s14 + $0x10] sm:$0xf] %v2874_v57 }
 0xfb2   :  { %v3755_v5 = vpop.f32.mrf.mxu1  ;;  %v3775_v47 = vpop.f32.mrf.mxu0 }
 0xfcc   :  { %v2911_v0 = vpop.f32.mrf.mxu1  ;;  %v2954_v17 = vpop.f32.mrf.mxu0 }
 0xfcd   :  { %v2912_v40 = vadd.f32 %v3143_v21, %v2911_v0  ;;  %v2955_v3 = vadd.f32 %v3143_v21, %v2954_v17 }
 0xfce   :  { %v3794_v9 = vpop.f32.mrf.mxu1  ;;  %v3814_v63 = vpop.f32.mrf.mxu0 }
 0xfcf   :  { %v2917_v56 = vpack.c.bf16 %v2912_v40, %v2912_v40  ;;  %v2960_v54 = vpack.c.bf16 %v2955_v3, %v2955_v3 }
 0xfd0   :  { %v2914_v1 = vpop.f32.mrf.mxu1  ;;  %v2957_v60 = vpop.f32.mrf.mxu0 }
 0xfd1   :  { %2918 = vst [vmem:[%s5712_s14 + $0x14] sm:$0xf] %v2917_v56  ;;  %2961 = vst [vmem:[%s5712_s14 + $0x18] sm:$0xf] %v2960_v54 }
 0xfd2   :  { %v3795_v44 = vpop.f32.mrf.mxu1  ;;  %v3815_v46 = vpop.f32.mrf.mxu0 }
0x106f   :  { %v2997_v14 = vpop.f32.mrf.mxu1 }
0x1070   :  { %v2998_v18 = vadd.f32 %v3143_v21, %v2997_v14 }
0x1071   :  { %v3834_v20 = vpop.f32.mrf.mxu1 }
0x1072   :  { %v3003_v22 = vpack.c.bf16 %v2998_v18, %v2998_v18 }
0x1073   :  { %v3000_v23 = vpop.f32.mrf.mxu1 }
0x1074   :  { %3004 = vst [vmem:[%s5712_s14 + $0x1c] sm:$0xf] %v3003_v22 }
0x1075   :  { %v3835_v26 = vpop.f32.mrf.mxu1 }

</bundles_post_ra>
